<compile_context>
chip_gen: v5e
topology: v5e:2x2
jax: 0.10.0
libtpu: 0.0.40
codegen_flags: <defaults>
</compile_context>

<pallas_src>
import functools

import jax
import jax.numpy as jnp
from jax import lax
from jax.experimental import pallas as pl
from jax.experimental.pallas import tpu as pltpu


def _round_up(x, m):
    return (x + m - 1) // m * m


def _ra_kernel(x_ref, m_ref, w1_ref, b1_ref, w234_ref, b234_ref, w5_ref, b5_ref,
               o_ref, *, W):
    """Fused RA forward; batch is folded into the lane axis.

    x_ref:    (Cx, L)           input, channels zero-padded, L = pad(N*H*W, 128)
    m_ref:    (8, L)            boundary masks for the 8 non-center 3x3 taps
    w1_ref:   (Cp, Cx)  f32     1x1 'convert' weight (padded)
    b1_ref:   (Cp, 1)   f32
    w234_ref: (3, 3, Cp, 3*Cp)  bf16, the three out->out 3x3 convs grouped by kh
    b234_ref: (3, Cp, 1) f32
    w5_ref:   (3, Cp, 3*Cp)     bf16, final out->1 3x3 conv (row 0 real), grouped by kh
    b5_ref:   (Cp, 1)   f32
    o_ref:    (Cin, L)          output (original channel count)
    """
    L = x_ref.shape[-1]
    Cx = x_ref.shape[0]
    Cin = o_ref.shape[0]

    x = x_ref[...]                                     # (Cx, L) f32
    a = jax.nn.sigmoid(-x)

    # ---- 1x1 "convert" conv (channel matmul / outer product), kept in f32 ----------
    if Cx == 1:
        z = w1_ref[...] * x + b1_ref[...]              # (Cp,1)*(1,L) outer product (VPU)
    else:
        z = jnp.dot(w1_ref[...], x, preferred_element_type=jnp.float32) + b1_ref[...]
    # Reverse attention: a.expand(-1, out_channel, -1, -1) * z.
    # (Cx == 1 broadcasts over the Cp rows; Cx == Cp is elementwise; the zero-padded
    #  channel rows of z stay exactly zero, so they never pollute the contraction.)
    z = a * z                                          # (Cp, L) f32

    # ---- boundary masks: loaded once, reused by all four conv layers ---------------
    masks = {}
    r = 0
    for dh in (-1, 0, 1):
        for dw in (-1, 0, 1):
            if dh == 0 and dw == 0:
                continue
            masks[(dh, dw)] = m_ref[r:r + 1, :]        # (1, L) f32
            r += 1

    def conv3x3(t, get_w, b):
        # 3 accumulating bf16 MXU matmuls, one per kh row-group (K = 3*Cp each).
        # Building group g+1's pieces (roll on XLU, mask+cast on VPU) overlaps the
        # MXU dot of group g.
        acc = None
        for g, dh in enumerate((-1, 0, 1)):
            pieces = []
            for dw in (-1, 0, 1):
                if dh == 0 and dw == 0:
                    piece = t
                else:
                    # lane p reads flat pixel p + dh*W + dw; out-of-image reads
                    # (incl. cross-image wrap and lane padding) are zeroed by the mask.
                    shift = (-(dh * W + dw)) % L
                    piece = pltpu.roll(t, shift, 1) * masks[(dh, dw)]
                pieces.append(piece.astype(jnp.bfloat16))
            grp = jnp.concatenate(pieces, axis=0)      # (3*Cp, L) bf16
            d = jnp.dot(get_w(g), grp, preferred_element_type=jnp.float32)
            acc = d if acc is None else acc + d
        return acc + b                                 # (Cp, L) f32

    t = z
    for i in range(3):
        t = jnp.maximum(
            conv3x3(t, lambda g, i=i: w234_ref[i, g], b234_ref[i]), 0.0)
    t = conv3x3(t, lambda g: w5_ref[g], b5_ref[...])[0:1, :]       # (1, L)

    # Residual add of the 1-channel map, broadcast over the original channels.
    o_ref[...] = (x[:Cin, :] + t).astype(o_ref.dtype)


def ra_forward(x, convert_w, convert_b, conv_ws, conv_bs):
    """Pallas equivalent of RA(in_channel, out_channel).forward(x).

    x:          (N, in_channel, H, W)
    convert_w:  (out_channel, in_channel, 1, 1);  convert_b: (out_channel,)
    conv_ws:    [(out,out,3,3)] * 3 + [(1,out,3,3)];  conv_bs: [(out,)] * 3 + [(1,)]
    """
    N, Cin, H, W = x.shape
    Cout = convert_w.shape[0]
    HWt = N * H * W
    # torch's a.expand(-1, out_channel, -1, -1) requires this:
    assert Cin == 1 or Cin == Cout, "RA.forward needs in_channel == 1 or == out_channel"

    f32, bf16 = jnp.float32, jnp.bfloat16
    Cp = _round_up(Cout, 16)           # bf16 sublane packing
    Cx = 1 if Cin == 1 else Cp
    L = _round_up(HWt, 128)            # lane-dense loads / unmasked vst

    # ---- layout glue: (N, C, H, W) -> (C, N*H*W); pad channels + lanes with zeros ----
    x2d = jnp.transpose(x, (1, 0, 2, 3)).reshape(Cin, HWt).astype(f32)
    x2d = jnp.pad(x2d, ((0, Cx - Cin), (0, L - HWt)))

    # 1x1 convert weight (f32)
    w1 = convert_w.reshape(Cout, Cin).astype(f32)
    w1 = jnp.pad(w1, ((0, Cp - Cout), (0, Cx - Cin)))
    b1 = jnp.pad(convert_b.astype(f32), (0, Cp - Cout)).reshape(Cp, 1)

    # 3x3 weights grouped by kh: (Co, Ci, 3, 3) -> (3[kh], Cp, 3[kw]*Cp) bf16.
    # Column order (kw, ci) matches the concatenated patch pieces in the kernel.
    def to_groups(w):
        co, ci = w.shape[0], w.shape[1]
        wt = jnp.pad(w.astype(f32), ((0, Cp - co), (0, Cp - ci), (0, 0), (0, 0)))
        wt = jnp.transpose(wt, (2, 0, 3, 1))           # (kh, Co_pad, kw, Cp)
        return wt.reshape(3, Cp, 3 * Cp).astype(bf16)

    w234 = jnp.stack([to_groups(conv_ws[i]) for i in range(3)])          # (3, 3, Cp, 3*Cp)
    b234 = jnp.stack([jnp.pad(conv_bs[i].astype(f32), (0, Cp - Cout)).reshape(Cp, 1)
                      for i in range(3)])                                 # (3, Cp, 1)
    w5 = to_groups(conv_ws[3])                                            # (3, Cp, 3*Cp)
    b5 = jnp.pad(conv_bs[3].astype(f32), (0, Cp - 1)).reshape(Cp, 1)

    # Per-image boundary masks for the 8 non-center taps (also zero the lane padding),
    # precomputed host-side -> one lane-dense (8, L) load in the kernel.
    pos = jnp.arange(L, dtype=jnp.int32)
    hh = (pos // W) % H            # row within its own image (batch fused on lanes)
    ww = pos % W
    in_img = pos < HWt
    rows = []
    for dh in (-1, 0, 1):
        for dw in (-1, 0, 1):
            if dh == 0 and dw == 0:
                continue
            rows.append((hh + dh >= 0) & (hh + dh < H) &
                        (ww + dw >= 0) & (ww + dw < W) & in_img)
    masks = jnp.stack(rows).astype(f32)                                   # (8, L)

    kernel = functools.partial(_ra_kernel, W=W)

    out2d = pl.pallas_call(
        kernel,
        out_shape=jax.ShapeDtypeStruct((Cin, L), x.dtype),
        grid_spec=pltpu.PrefetchScalarGridSpec(
            num_scalar_prefetch=0,
            grid=(1,),                      # whole batch fused into the lane axis
            in_specs=[
                pl.BlockSpec((Cx, L), lambda i: (0, 0)),
                pl.BlockSpec((8, L), lambda i: (0, 0)),
                pl.BlockSpec((Cp, Cx), lambda i: (0, 0)),
                pl.BlockSpec((Cp, 1), lambda i: (0, 0)),
                pl.BlockSpec((3, 3, Cp, 3 * Cp), lambda i: (0, 0, 0, 0)),
                pl.BlockSpec((3, Cp, 1), lambda i: (0, 0, 0)),
                pl.BlockSpec((3, Cp, 3 * Cp), lambda i: (0, 0, 0)),
                pl.BlockSpec((Cp, 1), lambda i: (0, 0)),
            ],
            out_specs=pl.BlockSpec((Cin, L), lambda i: (0, 0)),
        ),
        compiler_params=pltpu.CompilerParams(
            dimension_semantics=("arbitrary",)),
    )(x2d, masks, w1, b1, w234, b234, w5, b5)

    # (Cin, N*H*W) -> (N, Cin, H, W)
    out = out2d[:, :HWt].reshape(Cin, N, H, W)
    return jnp.transpose(out, (1, 0, 2, 3))


def _ra_reference(x, convert_w, convert_b, conv_ws, conv_bs):
    """Pure-JAX reference matching the PyTorch module."""
    dn = ('NCHW', 'OIHW', 'NCHW')

    def conv(t, w, b, pad):
        y = lax.conv_general_dilated(t, w, (1, 1), pad, dimension_numbers=dn)
        return y + b.reshape(1, -1, 1, 1)

    a = jax.nn.sigmoid(-x)
    z = conv(x, convert_w, convert_b, [(0, 0), (0, 0)])
    z = a * z                              # == a.expand(-1, out_channel, -1, -1).mul(z)
    t = z
    for i in range(3):
        t = jnp.maximum(conv(t, conv_ws[i], conv_bs[i], [(1, 1), (1, 1)]), 0.0)
    t = conv(t, conv_ws[3], conv_bs[3], [(1, 1), (1, 1)])
    return x + t


if __name__ == "__main__":
    in_channel, out_channel = 4, 4
    N, H, W = 2, 16, 16

    key = jax.random.PRNGKey(0)
    ks = jax.random.split(key, 11)

    x = jax.random.normal(ks[0], (N, in_channel, H, W), dtype=jnp.float32)
    convert_w = jax.random.normal(ks[1], (out_channel, in_channel, 1, 1), jnp.float32) * 0.2
    convert_b = jax.random.normal(ks[2], (out_channel,), jnp.float32) * 0.1
    conv_ws = [jax.random.normal(ks[3 + i], (out_channel, out_channel, 3, 3), jnp.float32) * 0.1
               for i in range(3)]
    conv_ws.append(jax.random.normal(ks[6], (1, out_channel, 3, 3), jnp.float32) * 0.1)
    conv_bs = [jax.random.normal(ks[7 + i], (out_channel,), jnp.float32) * 0.1
               for i in range(3)]
    conv_bs.append(jax.random.normal(ks[10], (1,), jnp.float32) * 0.1)

    out = ra_forward(x, convert_w, convert_b, conv_ws, conv_bs)
    jax.block_until_ready(out)
    assert out.shape == (N, in_channel, H, W), out.shape

    ref = _ra_reference(x, convert_w, convert_b, conv_ws, conv_bs)
    # Tolerance sized for bf16 MXU operands with f32 accumulation (operand rounding
    # ~2^-9 across K<=144 taps); an all-f32 run of this kernel is ~1e-5 accurate.
    max_err = float(jnp.max(jnp.abs(out - ref)))
    assert max_err < 2e-2, f"mismatch vs reference, max abs err = {max_err}"

    print("KERNEL_OK")
</pallas_src>

<mosaic_0001>
module attributes {stable_mosaic.version = 11 : i64} {
  func.func @_ra_kernel(%arg0: i32, %arg1: memref<16x512xf32, #tpu.memory_space<vmem>>, %arg2: memref<8x512xf32, #tpu.memory_space<vmem>>, %arg3: memref<16x16xf32, #tpu.memory_space<vmem>>, %arg4: memref<16x1xf32, #tpu.memory_space<vmem>>, %arg5: memref<3x3x16x48xbf16, #tpu.memory_space<vmem>>, %arg6: memref<3x16x1xf32, #tpu.memory_space<vmem>>, %arg7: memref<3x16x48xbf16, #tpu.memory_space<vmem>>, %arg8: memref<16x1xf32, #tpu.memory_space<vmem>>, %arg9: memref<4x512xf32, #tpu.memory_space<vmem>>) attributes {dimension_semantics = [#tpu.dimension_semantics<arbitrary>], iteration_bounds = array<i64: 1>, scalar_prefetch = 0 : i64, scratch_operands = 0 : i64, tpu.core_type = #tpu.core_type<tc>, window_params = [{pipeline_mode = #tpu.pipeline_mode<synchronous>, transform_indices = @transform_0, window_bounds = array<i64: 16, 512>}, {pipeline_mode = #tpu.pipeline_mode<synchronous>, transform_indices = @transform_1, window_bounds = array<i64: 8, 512>}, {pipeline_mode = #tpu.pipeline_mode<synchronous>, transform_indices = @transform_2, window_bounds = array<i64: 16, 16>}, {pipeline_mode = #tpu.pipeline_mode<synchronous>, transform_indices = @transform_3, window_bounds = array<i64: 16, 1>}, {pipeline_mode = #tpu.pipeline_mode<synchronous>, transform_indices = @transform_4, window_bounds = array<i64: 3, 3, 16, 48>}, {pipeline_mode = #tpu.pipeline_mode<synchronous>, transform_indices = @transform_5, window_bounds = array<i64: 3, 16, 1>}, {pipeline_mode = #tpu.pipeline_mode<synchronous>, transform_indices = @transform_6, window_bounds = array<i64: 3, 16, 48>}, {pipeline_mode = #tpu.pipeline_mode<synchronous>, transform_indices = @transform_7, window_bounds = array<i64: 16, 1>}, {pipeline_mode = #tpu.pipeline_mode<synchronous>, transform_indices = @transform_8, window_bounds = array<i64: 4, 512>}]} {
    %c0 = arith.constant 0 : index
    %c0_0 = arith.constant 0 : index
    %0 = vector.load %arg1[%c0, %c0_0] : memref<16x512xf32, #tpu.memory_space<vmem>>, vector<16x512xf32>
    %cst = arith.constant 0.000000e+00 : f32
    %1 = vector.broadcast %cst : f32 to vector<16x512xf32>
    %2 = arith.subf %1, %0 : vector<16x512xf32>
    %3 = arith.negf %2 : vector<16x512xf32>
    %4 = math.exp %3 : vector<16x512xf32>
    %cst_1 = arith.constant 1.000000e+00 : f32
    %5 = vector.broadcast %cst_1 : f32 to vector<16x512xf32>
    %6 = arith.addf %5, %4 : vector<16x512xf32>
    %7 = arith.divf %5, %6 : vector<16x512xf32>
    %c0_2 = arith.constant 0 : index
    %c0_3 = arith.constant 0 : index
    %8 = vector.load %arg3[%c0_2, %c0_3] : memref<16x16xf32, #tpu.memory_space<vmem>>, vector<16x16xf32>
    %cst_4 = arith.constant dense<0.000000e+00> : vector<16x512xf32>
    %9 = tpu.matmul %8, %0, %cst_4 {dimension_numbers = #tpu.dot_dimension_numbers<[1], [0], [0], [1], [0, 0, 1, 1], [], []>} : vector<16x16xf32>, vector<16x512xf32>, vector<16x512xf32> -> vector<16x512xf32>
    %c0_5 = arith.constant 0 : index
    %c0_6 = arith.constant 0 : index
    %10 = vector.load %arg4[%c0_5, %c0_6] : memref<16x1xf32, #tpu.memory_space<vmem>>, vector<16x1xf32>
    %11 = vector.broadcast %10 : vector<16x1xf32> to vector<16x512xf32>
    %12 = arith.addf %9, %11 : vector<16x512xf32>
    %13 = arith.mulf %7, %12 : vector<16x512xf32>
    %c0_7 = arith.constant 0 : index
    %c0_8 = arith.constant 0 : index
    %14 = vector.load %arg2[%c0_7, %c0_8] : memref<8x512xf32, #tpu.memory_space<vmem>>, vector<1x512xf32>
    %c1 = arith.constant 1 : index
    %c0_9 = arith.constant 0 : index
    %15 = vector.load %arg2[%c1, %c0_9] : memref<8x512xf32, #tpu.memory_space<vmem>>, vector<1x512xf32>
    %c2 = arith.constant 2 : index
    %c0_10 = arith.constant 0 : index
    %16 = vector.load %arg2[%c2, %c0_10] : memref<8x512xf32, #tpu.memory_space<vmem>>, vector<1x512xf32>
    %c3 = arith.constant 3 : index
    %c0_11 = arith.constant 0 : index
    %17 = vector.load %arg2[%c3, %c0_11] : memref<8x512xf32, #tpu.memory_space<vmem>>, vector<1x512xf32>
    %c4 = arith.constant 4 : index
    %c0_12 = arith.constant 0 : index
    %18 = vector.load %arg2[%c4, %c0_12] : memref<8x512xf32, #tpu.memory_space<vmem>>, vector<1x512xf32>
    %c5 = arith.constant 5 : index
    %c0_13 = arith.constant 0 : index
    %19 = vector.load %arg2[%c5, %c0_13] : memref<8x512xf32, #tpu.memory_space<vmem>>, vector<1x512xf32>
    %c6 = arith.constant 6 : index
    %c0_14 = arith.constant 0 : index
    %20 = vector.load %arg2[%c6, %c0_14] : memref<8x512xf32, #tpu.memory_space<vmem>>, vector<1x512xf32>
    %c7 = arith.constant 7 : index
    %c0_15 = arith.constant 0 : index
    %21 = vector.load %arg2[%c7, %c0_15] : memref<8x512xf32, #tpu.memory_space<vmem>>, vector<1x512xf32>
    %c0_16 = arith.constant 0 : index
    %c0_17 = arith.constant 0 : index
    %c0_18 = arith.constant 0 : index
    %22 = vector.load %arg6[%c0_16, %c0_17, %c0_18] : memref<3x16x1xf32, #tpu.memory_space<vmem>>, vector<1x16x1xf32>
    %23 = vector.shape_cast %22 : vector<1x16x1xf32> to vector<16x1xf32>
    %c17_i32 = arith.constant 17 : i32
    %24 = tpu.dynamic_rotate %13 by %c17_i32 dim 1 : vector<16x512xf32>, i32 -> vector<16x512xf32>
    %25 = vector.broadcast %14 : vector<1x512xf32> to vector<16x512xf32>
    %26 = arith.mulf %24, %25 : vector<16x512xf32>
    %27 = arith.truncf %26 : vector<16x512xf32> to vector<16x512xbf16>
    %c16_i32 = arith.constant 16 : i32
    %28 = tpu.dynamic_rotate %13 by %c16_i32 dim 1 : vector<16x512xf32>, i32 -> vector<16x512xf32>
    %29 = vector.broadcast %15 : vector<1x512xf32> to vector<16x512xf32>
    %30 = arith.mulf %28, %29 : vector<16x512xf32>
    %31 = arith.truncf %30 : vector<16x512xf32> to vector<16x512xbf16>
    %c15_i32 = arith.constant 15 : i32
    %32 = tpu.dynamic_rotate %13 by %c15_i32 dim 1 : vector<16x512xf32>, i32 -> vector<16x512xf32>
    %33 = vector.broadcast %16 : vector<1x512xf32> to vector<16x512xf32>
    %34 = arith.mulf %32, %33 : vector<16x512xf32>
    %35 = arith.truncf %34 : vector<16x512xf32> to vector<16x512xbf16>
    %36 = tpu.concatenate %27, %31, %35 in 0 : vector<16x512xbf16>, vector<16x512xbf16>, vector<16x512xbf16> -> vector<48x512xbf16>
    %c0_19 = arith.constant 0 : index
    %c0_20 = arith.constant 0 : index
    %c0_21 = arith.constant 0 : index
    %c0_22 = arith.constant 0 : index
    %37 = vector.load %arg5[%c0_19, %c0_20, %c0_21, %c0_22] : memref<3x3x16x48xbf16, #tpu.memory_space<vmem>>, vector<1x1x16x48xbf16>
    %38 = vector.shape_cast %37 : vector<1x1x16x48xbf16> to vector<16x48xbf16>
    %cst_23 = arith.constant dense<0.000000e+00> : vector<16x512xf32>
    %39 = tpu.matmul %38, %36, %cst_23 {dimension_numbers = #tpu.dot_dimension_numbers<[1], [0], [0], [1], [0, 0, 1, 1], [], []>} : vector<16x48xbf16>, vector<48x512xbf16>, vector<16x512xf32> -> vector<16x512xf32>
    %c1_i32 = arith.constant 1 : i32
    %40 = tpu.dynamic_rotate %13 by %c1_i32 dim 1 : vector<16x512xf32>, i32 -> vector<16x512xf32>
    %41 = vector.broadcast %17 : vector<1x512xf32> to vector<16x512xf32>
    %42 = arith.mulf %40, %41 : vector<16x512xf32>
    %43 = arith.truncf %42 : vector<16x512xf32> to vector<16x512xbf16>
    %44 = arith.truncf %13 : vector<16x512xf32> to vector<16x512xbf16>
    %c511_i32 = arith.constant 511 : i32
    %45 = tpu.dynamic_rotate %13 by %c511_i32 dim 1 : vector<16x512xf32>, i32 -> vector<16x512xf32>
    %46 = vector.broadcast %18 : vector<1x512xf32> to vector<16x512xf32>
    %47 = arith.mulf %45, %46 : vector<16x512xf32>
    %48 = arith.truncf %47 : vector<16x512xf32> to vector<16x512xbf16>
    %49 = tpu.concatenate %43, %44, %48 in 0 : vector<16x512xbf16>, vector<16x512xbf16>, vector<16x512xbf16> -> vector<48x512xbf16>
    %c0_24 = arith.constant 0 : index
    %c1_25 = arith.constant 1 : index
    %c0_26 = arith.constant 0 : index
    %c0_27 = arith.constant 0 : index
    %50 = vector.load %arg5[%c0_24, %c1_25, %c0_26, %c0_27] : memref<3x3x16x48xbf16, #tpu.memory_space<vmem>>, vector<1x1x16x48xbf16>
    %51 = vector.shape_cast %50 : vector<1x1x16x48xbf16> to vector<16x48xbf16>
    %cst_28 = arith.constant dense<0.000000e+00> : vector<16x512xf32>
    %52 = tpu.matmul %51, %49, %cst_28 {dimension_numbers = #tpu.dot_dimension_numbers<[1], [0], [0], [1], [0, 0, 1, 1], [], []>} : vector<16x48xbf16>, vector<48x512xbf16>, vector<16x512xf32> -> vector<16x512xf32>
    %53 = arith.addf %39, %52 : vector<16x512xf32>
    %c497_i32 = arith.constant 497 : i32
    %54 = tpu.dynamic_rotate %13 by %c497_i32 dim 1 : vector<16x512xf32>, i32 -> vector<16x512xf32>
    %55 = vector.broadcast %19 : vector<1x512xf32> to vector<16x512xf32>
    %56 = arith.mulf %54, %55 : vector<16x512xf32>
    %57 = arith.truncf %56 : vector<16x512xf32> to vector<16x512xbf16>
    %c496_i32 = arith.constant 496 : i32
    %58 = tpu.dynamic_rotate %13 by %c496_i32 dim 1 : vector<16x512xf32>, i32 -> vector<16x512xf32>
    %59 = vector.broadcast %20 : vector<1x512xf32> to vector<16x512xf32>
    %60 = arith.mulf %58, %59 : vector<16x512xf32>
    %61 = arith.truncf %60 : vector<16x512xf32> to vector<16x512xbf16>
    %c495_i32 = arith.constant 495 : i32
    %62 = tpu.dynamic_rotate %13 by %c495_i32 dim 1 : vector<16x512xf32>, i32 -> vector<16x512xf32>
    %63 = vector.broadcast %21 : vector<1x512xf32> to vector<16x512xf32>
    %64 = arith.mulf %62, %63 : vector<16x512xf32>
    %65 = arith.truncf %64 : vector<16x512xf32> to vector<16x512xbf16>
    %66 = tpu.concatenate %57, %61, %65 in 0 : vector<16x512xbf16>, vector<16x512xbf16>, vector<16x512xbf16> -> vector<48x512xbf16>
    %c0_29 = arith.constant 0 : index
    %c2_30 = arith.constant 2 : index
    %c0_31 = arith.constant 0 : index
    %c0_32 = arith.constant 0 : index
    %67 = vector.load %arg5[%c0_29, %c2_30, %c0_31, %c0_32] : memref<3x3x16x48xbf16, #tpu.memory_space<vmem>>, vector<1x1x16x48xbf16>
    %68 = vector.shape_cast %67 : vector<1x1x16x48xbf16> to vector<16x48xbf16>
    %cst_33 = arith.constant dense<0.000000e+00> : vector<16x512xf32>
    %69 = tpu.matmul %68, %66, %cst_33 {dimension_numbers = #tpu.dot_dimension_numbers<[1], [0], [0], [1], [0, 0, 1, 1], [], []>} : vector<16x48xbf16>, vector<48x512xbf16>, vector<16x512xf32> -> vector<16x512xf32>
    %70 = arith.addf %53, %69 : vector<16x512xf32>
    %71 = vector.broadcast %23 : vector<16x1xf32> to vector<16x512xf32>
    %72 = arith.addf %70, %71 : vector<16x512xf32>
    %cst_34 = arith.constant 0.000000e+00 : f32
    %73 = vector.broadcast %cst_34 : f32 to vector<16x512xf32>
    %74 = arith.maximumf %72, %73 : vector<16x512xf32>
    %c1_35 = arith.constant 1 : index
    %c0_36 = arith.constant 0 : index
    %c0_37 = arith.constant 0 : index
    %75 = vector.load %arg6[%c1_35, %c0_36, %c0_37] : memref<3x16x1xf32, #tpu.memory_space<vmem>>, vector<1x16x1xf32>
    %76 = vector.shape_cast %75 : vector<1x16x1xf32> to vector<16x1xf32>
    %c17_i32_38 = arith.constant 17 : i32
    %77 = tpu.dynamic_rotate %74 by %c17_i32_38 dim 1 : vector<16x512xf32>, i32 -> vector<16x512xf32>
    %78 = vector.broadcast %14 : vector<1x512xf32> to vector<16x512xf32>
    %79 = arith.mulf %77, %78 : vector<16x512xf32>
    %80 = arith.truncf %79 : vector<16x512xf32> to vector<16x512xbf16>
    %c16_i32_39 = arith.constant 16 : i32
    %81 = tpu.dynamic_rotate %74 by %c16_i32_39 dim 1 : vector<16x512xf32>, i32 -> vector<16x512xf32>
    %82 = vector.broadcast %15 : vector<1x512xf32> to vector<16x512xf32>
    %83 = arith.mulf %81, %82 : vector<16x512xf32>
    %84 = arith.truncf %83 : vector<16x512xf32> to vector<16x512xbf16>
    %c15_i32_40 = arith.constant 15 : i32
    %85 = tpu.dynamic_rotate %74 by %c15_i32_40 dim 1 : vector<16x512xf32>, i32 -> vector<16x512xf32>
    %86 = vector.broadcast %16 : vector<1x512xf32> to vector<16x512xf32>
    %87 = arith.mulf %85, %86 : vector<16x512xf32>
    %88 = arith.truncf %87 : vector<16x512xf32> to vector<16x512xbf16>
    %89 = tpu.concatenate %80, %84, %88 in 0 : vector<16x512xbf16>, vector<16x512xbf16>, vector<16x512xbf16> -> vector<48x512xbf16>
    %c1_41 = arith.constant 1 : index
    %c0_42 = arith.constant 0 : index
    %c0_43 = arith.constant 0 : index
    %c0_44 = arith.constant 0 : index
    %90 = vector.load %arg5[%c1_41, %c0_42, %c0_43, %c0_44] : memref<3x3x16x48xbf16, #tpu.memory_space<vmem>>, vector<1x1x16x48xbf16>
    %91 = vector.shape_cast %90 : vector<1x1x16x48xbf16> to vector<16x48xbf16>
    %cst_45 = arith.constant dense<0.000000e+00> : vector<16x512xf32>
    %92 = tpu.matmul %91, %89, %cst_45 {dimension_numbers = #tpu.dot_dimension_numbers<[1], [0], [0], [1], [0, 0, 1, 1], [], []>} : vector<16x48xbf16>, vector<48x512xbf16>, vector<16x512xf32> -> vector<16x512xf32>
    %c1_i32_46 = arith.constant 1 : i32
    %93 = tpu.dynamic_rotate %74 by %c1_i32_46 dim 1 : vector<16x512xf32>, i32 -> vector<16x512xf32>
    %94 = vector.broadcast %17 : vector<1x512xf32> to vector<16x512xf32>
    %95 = arith.mulf %93, %94 : vector<16x512xf32>
    %96 = arith.truncf %95 : vector<16x512xf32> to vector<16x512xbf16>
    %97 = arith.truncf %74 : vector<16x512xf32> to vector<16x512xbf16>
    %c511_i32_47 = arith.constant 511 : i32
    %98 = tpu.dynamic_rotate %74 by %c511_i32_47 dim 1 : vector<16x512xf32>, i32 -> vector<16x512xf32>
    %99 = vector.broadcast %18 : vector<1x512xf32> to vector<16x512xf32>
    %100 = arith.mulf %98, %99 : vector<16x512xf32>
    %101 = arith.truncf %100 : vector<16x512xf32> to vector<16x512xbf16>
    %102 = tpu.concatenate %96, %97, %101 in 0 : vector<16x512xbf16>, vector<16x512xbf16>, vector<16x512xbf16> -> vector<48x512xbf16>
    %c1_48 = arith.constant 1 : index
    %c1_49 = arith.constant 1 : index
    %c0_50 = arith.constant 0 : index
    %c0_51 = arith.constant 0 : index
    %103 = vector.load %arg5[%c1_48, %c1_49, %c0_50, %c0_51] : memref<3x3x16x48xbf16, #tpu.memory_space<vmem>>, vector<1x1x16x48xbf16>
    %104 = vector.shape_cast %103 : vector<1x1x16x48xbf16> to vector<16x48xbf16>
    %cst_52 = arith.constant dense<0.000000e+00> : vector<16x512xf32>
    %105 = tpu.matmul %104, %102, %cst_52 {dimension_numbers = #tpu.dot_dimension_numbers<[1], [0], [0], [1], [0, 0, 1, 1], [], []>} : vector<16x48xbf16>, vector<48x512xbf16>, vector<16x512xf32> -> vector<16x512xf32>
    %106 = arith.addf %92, %105 : vector<16x512xf32>
    %c497_i32_53 = arith.constant 497 : i32
    %107 = tpu.dynamic_rotate %74 by %c497_i32_53 dim 1 : vector<16x512xf32>, i32 -> vector<16x512xf32>
    %108 = vector.broadcast %19 : vector<1x512xf32> to vector<16x512xf32>
    %109 = arith.mulf %107, %108 : vector<16x512xf32>
    %110 = arith.truncf %109 : vector<16x512xf32> to vector<16x512xbf16>
    %c496_i32_54 = arith.constant 496 : i32
    %111 = tpu.dynamic_rotate %74 by %c496_i32_54 dim 1 : vector<16x512xf32>, i32 -> vector<16x512xf32>
    %112 = vector.broadcast %20 : vector<1x512xf32> to vector<16x512xf32>
    %113 = arith.mulf %111, %112 : vector<16x512xf32>
    %114 = arith.truncf %113 : vector<16x512xf32> to vector<16x512xbf16>
    %c495_i32_55 = arith.constant 495 : i32
    %115 = tpu.dynamic_rotate %74 by %c495_i32_55 dim 1 : vector<16x512xf32>, i32 -> vector<16x512xf32>
    %116 = vector.broadcast %21 : vector<1x512xf32> to vector<16x512xf32>
    %117 = arith.mulf %115, %116 : vector<16x512xf32>
    %118 = arith.truncf %117 : vector<16x512xf32> to vector<16x512xbf16>
    %119 = tpu.concatenate %110, %114, %118 in 0 : vector<16x512xbf16>, vector<16x512xbf16>, vector<16x512xbf16> -> vector<48x512xbf16>
    %c1_56 = arith.constant 1 : index
    %c2_57 = arith.constant 2 : index
    %c0_58 = arith.constant 0 : index
    %c0_59 = arith.constant 0 : index
    %120 = vector.load %arg5[%c1_56, %c2_57, %c0_58, %c0_59] : memref<3x3x16x48xbf16, #tpu.memory_space<vmem>>, vector<1x1x16x48xbf16>
    %121 = vector.shape_cast %120 : vector<1x1x16x48xbf16> to vector<16x48xbf16>
    %cst_60 = arith.constant dense<0.000000e+00> : vector<16x512xf32>
    %122 = tpu.matmul %121, %119, %cst_60 {dimension_numbers = #tpu.dot_dimension_numbers<[1], [0], [0], [1], [0, 0, 1, 1], [], []>} : vector<16x48xbf16>, vector<48x512xbf16>, vector<16x512xf32> -> vector<16x512xf32>
    %123 = arith.addf %106, %122 : vector<16x512xf32>
    %124 = vector.broadcast %76 : vector<16x1xf32> to vector<16x512xf32>
    %125 = arith.addf %123, %124 : vector<16x512xf32>
    %cst_61 = arith.constant 0.000000e+00 : f32
    %126 = vector.broadcast %cst_61 : f32 to vector<16x512xf32>
    %127 = arith.maximumf %125, %126 : vector<16x512xf32>
    %c2_62 = arith.constant 2 : index
    %c0_63 = arith.constant 0 : index
    %c0_64 = arith.constant 0 : index
    %128 = vector.load %arg6[%c2_62, %c0_63, %c0_64] : memref<3x16x1xf32, #tpu.memory_space<vmem>>, vector<1x16x1xf32>
    %129 = vector.shape_cast %128 : vector<1x16x1xf32> to vector<16x1xf32>
    %c17_i32_65 = arith.constant 17 : i32
    %130 = tpu.dynamic_rotate %127 by %c17_i32_65 dim 1 : vector<16x512xf32>, i32 -> vector<16x512xf32>
    %131 = vector.broadcast %14 : vector<1x512xf32> to vector<16x512xf32>
    %132 = arith.mulf %130, %131 : vector<16x512xf32>
    %133 = arith.truncf %132 : vector<16x512xf32> to vector<16x512xbf16>
    %c16_i32_66 = arith.constant 16 : i32
    %134 = tpu.dynamic_rotate %127 by %c16_i32_66 dim 1 : vector<16x512xf32>, i32 -> vector<16x512xf32>
    %135 = vector.broadcast %15 : vector<1x512xf32> to vector<16x512xf32>
    %136 = arith.mulf %134, %135 : vector<16x512xf32>
    %137 = arith.truncf %136 : vector<16x512xf32> to vector<16x512xbf16>
    %c15_i32_67 = arith.constant 15 : i32
    %138 = tpu.dynamic_rotate %127 by %c15_i32_67 dim 1 : vector<16x512xf32>, i32 -> vector<16x512xf32>
    %139 = vector.broadcast %16 : vector<1x512xf32> to vector<16x512xf32>
    %140 = arith.mulf %138, %139 : vector<16x512xf32>
    %141 = arith.truncf %140 : vector<16x512xf32> to vector<16x512xbf16>
    %142 = tpu.concatenate %133, %137, %141 in 0 : vector<16x512xbf16>, vector<16x512xbf16>, vector<16x512xbf16> -> vector<48x512xbf16>
    %c2_68 = arith.constant 2 : index
    %c0_69 = arith.constant 0 : index
    %c0_70 = arith.constant 0 : index
    %c0_71 = arith.constant 0 : index
    %143 = vector.load %arg5[%c2_68, %c0_69, %c0_70, %c0_71] : memref<3x3x16x48xbf16, #tpu.memory_space<vmem>>, vector<1x1x16x48xbf16>
    %144 = vector.shape_cast %143 : vector<1x1x16x48xbf16> to vector<16x48xbf16>
    %cst_72 = arith.constant dense<0.000000e+00> : vector<16x512xf32>
    %145 = tpu.matmul %144, %142, %cst_72 {dimension_numbers = #tpu.dot_dimension_numbers<[1], [0], [0], [1], [0, 0, 1, 1], [], []>} : vector<16x48xbf16>, vector<48x512xbf16>, vector<16x512xf32> -> vector<16x512xf32>
    %c1_i32_73 = arith.constant 1 : i32
    %146 = tpu.dynamic_rotate %127 by %c1_i32_73 dim 1 : vector<16x512xf32>, i32 -> vector<16x512xf32>
    %147 = vector.broadcast %17 : vector<1x512xf32> to vector<16x512xf32>
    %148 = arith.mulf %146, %147 : vector<16x512xf32>
    %149 = arith.truncf %148 : vector<16x512xf32> to vector<16x512xbf16>
    %150 = arith.truncf %127 : vector<16x512xf32> to vector<16x512xbf16>
    %c511_i32_74 = arith.constant 511 : i32
    %151 = tpu.dynamic_rotate %127 by %c511_i32_74 dim 1 : vector<16x512xf32>, i32 -> vector<16x512xf32>
    %152 = vector.broadcast %18 : vector<1x512xf32> to vector<16x512xf32>
    %153 = arith.mulf %151, %152 : vector<16x512xf32>
    %154 = arith.truncf %153 : vector<16x512xf32> to vector<16x512xbf16>
    %155 = tpu.concatenate %149, %150, %154 in 0 : vector<16x512xbf16>, vector<16x512xbf16>, vector<16x512xbf16> -> vector<48x512xbf16>
    %c2_75 = arith.constant 2 : index
    %c1_76 = arith.constant 1 : index
    %c0_77 = arith.constant 0 : index
    %c0_78 = arith.constant 0 : index
    %156 = vector.load %arg5[%c2_75, %c1_76, %c0_77, %c0_78] : memref<3x3x16x48xbf16, #tpu.memory_space<vmem>>, vector<1x1x16x48xbf16>
    %157 = vector.shape_cast %156 : vector<1x1x16x48xbf16> to vector<16x48xbf16>
    %cst_79 = arith.constant dense<0.000000e+00> : vector<16x512xf32>
    %158 = tpu.matmul %157, %155, %cst_79 {dimension_numbers = #tpu.dot_dimension_numbers<[1], [0], [0], [1], [0, 0, 1, 1], [], []>} : vector<16x48xbf16>, vector<48x512xbf16>, vector<16x512xf32> -> vector<16x512xf32>
    %159 = arith.addf %145, %158 : vector<16x512xf32>
    %c497_i32_80 = arith.constant 497 : i32
    %160 = tpu.dynamic_rotate %127 by %c497_i32_80 dim 1 : vector<16x512xf32>, i32 -> vector<16x512xf32>
    %161 = vector.broadcast %19 : vector<1x512xf32> to vector<16x512xf32>
    %162 = arith.mulf %160, %161 : vector<16x512xf32>
    %163 = arith.truncf %162 : vector<16x512xf32> to vector<16x512xbf16>
    %c496_i32_81 = arith.constant 496 : i32
    %164 = tpu.dynamic_rotate %127 by %c496_i32_81 dim 1 : vector<16x512xf32>, i32 -> vector<16x512xf32>
    %165 = vector.broadcast %20 : vector<1x512xf32> to vector<16x512xf32>
    %166 = arith.mulf %164, %165 : vector<16x512xf32>
    %167 = arith.truncf %166 : vector<16x512xf32> to vector<16x512xbf16>
    %c495_i32_82 = arith.constant 495 : i32
    %168 = tpu.dynamic_rotate %127 by %c495_i32_82 dim 1 : vector<16x512xf32>, i32 -> vector<16x512xf32>
    %169 = vector.broadcast %21 : vector<1x512xf32> to vector<16x512xf32>
    %170 = arith.mulf %168, %169 : vector<16x512xf32>
    %171 = arith.truncf %170 : vector<16x512xf32> to vector<16x512xbf16>
    %172 = tpu.concatenate %163, %167, %171 in 0 : vector<16x512xbf16>, vector<16x512xbf16>, vector<16x512xbf16> -> vector<48x512xbf16>
    %c2_83 = arith.constant 2 : index
    %c2_84 = arith.constant 2 : index
    %c0_85 = arith.constant 0 : index
    %c0_86 = arith.constant 0 : index
    %173 = vector.load %arg5[%c2_83, %c2_84, %c0_85, %c0_86] : memref<3x3x16x48xbf16, #tpu.memory_space<vmem>>, vector<1x1x16x48xbf16>
    %174 = vector.shape_cast %173 : vector<1x1x16x48xbf16> to vector<16x48xbf16>
    %cst_87 = arith.constant dense<0.000000e+00> : vector<16x512xf32>
    %175 = tpu.matmul %174, %172, %cst_87 {dimension_numbers = #tpu.dot_dimension_numbers<[1], [0], [0], [1], [0, 0, 1, 1], [], []>} : vector<16x48xbf16>, vector<48x512xbf16>, vector<16x512xf32> -> vector<16x512xf32>
    %176 = arith.addf %159, %175 : vector<16x512xf32>
    %177 = vector.broadcast %129 : vector<16x1xf32> to vector<16x512xf32>
    %178 = arith.addf %176, %177 : vector<16x512xf32>
    %cst_88 = arith.constant 0.000000e+00 : f32
    %179 = vector.broadcast %cst_88 : f32 to vector<16x512xf32>
    %180 = arith.maximumf %178, %179 : vector<16x512xf32>
    %c0_89 = arith.constant 0 : index
    %c0_90 = arith.constant 0 : index
    %181 = vector.load %arg8[%c0_89, %c0_90] : memref<16x1xf32, #tpu.memory_space<vmem>>, vector<16x1xf32>
    %c17_i32_91 = arith.constant 17 : i32
    %182 = tpu.dynamic_rotate %180 by %c17_i32_91 dim 1 : vector<16x512xf32>, i32 -> vector<16x512xf32>
    %183 = vector.broadcast %14 : vector<1x512xf32> to vector<16x512xf32>
    %184 = arith.mulf %182, %183 : vector<16x512xf32>
    %185 = arith.truncf %184 : vector<16x512xf32> to vector<16x512xbf16>
    %c16_i32_92 = arith.constant 16 : i32
    %186 = tpu.dynamic_rotate %180 by %c16_i32_92 dim 1 : vector<16x512xf32>, i32 -> vector<16x512xf32>
    %187 = vector.broadcast %15 : vector<1x512xf32> to vector<16x512xf32>
    %188 = arith.mulf %186, %187 : vector<16x512xf32>
    %189 = arith.truncf %188 : vector<16x512xf32> to vector<16x512xbf16>
    %c15_i32_93 = arith.constant 15 : i32
    %190 = tpu.dynamic_rotate %180 by %c15_i32_93 dim 1 : vector<16x512xf32>, i32 -> vector<16x512xf32>
    %191 = vector.broadcast %16 : vector<1x512xf32> to vector<16x512xf32>
    %192 = arith.mulf %190, %191 : vector<16x512xf32>
    %193 = arith.truncf %192 : vector<16x512xf32> to vector<16x512xbf16>
    %194 = tpu.concatenate %185, %189, %193 in 0 : vector<16x512xbf16>, vector<16x512xbf16>, vector<16x512xbf16> -> vector<48x512xbf16>
    %c0_94 = arith.constant 0 : index
    %c0_95 = arith.constant 0 : index
    %c0_96 = arith.constant 0 : index
    %195 = vector.load %arg7[%c0_94, %c0_95, %c0_96] : memref<3x16x48xbf16, #tpu.memory_space<vmem>>, vector<1x16x48xbf16>
    %196 = vector.shape_cast %195 : vector<1x16x48xbf16> to vector<16x48xbf16>
    %cst_97 = arith.constant dense<0.000000e+00> : vector<16x512xf32>
    %197 = tpu.matmul %196, %194, %cst_97 {dimension_numbers = #tpu.dot_dimension_numbers<[1], [0], [0], [1], [0, 0, 1, 1], [], []>} : vector<16x48xbf16>, vector<48x512xbf16>, vector<16x512xf32> -> vector<16x512xf32>
    %c1_i32_98 = arith.constant 1 : i32
    %198 = tpu.dynamic_rotate %180 by %c1_i32_98 dim 1 : vector<16x512xf32>, i32 -> vector<16x512xf32>
    %199 = vector.broadcast %17 : vector<1x512xf32> to vector<16x512xf32>
    %200 = arith.mulf %198, %199 : vector<16x512xf32>
    %201 = arith.truncf %200 : vector<16x512xf32> to vector<16x512xbf16>
    %202 = arith.truncf %180 : vector<16x512xf32> to vector<16x512xbf16>
    %c511_i32_99 = arith.constant 511 : i32
    %203 = tpu.dynamic_rotate %180 by %c511_i32_99 dim 1 : vector<16x512xf32>, i32 -> vector<16x512xf32>
    %204 = vector.broadcast %18 : vector<1x512xf32> to vector<16x512xf32>
    %205 = arith.mulf %203, %204 : vector<16x512xf32>
    %206 = arith.truncf %205 : vector<16x512xf32> to vector<16x512xbf16>
    %207 = tpu.concatenate %201, %202, %206 in 0 : vector<16x512xbf16>, vector<16x512xbf16>, vector<16x512xbf16> -> vector<48x512xbf16>
    %c1_100 = arith.constant 1 : index
    %c0_101 = arith.constant 0 : index
    %c0_102 = arith.constant 0 : index
    %208 = vector.load %arg7[%c1_100, %c0_101, %c0_102] : memref<3x16x48xbf16, #tpu.memory_space<vmem>>, vector<1x16x48xbf16>
    %209 = vector.shape_cast %208 : vector<1x16x48xbf16> to vector<16x48xbf16>
    %cst_103 = arith.constant dense<0.000000e+00> : vector<16x512xf32>
    %210 = tpu.matmul %209, %207, %cst_103 {dimension_numbers = #tpu.dot_dimension_numbers<[1], [0], [0], [1], [0, 0, 1, 1], [], []>} : vector<16x48xbf16>, vector<48x512xbf16>, vector<16x512xf32> -> vector<16x512xf32>
    %211 = arith.addf %197, %210 : vector<16x512xf32>
    %c497_i32_104 = arith.constant 497 : i32
    %212 = tpu.dynamic_rotate %180 by %c497_i32_104 dim 1 : vector<16x512xf32>, i32 -> vector<16x512xf32>
    %213 = vector.broadcast %19 : vector<1x512xf32> to vector<16x512xf32>
    %214 = arith.mulf %212, %213 : vector<16x512xf32>
    %215 = arith.truncf %214 : vector<16x512xf32> to vector<16x512xbf16>
    %c496_i32_105 = arith.constant 496 : i32
    %216 = tpu.dynamic_rotate %180 by %c496_i32_105 dim 1 : vector<16x512xf32>, i32 -> vector<16x512xf32>
    %217 = vector.broadcast %20 : vector<1x512xf32> to vector<16x512xf32>
    %218 = arith.mulf %216, %217 : vector<16x512xf32>
    %219 = arith.truncf %218 : vector<16x512xf32> to vector<16x512xbf16>
    %c495_i32_106 = arith.constant 495 : i32
    %220 = tpu.dynamic_rotate %180 by %c495_i32_106 dim 1 : vector<16x512xf32>, i32 -> vector<16x512xf32>
    %221 = vector.broadcast %21 : vector<1x512xf32> to vector<16x512xf32>
    %222 = arith.mulf %220, %221 : vector<16x512xf32>
    %223 = arith.truncf %222 : vector<16x512xf32> to vector<16x512xbf16>
    %224 = tpu.concatenate %215, %219, %223 in 0 : vector<16x512xbf16>, vector<16x512xbf16>, vector<16x512xbf16> -> vector<48x512xbf16>
    %c2_107 = arith.constant 2 : index
    %c0_108 = arith.constant 0 : index
    %c0_109 = arith.constant 0 : index
    %225 = vector.load %arg7[%c2_107, %c0_108, %c0_109] : memref<3x16x48xbf16, #tpu.memory_space<vmem>>, vector<1x16x48xbf16>
    %226 = vector.shape_cast %225 : vector<1x16x48xbf16> to vector<16x48xbf16>
    %cst_110 = arith.constant dense<0.000000e+00> : vector<16x512xf32>
    %227 = tpu.matmul %226, %224, %cst_110 {dimension_numbers = #tpu.dot_dimension_numbers<[1], [0], [0], [1], [0, 0, 1, 1], [], []>} : vector<16x48xbf16>, vector<48x512xbf16>, vector<16x512xf32> -> vector<16x512xf32>
    %228 = arith.addf %211, %227 : vector<16x512xf32>
    %229 = vector.broadcast %181 : vector<16x1xf32> to vector<16x512xf32>
    %230 = arith.addf %228, %229 : vector<16x512xf32>
    %231 = vector.extract_strided_slice %230 {offsets = [0, 0], sizes = [1, 512], strides = [1, 1]} : vector<16x512xf32> to vector<1x512xf32>
    %232 = vector.extract_strided_slice %0 {offsets = [0, 0], sizes = [4, 512], strides = [1, 1]} : vector<16x512xf32> to vector<4x512xf32>
    %233 = vector.broadcast %231 : vector<1x512xf32> to vector<4x512xf32>
    %234 = arith.addf %232, %233 : vector<4x512xf32>
    %c0_111 = arith.constant 0 : index
    %c0_112 = arith.constant 0 : index
    %235 = vector.load %arg9[%c0_111, %c0_112] : memref<4x512xf32, #tpu.memory_space<vmem>>, vector<4x512xf32>
    tpu.vector_store %arg9[%c0_111, %c0_112], %234 {strides = array<i32>} : memref<4x512xf32, #tpu.memory_space<vmem>>, vector<4x512xf32>,
    return
  }
  func.func @transform_0(%arg0: i32) -> (i32, i32) {
    %c0_i32 = arith.constant 0 : i32
    %c0_i32_0 = arith.constant 0 : i32
    %c0_i32_1 = arith.constant 0 : i32
    return %c0_i32, %c0_i32_0 : i32, i32
  }
  func.func @transform_1(%arg0: i32) -> (i32, i32) {
    %c0_i32 = arith.constant 0 : i32
    %c0_i32_0 = arith.constant 0 : i32
    %c0_i32_1 = arith.constant 0 : i32
    return %c0_i32, %c0_i32_0 : i32, i32
  }
  func.func @transform_2(%arg0: i32) -> (i32, i32) {
    %c0_i32 = arith.constant 0 : i32
    %c0_i32_0 = arith.constant 0 : i32
    %c0_i32_1 = arith.constant 0 : i32
    return %c0_i32, %c0_i32_0 : i32, i32
  }
  func.func @transform_3(%arg0: i32) -> (i32, i32) {
    %c0_i32 = arith.constant 0 : i32
    %c0_i32_0 = arith.constant 0 : i32
    %c0_i32_1 = arith.constant 0 : i32
    return %c0_i32, %c0_i32_0 : i32, i32
  }
  func.func @transform_4(%arg0: i32) -> (i32, i32, i32, i32) {
    %c0_i32 = arith.constant 0 : i32
    %c0_i32_0 = arith.constant 0 : i32
    %c0_i32_1 = arith.constant 0 : i32
    %c0_i32_2 = arith.constant 0 : i32
    %c0_i32_3 = arith.constant 0 : i32
    return %c0_i32, %c0_i32_0, %c0_i32_1, %c0_i32_2 : i32, i32, i32, i32
  }
  func.func @transform_5(%arg0: i32) -> (i32, i32, i32) {
    %c0_i32 = arith.constant 0 : i32
    %c0_i32_0 = arith.constant 0 : i32
    %c0_i32_1 = arith.constant 0 : i32
    %c0_i32_2 = arith.constant 0 : i32
    return %c0_i32, %c0_i32_0, %c0_i32_1 : i32, i32, i32
  }
  func.func @transform_6(%arg0: i32) -> (i32, i32, i32) {
    %c0_i32 = arith.constant 0 : i32
    %c0_i32_0 = arith.constant 0 : i32
    %c0_i32_1 = arith.constant 0 : i32
    %c0_i32_2 = arith.constant 0 : i32
    return %c0_i32, %c0_i32_0, %c0_i32_1 : i32, i32, i32
  }
  func.func @transform_7(%arg0: i32) -> (i32, i32) {
    %c0_i32 = arith.constant 0 : i32
    %c0_i32_0 = arith.constant 0 : i32
    %c0_i32_1 = arith.constant 0 : i32
    return %c0_i32, %c0_i32_0 : i32, i32
  }
  func.func @transform_8(%arg0: i32) -> (i32, i32) {
    %c0_i32 = arith.constant 0 : i32
    %c0_i32_0 = arith.constant 0 : i32
    %c0_i32_1 = arith.constant 0 : i32
    return %c0_i32, %c0_i32_0 : i32, i32
  }
}

</mosaic_0001>

<bundles_post_ra>
// kernel: tpu_custom_call.1
= control target key start
LH: loop header
LB: loop body
LE: loop exit
PB: predicated region body
PF: predicated region fallthrough
CT: control target
= control target key end

     0   :  { %13 = vsyncpa [#allocation3], 0  ;;  %s6141_s0 = inlined_call_operand.vmem [shape: f32[16,512], index: 0, kind: input, shape index: {}]   ;;  %s6142_s1 = inlined_call_operand.hbm [shape: f32[8,512], index: 1, kind: input, shape index: {}]   ;;  %s6143_s2 = inlined_call_operand.vmem [shape: f32[16,16], index: 2, kind: input, shape index: {}]   ;;  %s6144_s3 = inlined_call_operand.vmem [shape: f32[16,1], index: 3, kind: input, shape index: {}]   ;;  %s6145_s4 = inlined_call_operand.hbm [shape: bf16[3,3,16,48], index: 4, kind: input, shape index: {}]   ;;  %s6146_s5 = inlined_call_operand.vmem [shape: f32[3,16,1], index: 5, kind: input, shape index: {}]   ;;  %s6147_s6 = inlined_call_operand.hbm [shape: bf16[3,16,48], index: 6, kind: input, shape index: {}]   ;;  %s6148_s7 = inlined_call_operand.vmem [shape: f32[16,1], index: 7, kind: input, shape index: {}]   ;;  %s6149_s8 = inlined_call_operand.hbm [shape: f32[4,512], index: 8, kind: output, shape index: {}]  }
   0x1   :  { %14 = vsyncpa [#allocation6], 0  ;;  %s37_s29 = sshll.u32 %s6145_s4, 4  ;;  %s38_s29 = int_to_ptr.hbm [resolvable:$true] %s37_s29 }
   0x2   :  { %15 = vsyncpa [#allocation4], 0  ;;  %s3587_s30 = smov [#allocation5]   ;;  %s23_s12 = sshll.u32 %s6142_s1, 4  ;;  %s24_s12 = int_to_ptr.hbm [resolvable:$true] %s23_s12 }
   0x3   :  { %s39_s9 = sshll.u32 %s3587_s30, 4  ;;  %s3588_s13 = smov 64   ;;  %s40_s9 = int_to_ptr.vmem [resolvable:$true] %s39_s9 }
   0x4   :  { %s3589_s14 = smov 4   ;;  %s3590_s15 = smov [#allocation2]  }
   0x5   :  { %45 = dma.hbm_to_vmem [thread:$0]  %s38_s29, 1152, %s40_s9, [#allocation6], %s3588_s13, %s3588_s13, %s3589_s14  }
   0x6   :  { %s25_s16 = sshll.u32 %s3590_s15, 4  ;;  %s52_s19 = sshll.u32 %s6147_s6, 4  ;;  %s26_s16 = int_to_ptr.vmem [resolvable:$true] %s25_s16  ;;  %s53_s19 = int_to_ptr.hbm [resolvable:$true] %s52_s19 }
   0x7   :  { %28 = dma.hbm_to_vmem [thread:$0]  %s24_s12, 512, %s26_s16, [#allocation3]  }
   0x8   :  { %s3591_s4 = smov [#allocation7]  }
   0x9   :  { %s54_s20 = sshll.u32 %s3591_s4, 4  ;;  %s55_s20 = int_to_ptr.vmem [resolvable:$true] %s54_s20 }
   0xa   :  { %60 = dma.hbm_to_vmem [thread:$0]  %s53_s19, 384, %s55_s20, [#allocation6], %s3588_s13, %s3588_s13, %s3589_s14  }
   0xb   :  { %3581 = dma.done.wait [#allocation3], 512  }
   0xc   :  { %3582 = vsyncadd [#allocation3], 4294966784 }
   0xd   :  { %3583 = dma.done.wait [#allocation6], 1536  }
   0xe   :  { %3584 = vsyncadd [#allocation6], 4294965760  ;;  %v3592_v0 = vmov 0   ;;  %v3659_v1 = vld [vmem:[%s6141_s0 + $0x20] sm:$0xff]  ;;  %v3664_v2 = vld [vmem:[%s6141_s0 + $0x28] sm:$0xff]  ;;  %vm258_vm0 = vcmask 130048  }
   0xf   :  { %3447 = vset.pattern.permute.xlu0 %v3592_v0  ;;  %3448 = vset.pattern.permute.xlu1 %v3592_v0  ;;  %v3669_v3 = vld [vmem:[%s6141_s0 + $0x30] sm:$0xff]  ;;  %v3676_v4 = vld [vmem:[%s6141_s0 + $0x38] sm:$0xff]  ;;  %v76_v5 = vld [vmem:[%s6141_s0] sm:$0xff]  ;;  %s3595_s20 = smov 16   ;;  %s3596_s1 = smov 17  }
  0x10   :  { %279 = vmatpush.msra.mxu0 %v3659_v1  ;;  %302 = vmatpush.msra.mxu1 %v3664_v2  ;;  %v77_v6 = vld [vmem:[%s6141_s0 + $0x8] sm:$0xff]  ;;  %v78_v7 = vld [vmem:[%s6141_s0 + $0x10] sm:$0xff]  ;;  %v79_v8 = vld [vmem:[%s6141_s0 + $0x18] sm:$0xff]  ;;  %v84_v13 = vsub.f32 0.0, %v76_v5  ;;  %s3597_s21 = smov 1   ;;  %s3598_s6 = smov 111  }
  0x11   :  { %325 = vmatpush.msra.mxu2 %v3669_v3  ;;  %348 = vmatpush.msra.mxu3 %v3676_v4  ;;  %v244_v9 = vld [vmem:[%s6143_s2] sm:$0xff]  ;;  %v245_v11 = vld [vmem:[%s6143_s2 + $0x8] sm:$0xff]  ;;  %v85_v14 = vsub.f32 0.0, %v77_v6  ;;  %v86_v21 = vsub.f32 0.0, %v78_v7  ;;  %v87_v27 = vsub.f32 0.0, %v79_v8  ;;  %s3593_s2 = smov 15  }
  0x12   :  { %280 = vmatpush.msra.mxu0 %v76_v5  ;;  %303 = vmatpush.msra.mxu1 %v77_v6  ;;  %v246_v10 = vld [vmem:[%s6144_s3] sm:$0xff]  ;;  %v247_v12 = vld [vmem:[%s6144_s3 + $0x8] sm:$0xff]  ;;  %v3304_v15 = vmul.f32 -1.442695, %v84_v13  ;;  %s3594_s3 = smov 127   ;;  %v88_v13 = vsub.f32 0.0, %v3659_v1 }
  0x13   :  { %326 = vmatpush.msra.mxu2 %v78_v7  ;;  %349 = vmatpush.msra.mxu3 %v79_v8  ;;  %v3305_v16 = vmul.f32 -1.442695, %v85_v14  ;;  %v3306_v24 = vmul.f32 -1.442695, %v86_v21  ;;  %v3307_v30 = vmul.f32 -1.442695, %v87_v27 }
  0x14   :  { %3312 = vmatmul.msk.f32.vlgmr.msra.gmra.mxu0 %vm258_vm0, %v244_v9  ;;  %3314 = vmatmul.msk.f32.vlgmr.msra.gmra.mxu1 %vm258_vm0, %v244_v9  ;;  %3449 = vpow2.f32 %v3304_v15  ;;  %v3308_v21 = vmul.f32 -1.442695, %v88_v13  ;;  %s3599_s22 = smov 112   ;;  %s3600_s23 = smov 113  }
  0x15   :  { %3316 = vmatmul.msk.f32.vlgmr.msra.gmra.mxu2 %vm258_vm0, %v244_v9  ;;  %3318 = vmatmul.msk.f32.vlgmr.msra.gmra.mxu3 %vm258_vm0, %v244_v9  ;;  %3451 = vpow2.f32 %v3305_v16  ;;  %s3601_s4 = smov [#allocation8]  }
  0x16   :  { %250 = vperm.xlu0 %3447, %v246_v10  }
  0x1a   :  { %v3450_v17 = vpop.eup %3449 }
  0x1b   :  { %v3452_v18 = vpop.eup %3451  ;;  %v116_v19 = vadd.f32 1.0, %v3450_v17 }
  0x1c   :  { %3313 = vmatmul.msk.f32.gmra.mxu0 %vm258_vm0, %v245_v11  ;;  %3315 = vmatmul.msk.f32.gmra.mxu1 %vm258_vm0, %v245_v11  ;;  %v117_v20 = vadd.f32 1.0, %v3452_v18 }
  0x1d   :  { %3317 = vmatmul.msk.f32.gmra.mxu2 %vm258_vm0, %v245_v11  ;;  %3319 = vmatmul.msk.f32.gmra.mxu3 %vm258_vm0, %v245_v11  ;;  %3453 = vrcp.f32 %v116_v19  ;;  %vm129_vm1 = vweird.f32 %v116_v19  ;;  %v135_v35 = vand.u32 2147483648, %v116_v19  ;;  %v133_v39 = vand.u32 2147483647, %v116_v19 }
  0x1e   :  { %255 = vperm.xlu0 %3447, %v247_v12   ;;  %3455 = vrcp.f32 %v117_v20  ;;  %vm144_vm3 = vweird.f32 %v117_v20  ;;  %v150_v36 = vand.u32 2147483648, %v117_v20  ;;  %v148_v41 = vand.u32 2147483647, %v117_v20 }
  0x1f   :  { %3457 = vpow2.f32 %v3306_v24  ;;  %v136_v42 = vor.u32 1.1754944e-38, %v135_v35  ;;  %vm134_vm7 = vcmp.eq.f32.partialorder %v133_v39, 8.507059e+37  ;;  %v89_v11 = vsub.f32 0.0, %v3664_v2 }
  0x20   :  { %3459 = vpow2.f32 %v3307_v30  ;;  %v151_v43 = vor.u32 1.1754944e-38, %v150_v36  ;;  %vm149_vm8 = vcmp.eq.f32.partialorder %v148_v41, 8.507059e+37  ;;  %v90_v30 = vsub.f32 0.0, %v3669_v3 }
  0x21   :  { %v91_v36 = vsub.f32 0.0, %v3676_v4 }
  0x23   :  { %v3454_v22 = vpop.eup %3453  ;;  %v3311_v3 = vmul.f32 -1.442695, %v91_v36 }
  0x24   :  { %v3456_v23 = vpop.eup %3455  ;;  %v125_v25 = vmul.f32 %v3454_v22, %v116_v19  ;;  %vm130_vm2 = vweird.f32 %v3454_v22  ;;  %v3309_v19 = vmul.f32 -1.442695, %v89_v11 }
  0x25   :  { %v140_v26 = vmul.f32 %v3456_v23, %v117_v20  ;;  %v3458_v31 = vpop.eup %3457  ;;  %vm145_vm4 = vweird.f32 %v3456_v23  ;;  %vm3712_vm5 = vmor %vm129_vm1, %vm130_vm2 }
  0x26   :  { %v126_v28 = vsub.f32 1.0, %v125_v25  ;;  %v118_v34 = vadd.f32 1.0, %v3458_v31  ;;  %vm146_vm6 = vmor %vm144_vm3, %vm145_vm4  ;;  %v3460_v44 = vpop.eup %3459 }
  0x27   :  { %v141_v29 = vsub.f32 1.0, %v140_v26  ;;  %v119_v48 = vadd.f32 1.0, %v3460_v44 }
  0x28   :  { %v127_v32 = vmul.f32 %v3454_v22, %v126_v28  ;;  %3461 = vrcp.f32 %v118_v34  ;;  %vm159_vm9 = vweird.f32 %v118_v34  ;;  %v165_v63 = vand.u32 2147483648, %v118_v34 }
  0x29   :  { %v142_v33 = vmul.f32 %v3456_v23, %v141_v29  ;;  %3463 = vrcp.f32 %v119_v48  ;;  %v163_v5 = vand.u32 2147483647, %v118_v34  ;;  %vm174_vm13 = vweird.f32 %v119_v48 }
  0x2a   :  { %v128_v37 = vadd.f32 %v3454_v22, %v127_v32  ;;  %v166_v7 = vor.u32 1.1754944e-38, %v165_v63  ;;  %v180_v15 = vand.u32 2147483648, %v119_v48  ;;  %v178_v17 = vand.u32 2147483647, %v119_v48 }
  0x2b   :  { %v143_v40 = vadd.f32 %v3456_v23, %v142_v33  ;;  %vm164_vm12 = vcmp.eq.f32.partialorder %v163_v5, 8.507059e+37  ;;  %3465 = vpow2.f32 %v3309_v19  ;;  %v3310_v33 = vmul.f32 -1.442695, %v90_v30 }
  0x2c   :  { %v132_v45 = vsel %vm3712_vm5, %v3454_v22, %v128_v37  ;;  %v181_v22 = vor.u32 1.1754944e-38, %v180_v15  ;;  %vm179_vm0 = vcmp.eq.f32.partialorder %v178_v17, 8.507059e+37  ;;  %3467 = vpow2.f32 %v3308_v21 }
  0x2d   :  { %v147_v46 = vsel %vm146_vm6, %v3456_v23, %v143_v40  ;;  %v137_v49 = vsel %vm134_vm7, %v136_v42, %v132_v45 }
  0x2e   :  { %v152_v51 = vsel %vm149_vm8, %v151_v43, %v147_v46  ;;  %v3462_v55 = vpop.eup %3461 }
  0x2f   :  { %v155_v58 = vmul.f32 %v3462_v55, %v118_v34  ;;  %v3464_v60 = vpop.eup %3463  ;;  %vm160_vm10 = vweird.f32 %v3462_v55 }
  0x30   :  { %v170_v62 = vmul.f32 %v3464_v60, %v119_v48  ;;  %vm161_vm11 = vmor %vm159_vm9, %vm160_vm10  ;;  %vm175_vm14 = vweird.f32 %v3464_v60 }
  0x31   :  { %v156_v59 = vsub.f32 1.0, %v155_v58  ;;  %vm3747_vm15 = vmor %vm174_vm13, %vm175_vm14  ;;  %v3466_v26 = vpop.eup %3465 }
  0x32   :  { %v171_v6 = vsub.f32 1.0, %v170_v62  ;;  %v3468_v27 = vpop.eup %3467  ;;  %v121_v28 = vadd.f32 1.0, %v3466_v26 }
  0x33   :  { %v157_v61 = vmul.f32 %v3462_v55, %v156_v59  ;;  %v120_v29 = vadd.f32 1.0, %v3468_v27 }
  0x34   :  { %v172_v10 = vmul.f32 %v3464_v60, %v171_v6  ;;  %3469 = vrcp.f32 %v121_v28  ;;  %vm204_vm1 = vweird.f32 %v121_v28  ;;  %v210_v4 = vand.u32 2147483648, %v121_v28 }
  0x35   :  { %v158_v0 = vadd.f32 %v3462_v55, %v157_v61  ;;  %3471 = vrcp.f32 %v120_v29  ;;  %vm189_vm3 = vweird.f32 %v120_v29  ;;  %v195_v43 = vand.u32 2147483648, %v120_v29 }
  0x36   :  { %v173_v16 = vadd.f32 %v3464_v60, %v172_v10  ;;  %3473 = vpow2.f32 %v3310_v33  ;;  %v208_v45 = vand.u32 2147483647, %v121_v28 }
  0x37   :  { %v162_v9 = vsel %vm161_vm11, %v3462_v55, %v158_v0  ;;  %3475 = vpow2.f32 %v3311_v3 }
  0x38   :  { %v167_v14 = vsel %vm164_vm12, %v166_v7, %v162_v9  ;;  %v177_v23 = vsel %vm3747_vm15, %v3464_v60, %v173_v16  ;;  %vm209_vm7 = vcmp.eq.f32.partialorder %v208_v45, 8.507059e+37 }
  0x39   :  { %v182_v24 = vsel %vm179_vm0, %v181_v22, %v177_v23 }
  0x3a   :  { %v3470_v31 = vpop.eup %3469 }
  0x3b   :  { %v3472_v32 = vpop.eup %3471  ;;  %v200_v34 = vmul.f32 %v3470_v31, %v121_v28  ;;  %vm205_vm2 = vweird.f32 %v3470_v31 }
  0x3c   :  { %v185_v35 = vmul.f32 %v3472_v32, %v120_v29  ;;  %v3474_v39 = vpop.eup %3473  ;;  %vm190_vm4 = vweird.f32 %v3472_v32  ;;  %vm3790_vm5 = vmor %vm204_vm1, %vm205_vm2 }
  0x3d   :  { %v201_v37 = vsub.f32 1.0, %v200_v34  ;;  %v122_v42 = vadd.f32 1.0, %v3474_v39  ;;  %vm3794_vm6 = vmor %vm189_vm3, %vm190_vm4 }
  0x3e   :  { %v186_v38 = vsub.f32 1.0, %v185_v35 }
  0x3f   :  { %v202_v40 = vmul.f32 %v3470_v31, %v201_v37  ;;  %3477 = vrcp.f32 %v122_v42  ;;  %vm219_vm9 = vweird.f32 %v122_v42  ;;  %v225_v13 = vand.u32 2147483648, %v122_v42 }
  0x40   :  { %v187_v41 = vmul.f32 %v3472_v32, %v186_v38  ;;  %v223_v15 = vand.u32 2147483647, %v122_v42 }
  0x41   :  { %v203_v44 = vadd.f32 %v3470_v31, %v202_v40  ;;  %v226_v17 = vor.u32 1.1754944e-38, %v225_v13 }
  0x42   :  { %v188_v46 = vadd.f32 %v3472_v32, %v187_v41  ;;  %vm224_vm12 = vcmp.eq.f32.partialorder %v223_v15, 8.507059e+37 }
  0x43   :  { %v207_v55 = vsel %vm3790_vm5, %v3470_v31, %v203_v44 }
  0x44   :  { %v192_v59 = vsel %vm3794_vm6, %v3472_v32, %v188_v46 }
  0x88   :  { %v3718_v47 = vpop.permute.xlu0 %250 }
  0x90   :  { %v256_v58 = vpop.permute.xlu0 %255 }
  0x91   :  { %v282_v50 = vpop.f32.mrf.mxu0  ;;  %v305_v52 = vpop.f32.mrf.mxu1 }
  0x92   :  { %v283_v53 = vadd.f32 %v282_v50, %v3718_v47  ;;  %v306_v54 = vadd.f32 %v305_v52, %v3718_v47  ;;  %v211_v50 = vor.u32 1.1754944e-38, %v210_v4  ;;  %v3476_v52 = vpop.eup %3475 }
  0x93   :  { %v123_v61 = vadd.f32 1.0, %v3476_v52  ;;  %v3478_v5 = vpop.eup %3477  ;;  %v380_v52 = vld [vmem:[%s6146_s5] sm:$0xff] }
  0x94   :  { %v3722_v56 = vmul.f32 %v283_v53, %v137_v49  ;;  %v3724_v57 = vmul.f32 %v306_v54, %v152_v51  ;;  %v196_v53 = vor.u32 1.1754944e-38, %v195_v43  ;;  %v212_v63 = vsel %vm209_vm7, %v211_v50, %v207_v55 }
  0x95   :  { %3479 = vrcp.f32 %v123_v61  ;;  %vm220_vm10 = vweird.f32 %v3478_v5  ;;  %vm234_vm13 = vweird.f32 %v123_v61  ;;  %v238_v26 = vand.u32 2147483647, %v123_v61 }
  0x96   :  { %480 = vrot.lane.b32.xlu0 %v3724_v57, %s3593_s2  ;;  %638 = vrot.lane.b32.xlu2 %v3724_v57, %s3594_s3  ;;  %vm221_vm11 = vmor %vm219_vm9, %vm220_vm10  ;;  %vm748_vm7 = vcmask 392192   ;;  %vm3279_vm10 = vcmask 1043456  }
  0x97   :  { %634 = vrot.lane.b32.xlu1 %v3722_v56, %s3594_s3  ;;  %vm239_vm0 = vcmp.eq.f32.partialorder %v238_v26, 8.507059e+37 }
  0x98   :  { %v328_v8 = vpop.f32.mrf.mxu2  ;;  %v351_v2 = vpop.f32.mrf.mxu3 }
  0x99   :  { %v329_v12 = vadd.f32 %v328_v8, %v3718_v47  ;;  %v352_v1 = vadd.f32 %v351_v2, %v3718_v47  ;;  %v193_v47 = vand.u32 2147483647, %v120_v29  ;;  %v308_v51 = vpop.f32.mrf.mxu1  ;;  %v285_v54 = vpop.f32.mrf.mxu0  ;;  %v215_v8 = vmul.f32 %v3478_v5, %v122_v42 }
  0x9a   :  { %v309_v60 = vadd.f32 %v308_v51, %v256_v58  ;;  %v286_v62 = vadd.f32 %v285_v54, %v256_v58 }
  0x9b   :  { %v3751_v20 = vmul.f32 %v329_v12, %v167_v14  ;;  %v3762_v25 = vmul.f32 %v352_v1, %v182_v24  ;;  %vm194_vm8 = vcmp.eq.f32.partialorder %v193_v47, 8.507059e+37  ;;  %v216_v9 = vsub.f32 1.0, %v215_v8  ;;  %v3480_v10 = vpop.eup %3479 }
  0x9c   :  { %v197_v0 = vsel %vm194_vm8, %v196_v53, %v192_v59  ;;  %v3808_v6 = vmul.f32 %v309_v60, %v212_v63  ;;  %v230_v12 = vmul.f32 %v3480_v10, %v123_v61  ;;  %vm235_vm14 = vweird.f32 %v3480_v10  ;;  %v3949_v63 = vld [vmem:[#allocation2 + $0x4] ss:$8 sm:$0xf] }
  0x9d   :  { %v3810_v7 = vmul.f32 %v286_v62, %v197_v0  ;;  %v217_v11 = vmul.f32 %v3478_v5, %v216_v9  ;;  %v240_v1 = vand.u32 2147483648, %v123_v61  ;;  %vm236_vm15 = vmor %vm234_vm13, %vm235_vm14  ;;  %v398_v60 = vlaneseq }
  0x9e   :  { %434 = vrot.lane.b32.xlu0 %v3724_v57, %s3595_s20  ;;  %386 = vrot.lane.b32.xlu2 %v3724_v57, %s3596_s1  ;;  %v231_v16 = vsub.f32 1.0, %v230_v12  ;;  %v3959_v9 = vperm.slane %v3949_v63, 1 }
  0x9f   :  { %588 = vrot.lane.b32.xlu1 %v3724_v57, %s3597_s21  ;;  %v218_v14 = vadd.f32 %v3478_v5, %v217_v11  ;;  %v241_v28 = vor.u32 1.1754944e-38, %v240_v1  ;;  %v3947_v62 = vand.u32 127, %v398_v60  ;;  %v632_v1 = vpack.c.bf16 %v3808_v6, %v3810_v7 }
  0xa0   :  { %v331_v18 = vpop.f32.mrf.mxu2  ;;  %v232_v21 = vmul.f32 %v3480_v10, %v231_v16  ;;  %v354_v29 = vpop.f32.mrf.mxu3  ;;  %6275 = vst [vmem:[#allocation14_spill] sm:$0xff] %v3959_v9 }
  0xa1   :  { %v222_v19 = vsel %vm221_vm11, %v3478_v5, %v218_v14  ;;  %v332_v22 = vadd.f32 %v331_v18, %v256_v58  ;;  %v355_v31 = vadd.f32 %v354_v29, %v256_v58  ;;  %vm650_vm1 = vcmp.lt.s32.totalorder %v3947_v62, 127 }
  0xa2   :  { %v227_v23 = vsel %vm224_vm12, %v226_v17, %v222_v19  ;;  %v233_v24 = vadd.f32 %v3480_v10, %v232_v21  ;;  %vm600_vm2 = vcmp.lt.s32.totalorder %v3947_v62, 1  ;;  %vm492_vm3 = vcmp.lt.s32.totalorder %v3947_v62, 15 }
  0xa3   :  { %v3832_v27 = vmul.f32 %v332_v22, %v227_v23  ;;  %vm446_vm4 = vcmp.lt.s32.totalorder %v3947_v62, 16  ;;  %vm400_vm5 = vcmp.lt.s32.totalorder %v3947_v62, 17  ;;  %vm980_vm6 = vcmp.lt.s32.totalorder %v3947_v62, 111 }
  0xa4   :  { %v237_v30 = vsel %vm236_vm15, %v3480_v10, %v233_v24  ;;  %v3962_v10 = vperm.slane %v3949_v63, 0  ;;  %v630_v24 = vpack.c.bf16 %v3724_v57, %v3722_v56  ;;  %vm934_vm8 = vcmp.lt.s32.totalorder %v3947_v62, 112 }
  0xa5   :  { %v242_v33 = vsel %vm239_vm0, %v241_v28, %v237_v30  ;;  %vm888_vm9 = vcmp.lt.s32.totalorder %v3947_v62, 113 }
  0xa6   :  { %430 = vrot.lane.b32.xlu2 %v3722_v56, %s3595_s20  ;;  %476 = vrot.lane.b32.xlu0 %v3722_v56, %s3593_s2  ;;  %v3842_v34 = vmul.f32 %v355_v31, %v242_v33  ;;  %6276 = vst [vmem:[#allocation15_spill] sm:$0xff] %v3962_v10 }
  0xa7   :  { %584 = vrot.lane.b32.xlu1 %v3722_v56, %s3597_s21 }
  0xae   :  { %642 = vrot.lane.b32.xlu2 %v3751_v20, %s3594_s3  ;;  %964 = vrot.lane.b32.xlu0 %v3722_v56, %s3598_s6 }
  0xaf   :  { %382 = vrot.lane.b32.xlu1 %v3722_v56, %s3596_s1 }
  0xb6   :  { %596 = vrot.lane.b32.xlu2 %v3762_v25, %s3597_s21  ;;  %918 = vrot.lane.b32.xlu0 %v3722_v56, %s3599_s22 }
  0xb7   :  { %488 = vrot.lane.b32.xlu1 %v3762_v25, %s3593_s2 }
  0xbe   :  { %484 = vrot.lane.b32.xlu2 %v3751_v20, %s3593_s2  ;;  %968 = vrot.lane.b32.xlu0 %v3724_v57, %s3598_s6 }
  0xbf   :  { %442 = vrot.lane.b32.xlu1 %v3762_v25, %s3595_s20 }
  0xc6   :  { %438 = vrot.lane.b32.xlu2 %v3751_v20, %s3595_s20  ;;  %646 = vrot.lane.b32.xlu0 %v3762_v25, %s3594_s3 }
  0xc7   :  { %390 = vrot.lane.b32.xlu1 %v3751_v20, %s3596_s1 }
  0xce   :  { %972 = vrot.lane.b32.xlu2 %v3751_v20, %s3598_s6  ;;  %592 = vrot.lane.b32.xlu0 %v3751_v20, %s3597_s21 }
  0xcf   :  { %976 = vrot.lane.b32.xlu1 %v3762_v25, %s3598_s6 }
  0xd6   :  { %926 = vrot.lane.b32.xlu2 %v3751_v20, %s3599_s22  ;;  %394 = vrot.lane.b32.xlu0 %v3762_v25, %s3596_s1 }
  0xd7   :  { %930 = vrot.lane.b32.xlu1 %v3762_v25, %s3599_s22 }
  0xde   :  { %590 = vrot.lane.b32.xlu2 %v3808_v6, %s3597_s21  ;;  %640 = vrot.lane.b32.xlu0 %v3808_v6, %s3594_s3 }
  0xdf   :  { %636 = vrot.lane.b32.xlu1 %v3810_v7, %s3594_s3 }
  0xe6   :  { %586 = vrot.lane.b32.xlu2 %v3810_v7, %s3597_s21  ;;  %388 = vrot.lane.b32.xlu0 %v3808_v6, %s3596_s1 }
  0xe7   :  { %482 = vrot.lane.b32.xlu1 %v3808_v6, %s3593_s2 }
  0xee   :  { %384 = vrot.lane.b32.xlu2 %v3810_v7, %s3596_s1  ;;  %432 = vrot.lane.b32.xlu0 %v3810_v7, %s3595_s20 }
  0xef   :  { %436 = vrot.lane.b32.xlu1 %v3808_v6, %s3595_s20 }
  0xf0   :  { %v3830_v2 = vpop.permute.xlu2 %638 }
  0xf6   :  { %644 = vrot.lane.b32.xlu2 %v3832_v27, %s3594_s3  ;;  %874 = vrot.lane.b32.xlu0 %v3810_v7, %s3600_s23 }
  0xf7   :  { %478 = vrot.lane.b32.xlu1 %v3810_v7, %s3593_s2 }
  0xf8   :  { %v3840_v32 = vpop.permute.xlu2 %386 }
  0xfe   :  { %872 = vrot.lane.b32.xlu2 %v3722_v56, %s3600_s23  ;;  %598 = vrot.lane.b32.xlu0 %v3842_v34, %s3597_s21 }
  0xff   :  { %966 = vrot.lane.b32.xlu1 %v3810_v7, %s3598_s6 }
 0x100   :  { %v3850_v35 = vpop.permute.xlu2 %430 }
 0x106   :  { %490 = vrot.lane.b32.xlu2 %v3842_v34, %s3593_s2  ;;  %486 = vrot.lane.b32.xlu0 %v3832_v27, %s3593_s2 }
 0x107   :  { %920 = vrot.lane.b32.xlu1 %v3810_v7, %s3599_s22  ;;  %v705_v7 = vunpack.c.h.b16 %v630_v24 }
 0x108   :  { %v3858_v36 = vpop.permute.xlu0 %480  ;;  %v3860_v37 = vpop.permute.xlu2 %642 }
 0x109   :  { %v3862_v38 = vpop.permute.xlu1 %634  ;;  %v653_v11 = vsel %vm650_vm1, %v3830_v2, %v3860_v37 }
 0x10a   :  { %v655_v12 = vsel %vm650_vm1, %v3862_v38, %v3830_v2  ;;  %v669_v13 = vmul.f32 %v3959_v9, %v653_v11 }
 0x10b   :  { %v668_v14 = vmul.f32 %v3962_v10, %v655_v12  ;;  %v708_v12 = vunpack.c.l.b16 %v632_v1 }
 0x10d   :  { %v676_v2 = vpack.c.bf16 %v669_v13, %v668_v14  ;;  %v709_v13 = vunpack.c.h.b16 %v632_v1 }
 0x10e   :  { %444 = vrot.lane.b32.xlu2 %v3842_v34, %s3595_s20  ;;  %440 = vrot.lane.b32.xlu0 %v3832_v27, %s3595_s20 }
 0x10f   :  { %648 = vrot.lane.b32.xlu1 %v3842_v34, %s3594_s3  ;;  %v724_v26 = vunpack.c.l.b16 %v676_v2  ;;  %v725_v29 = vunpack.c.h.b16 %v676_v2  ;;  %v713_v56 = vpack.c.b16 %v709_v13, %v705_v7  ;;  %v369_v2 = vld [vmem:[#allocation2 + $0x2] ss:$8 sm:$0xf]  ;;  %v367_v7 = vld [vmem:[#allocation2 + $0x1] ss:$8 sm:$0xf] }
 0x110   :  { %v3870_v3 = vpop.permute.xlu0 %434  ;;  %v3872_v39 = vpop.permute.xlu2 %596 }
 0x111   :  { %v3874_v40 = vpop.permute.xlu1 %588 }
 0x116   :  { %392 = vrot.lane.b32.xlu2 %v3832_v27, %s3596_s1  ;;  %974 = vrot.lane.b32.xlu0 %v3832_v27, %s3598_s6 }
 0x117   :  { %594 = vrot.lane.b32.xlu1 %v3832_v27, %s3597_s21 }
 0x118   :  { %v3882_v41 = vpop.permute.xlu2 %484  ;;  %v3884_v42 = vpop.permute.xlu0 %476 }
 0x119   :  { %v3886_v4 = vpop.permute.xlu1 %584 }
 0x11e   :  { %978 = vrot.lane.b32.xlu2 %v3842_v34, %s3598_s6  ;;  %928 = vrot.lane.b32.xlu0 %v3832_v27, %s3599_s22 }
 0x11f   :  { %970 = vrot.lane.b32.xlu1 %v3808_v6, %s3598_s6 }
 0x120   :  { %v3894_v43 = vpop.permute.xlu2 %438  ;;  %v3896_v44 = vpop.permute.xlu0 %964 }
 0x121   :  { %v3898_v45 = vpop.permute.xlu1 %382 }
 0x126   :  { %932 = vrot.lane.b32.xlu2 %v3842_v34, %s3599_s22  ;;  %884 = vrot.lane.b32.xlu0 %v3762_v25, %s3600_s23 }
 0x127   :  { %396 = vrot.lane.b32.xlu1 %v3842_v34, %s3596_s1 }
 0x128   :  { %v3906_v46 = vpop.permute.xlu2 %972  ;;  %v3908_v47 = vpop.permute.xlu0 %918 }
 0x129   :  { %6273 = vst [vmem:[#allocation12_spill] sm:$0xff] %v3908_v47  ;;  %v3910_v48 = vpop.permute.xlu1 %488  ;;  %v4116_v47 = vld [vmem:[#allocation5 + $0x8] sm:$0xff] }
 0x12a   :  { %v499_v13 = vsel %vm492_vm3, %v3910_v48, %v3884_v42 }
 0x12e   :  { %882 = vrot.lane.b32.xlu2 %v3832_v27, %s3600_s23  ;;  %924 = vrot.lane.b32.xlu0 %v3808_v6, %s3599_s22 }
 0x12f   :  { %880 = vrot.lane.b32.xlu1 %v3751_v20, %s3600_s23 }
 0x130   :  { %v3918_v49 = vpop.permute.xlu2 %926  ;;  %v3920_v50 = vpop.permute.xlu0 %968 }
 0x131   :  { %v3922_v51 = vpop.permute.xlu1 %442 }
 0x136   :  { %922 = vrot.lane.b32.xlu2 %v3724_v57, %s3599_s22  ;;  %1147 = vperm.xlu0 %3447, %v380_v52  }
 0x137   :  { %886 = vrot.lane.b32.xlu1 %v3842_v34, %s3600_s23 }
 0x138   :  { %v3931_v53 = vpop.permute.xlu2 %590  ;;  %v3933_v54 = vpop.permute.xlu0 %646 }
 0x139   :  { %v3935_v55 = vpop.permute.xlu1 %390 }
 0x13e   :  { %878 = vrot.lane.b32.xlu2 %v3808_v6, %s3600_s23  ;;  %v704_v6 = vunpack.c.l.b16 %v630_v24 }
 0x13f   :  { %876 = vrot.lane.b32.xlu1 %v3724_v57, %s3600_s23 }
 0x140   :  { %v3941_v58 = vpop.permute.xlu2 %586  ;;  %v3943_v59 = vpop.permute.xlu0 %592  ;;  %v712_v14 = vpack.c.b16 %v708_v12, %v704_v6  ;;  %v4034_v12 = vperm.slane %v369_v2, 0 }
 0x141   :  { %v3945_v61 = vpop.permute.xlu1 %976 }
 0x142   :  { %6283 = vst [vmem:[#allocation22_spill] sm:$0xff] %v4034_v12 }
 0x148   :  { %v3951_v0 = vpop.permute.xlu2 %384  ;;  %v3953_v5 = vpop.permute.xlu0 %394 }
 0x149   :  { %6274 = vst [vmem:[#allocation13_spill] sm:$0xff] %v3951_v0  ;;  %v3956_v8 = vpop.permute.xlu1 %930 }
 0x150   :  { %v3974_v15 = vpop.permute.xlu2 %644  ;;  %v641_v16 = vpop.permute.xlu0 %640 }
 0x151   :  { %v654_v17 = vsel %vm650_vm1, %v641_v16, %v3974_v15  ;;  %v3979_v18 = vpop.permute.xlu1 %636 }
 0x152   :  { %v673_v19 = vmul.f32 %v3959_v9, %v654_v17  ;;  %v656_v21 = vsel %vm650_vm1, %v3979_v18, %v641_v16  ;;  %v510_v9 = vmul.f32 %v4034_v12, %v499_v13 }
 0x153   :  { %v672_v22 = vmul.f32 %v3962_v10, %v656_v21  ;;  %v633_v21 = vpack.c.bf16 %v3842_v34, %v3832_v27 }
 0x155   :  { %v678_v23 = vpack.c.bf16 %v673_v19, %v672_v22  ;;  %v631_v19 = vpack.c.bf16 %v3762_v25, %v3751_v20  ;;  %v4004_v22 = vld [vmem:[#allocation2 + $0x3] ss:$8 sm:$0xf] }
 0x156   :  { %v4013_v20 = vperm.slane %v4004_v22, 0  ;;  %v4016_v25 = vperm.slane %v4004_v22, 1 }
 0x157   :  { %v728_v28 = vunpack.c.l.b16 %v678_v23  ;;  %v729_v30 = vunpack.c.h.b16 %v678_v23  ;;  %v707_v6 = vunpack.c.h.b16 %v631_v19 }
 0x158   :  { %v3990_v31 = vpop.permute.xlu2 %872  ;;  %v3992_v33 = vpop.permute.xlu0 %388  ;;  %6280 = vst [vmem:[#allocation19_spill] sm:$0xff] %v4013_v20 }
 0x159   :  { %6277 = vst [vmem:[#allocation16_spill] sm:$0xff] %v3990_v31  ;;  %v3994_v52 = vpop.permute.xlu1 %482  ;;  %v732_v60 = vpack.c.b16 %v728_v28, %v724_v26  ;;  %v733_v11 = vpack.c.b16 %v729_v30, %v725_v29  ;;  %v706_v26 = vunpack.c.l.b16 %v631_v19  ;;  %v710_v28 = vunpack.c.l.b16 %v633_v21 }
 0x15a   :  { %6278 = vst [vmem:[#allocation17_spill] sm:$0xff] %v3992_v33  ;;  %v711_v29 = vunpack.c.h.b16 %v633_v21  ;;  %v4024_v30 = vperm.slane %v369_v2, 1 }
 0x15b   :  { %757 = vmatpush.bf16.msrb.mxu0 %v732_v60  ;;  %771 = vmatpush.bf16.msrb.mxu1 %v733_v11  ;;  %6281 = vst [vmem:[#allocation20_spill] sm:$0xff] %v4016_v25  ;;  %v605_v60 = vsel %vm600_vm2, %v3886_v4, %v3874_v40  ;;  %v607_v11 = vsel %vm600_vm2, %v3872_v39, %v3886_v4 }
 0x15c   :  { %6282 = vst [vmem:[#allocation21_spill] sm:$0xff] %v4024_v30  ;;  %v4043_v21 = vpack.c.b16 %v710_v28, %v706_v26  ;;  %v497_v4 = vsel %vm492_vm3, %v3884_v42, %v3858_v36  ;;  %v619_v10 = vmul.f32 %v4016_v25, %v605_v60  ;;  %v606_v26 = vsel %vm600_vm2, %v3941_v58, %v3931_v53 }
 0x15d   :  { %v4061_v28 = vpack.c.b16 %v711_v29, %v707_v6  ;;  %v4063_v42 = vperm.slane %v367_v7, 1  ;;  %v453_v60 = vsel %vm446_vm4, %v3922_v51, %v3850_v35  ;;  %v511_v29 = vmul.f32 %v4024_v30, %v497_v4  ;;  %v4079_v6 = vld [vmem:[#allocation2] ss:$8 sm:$0xf] }
 0x15e   :  { %6284 = vst [vmem:[#allocation23_spill] sm:$0xff] %v4043_v21 }
 0x15f   :  { %758 = vmatpush.bf16.msrb.mxu0 %v712_v14  ;;  %772 = vmatpush.bf16.msrb.mxu1 %v713_v56  ;;  %6286 = vst [vmem:[#allocation25_spill] sm:$0xff] %v4061_v28  ;;  %v4094_v28 = vperm.slane %v367_v7, 2 }
 0x160   :  { %v3996_v57 = vpop.permute.xlu2 %490  ;;  %v433_v16 = vpop.permute.xlu0 %432  ;;  %6287 = vst [vmem:[#allocation26_spill] sm:$0xff] %v4063_v42 }
 0x161   :  { %v3998_v17 = vpop.permute.xlu1 %436 }
 0x168   :  { %v4007_v23 = vpop.permute.xlu2 %444  ;;  %v4009_v1 = vpop.permute.xlu0 %874 }
 0x169   :  { %6279 = vst [vmem:[#allocation18_spill] sm:$0xff] %v4009_v1  ;;  %v479_v24 = vpop.permute.xlu1 %478  ;;  %v454_v19 = vsel %vm446_vm4, %v4007_v23, %v433_v16 }
 0x16a   :  { %v498_v27 = vsel %vm492_vm3, %v479_v24, %v3994_v52  ;;  %v500_v34 = vsel %vm492_vm3, %v3996_v57, %v479_v24  ;;  %v618_v24 = vmul.f32 %v4013_v20, %v607_v11  ;;  %v452_v11 = vsel %vm446_vm4, %v433_v16, %v3998_v17 }
 0x16b   :  { %v514_v14 = vmul.f32 %v4034_v12, %v500_v34  ;;  %v515_v56 = vmul.f32 %v4024_v30, %v498_v27  ;;  %v4055_v34 = vperm.slane %v367_v7, 0  ;;  %v4065_v27 = vperm.slane %v369_v2, 2 }
 0x16c   :  { %v451_v16 = vsel %vm446_vm4, %v3850_v35, %v3870_v3  ;;  %v626_v30 = vpack.c.bf16 %v619_v10, %v618_v24 }
 0x16d   :  { %6285 = vst [vmem:[#allocation24_spill] sm:$0xff] %v4055_v34  ;;  %v468_v1 = vmul.f32 %v4055_v34, %v454_v19  ;;  %v520_v31 = vpack.c.bf16 %v515_v56, %v514_v14  ;;  %v518_v14 = vpack.c.bf16 %v511_v29, %v510_v9  ;;  %v464_v56 = vmul.f32 %v4055_v34, %v453_v60 }
 0x16e   :  { %v469_v19 = vmul.f32 %v4063_v42, %v452_v11  ;;  %v685_v29 = vunpack.c.h.b16 %v626_v30 }
 0x16f   :  { %v570_v10 = vunpack.c.l.b16 %v520_v31  ;;  %v571_v24 = vunpack.c.h.b16 %v520_v31  ;;  %v566_v34 = vunpack.c.l.b16 %v518_v14  ;;  %v567_v11 = vunpack.c.h.b16 %v518_v14 }
 0x170   :  { %v4074_v13 = vpop.permute.xlu2 %392  ;;  %v4076_v12 = vpop.permute.xlu0 %598 }
 0x171   :  { %6288 = vst [vmem:[#allocation27_spill] sm:$0xff] %v4074_v13  ;;  %v608_v0 = vsel %vm600_vm2, %v4076_v12, %v3941_v58  ;;  %v4086_v33 = vpop.permute.xlu1 %966  ;;  %v623_v13 = vmul.f32 %v4016_v25, %v606_v26  ;;  %v4100_v58 = vperm.slane %v4079_v6, 1  ;;  %v465_v26 = vmul.f32 %v4063_v42, %v451_v16  ;;  %v379_v25 = vld [vmem:[#allocation2 + $0x7] ss:$8 sm:$0xf] }
 0x172   :  { %6289 = vst [vmem:[#allocation28_spill] sm:$0xff] %v4086_v33  ;;  %v622_v4 = vmul.f32 %v4013_v20, %v608_v0  ;;  %v4102_v33 = vperm.slane %v369_v2, 3  ;;  %v474_v0 = vpack.c.bf16 %v469_v19, %v468_v1  ;;  %v684_v20 = vunpack.c.l.b16 %v626_v30 }
 0x173   :  { %6290 = vst [vmem:[#allocation29_spill] sm:$0xff] %v4100_v58  ;;  %v472_v21 = vpack.c.bf16 %v465_v26, %v464_v56  ;;  %v495_v2 = vsel %vm492_vm3, %v3858_v36, %v3882_v41  ;;  %v574_v30 = vpack.c.b16 %v570_v10, %v566_v34  ;;  %v4118_v56 = vperm.slane %v379_v25, 1 }
 0x174   :  { %v628_v35 = vpack.c.bf16 %v623_v13, %v622_v4  ;;  %v4110_v13 = vperm.slane %v379_v25, 0  ;;  %v550_v14 = vunpack.c.l.b16 %v474_v0  ;;  %v551_v42 = vunpack.c.h.b16 %v474_v0 }
 0x175   :  { %6292 = vst [vmem:[#allocation31_spill] sm:$0xff] %v4118_v56  ;;  %v4120_v26 = vperm.slane %v367_v7, 3  ;;  %v4123_v36 = vperm.slane %v3949_v63, 2  ;;  %v4129_v34 = vperm.slane %v4079_v6, 2  ;;  %v546_v0 = vunpack.c.l.b16 %v472_v21 }
 0x176   :  { %v688_v9 = vunpack.c.l.b16 %v628_v35  ;;  %v689_v60 = vunpack.c.h.b16 %v628_v35  ;;  %6291 = vst [vmem:[#allocation30_spill] sm:$0xff] %v4110_v13  ;;  %v575_v35 = vpack.c.b16 %v571_v24, %v567_v11  ;;  %v547_v10 = vunpack.c.h.b16 %v472_v21 }
 0x177   :  { %6293 = vst [vmem:[#allocation32_spill] sm:$0xff] %v4123_v36  ;;  %v512_v24 = vmul.f32 %v4065_v27, %v495_v2  ;;  %v449_v7 = vsel %vm446_vm4, %v3870_v3, %v3894_v43  ;;  %v405_v21 = vsel %vm400_vm5, %v3898_v45, %v3840_v32 }
 0x178   :  { %v4112_v16 = vpop.permute.xlu2 %978  ;;  %v487_v1 = vpop.permute.xlu0 %486  ;;  %v692_v31 = vpack.c.b16 %v688_v9, %v684_v20  ;;  %v693_v4 = vpack.c.b16 %v689_v60, %v685_v29  ;;  %v4126_v20 = vperm.slane %v3949_v63, 3  ;;  %6295 = vst [vmem:[#allocation34_spill] sm:$0xff] %v4129_v34  ;;  %v651_v63 = vsel %vm650_vm1, %v3860_v37, %v3933_v54 }
 0x179   :  { %v4114_v19 = vpop.permute.xlu1 %920  ;;  %v657_v9 = vsel %vm650_vm1, %v3933_v54, %v3862_v38  ;;  %v4149_v29 = vperm.slane %v4004_v22, 2  ;;  %v554_v60 = vpack.c.b16 %v550_v14, %v546_v0  ;;  %v555_v3 = vpack.c.b16 %v551_v42, %v547_v10 }
 0x17a   :  { %759 = vmatpush.bf16.msrb.mxu0 %v692_v31  ;;  %773 = vmatpush.bf16.msrb.mxu1 %v693_v4  ;;  %6294 = vst [vmem:[#allocation33_spill] sm:$0xff] %v4126_v20  ;;  %v493_v37 = vsel %vm492_vm3, %v3882_v41, %v3910_v48  ;;  %v983_v38 = vsel %vm980_vm6, %v3920_v50, %v3906_v46  ;;  %v4168_v42 = vperm.slane %v4004_v22, 3  ;;  %v4175_v48 = vperm.slane %v379_v25, 2 }
 0x17b   :  { %v985_v54 = vsel %vm980_vm6, %v3896_v44, %v3920_v50  ;;  %v4171_v11 = vmul.f32 %v4094_v28, %v449_v7  ;;  %v670_v2 = vmul.f32 %v4123_v36, %v651_v63  ;;  %v671_v41 = vmul.f32 %v4126_v20, %v657_v9 }
 0x17c   :  { %6296 = vst [vmem:[#allocation35_spill] sm:$0xff] %v4175_v48  ;;  %v4178_v31 = vmul.f32 %v4100_v58, %v405_v21  ;;  %v4180_v4 = vperm.slane %v379_v25, 3  ;;  %v4183_v50 = vperm.slane %v4079_v6, 0  ;;  %v4186_v22 = vperm.slane %v4079_v6, 3 }
 0x17d   :  { %3324 = vmatmul.msk.bf16.vlgmr.msrb.gmra.mxu0 %vm748_vm7, %v4116_v47  ;;  %3325 = vmatmul.msk.bf16.vlgmr.msrb.gmra.mxu1 %vm748_vm7, %v4116_v47  ;;  %v998_v14 = vmul.f32 %v4110_v13, %v985_v54  ;;  %v999_v0 = vmul.f32 %v4118_v56, %v983_v38  ;;  %v603_v10 = vsel %vm600_vm2, %v3874_v40, %v3943_v59  ;;  %v4195_v25 = vld [vmem:[#allocation2 + $0x6] ss:$8 sm:$0xf] }
 0x17e   :  { %821 = vmatpush.bf16.msra.mxu0 %v574_v30  ;;  %835 = vmatpush.bf16.msra.mxu1 %v575_v35  ;;  %6297 = vst [vmem:[#allocation36_spill] sm:$0xff] %v4180_v4  ;;  %v513_v35 = vmul.f32 %v4102_v33, %v493_v37  ;;  %v601_v6 = vsel %vm600_vm2, %v3943_v59, %v3872_v39 }
 0x17f   :  { %6298 = vst [vmem:[#allocation37_spill] sm:$0xff] %v4183_v50  ;;  %v494_v63 = vsel %vm492_vm3, %v487_v1, %v3996_v57  ;;  %v496_v9 = vsel %vm492_vm3, %v3994_v52, %v487_v1  ;;  %v677_v52 = vpack.c.bf16 %v671_v41, %v670_v2  ;;  %v620_v57 = vmul.f32 %v4149_v29, %v603_v10 }
 0x180   :  { %6299 = vst [vmem:[#allocation38_spill] sm:$0xff] %v4186_v22  ;;  %v441_v30 = vpop.permute.xlu0 %440  ;;  %v4207_v21 = vpop.permute.xlu2 %932  ;;  %v4223_v1 = vperm.slane %v4195_v25, 2  ;;  %v517_v37 = vmul.f32 %v4102_v33, %v494_v63  ;;  %v4236_v38 = vpack.c.bf16 %v513_v35, %v512_v24  ;;  %v987_v2 = vsel %vm980_vm6, %v3945_v61, %v3896_v44 }
 0x181   :  { %v649_v7 = vpop.permute.xlu1 %648  ;;  %v4243_v10 = vpack.c.bf16 %v999_v0, %v998_v14  ;;  %v448_v24 = vsel %vm446_vm4, %v441_v30, %v4007_v23  ;;  %v1001_v44 = vmul.f32 %v4180_v4, %v987_v2 }
 0x182   :  { %822 = vmatpush.bf16.msra.mxu0 %v554_v60  ;;  %836 = vmatpush.bf16.msra.mxu1 %v555_v3  ;;  %v652_v40 = vsel %vm650_vm1, %v3974_v15, %v649_v7  ;;  %v447_v60 = vsel %vm446_vm4, %v3894_v43, %v3922_v51  ;;  %v658_v39 = vsel %vm650_vm1, %v649_v7, %v3979_v18  ;;  %v4226_v15 = vperm.slane %v4195_v25, 3 }
 0x183   :  { %v674_v59 = vmul.f32 %v4123_v36, %v652_v40  ;;  %6300 = vst [vmem:[#allocation39_spill] sm:$0xff] %v4223_v1  ;;  %v675_v3 = vmul.f32 %v4126_v20, %v658_v39  ;;  %v621_v43 = vmul.f32 %v4168_v42, %v601_v6  ;;  %v981_v51 = vsel %vm980_vm6, %v3906_v46, %v3945_v61 }
 0x184   :  { %6301 = vst [vmem:[#allocation40_spill] sm:$0xff] %v4226_v15  ;;  %v516_v18 = vmul.f32 %v4065_v27, %v496_v9  ;;  %v467_v54 = vmul.f32 %v4120_v26, %v447_v60  ;;  %v450_v46 = vsel %vm446_vm4, %v3998_v17, %v441_v30  ;;  %v726_v7 = vunpack.c.l.b16 %v677_v52 }
 0x185   :  { %v679_v41 = vpack.c.bf16 %v675_v3, %v674_v59  ;;  %v727_v6 = vunpack.c.h.b16 %v677_v52  ;;  %v1000_v63 = vmul.f32 %v4175_v48, %v981_v51  ;;  %v407_v61 = vsel %vm400_vm5, %v3953_v5, %v3898_v45 }
 0x186   :  { %v521_v14 = vpack.c.bf16 %v517_v37, %v516_v18  ;;  %v627_v0 = vpack.c.bf16 %v621_v43, %v620_v57  ;;  %v470_v60 = vmul.f32 %v4094_v28, %v450_v46  ;;  %v471_v59 = vmul.f32 %v4120_v26, %v448_v24  ;;  %v6302_v46 = vld [vmem:[#allocation12_spill] sm:$0xff] }
 0x187   :  { %v730_v9 = vunpack.c.l.b16 %v679_v41  ;;  %v731_v40 = vunpack.c.h.b16 %v679_v41  ;;  %v568_v57 = vunpack.c.l.b16 %v4236_v38  ;;  %v569_v43 = vunpack.c.h.b16 %v4236_v38 }
 0x188   :  { %v975_v35 = vpop.permute.xlu0 %974  ;;  %v1054_v51 = vunpack.c.l.b16 %v4243_v10  ;;  %v4273_v18 = vpop.permute.xlu2 %882  ;;  %v4279_v37 = vpack.c.bf16 %v1001_v44, %v1000_v63  ;;  %v686_v41 = vunpack.c.l.b16 %v627_v0  ;;  %v401_v38 = vsel %vm400_vm5, %v3935_v55, %v3953_v5 }
 0x189   :  { %v595_v17 = vpop.permute.xlu1 %594  ;;  %v734_v30 = vpack.c.b16 %v730_v9, %v726_v7  ;;  %v735_v3 = vpack.c.b16 %v731_v40, %v727_v6  ;;  %v572_v7 = vunpack.c.l.b16 %v521_v14  ;;  %v475_v6 = vpack.c.bf16 %v471_v59, %v470_v60 }
 0x18a   :  { %v602_v39 = vsel %vm600_vm2, %v595_v17, %v4076_v12  ;;  %v604_v23 = vsel %vm600_vm2, %v3931_v53, %v595_v17  ;;  %v4271_v12 = vpack.c.bf16 %v467_v54, %v4171_v11  ;;  %v403_v53 = vsel %vm400_vm5, %v3840_v32, %v3935_v55  ;;  %v6303_v55 = vld [vmem:[#allocation23_spill] sm:$0xff] }
 0x18b   :  { %v624_v52 = vmul.f32 %v4149_v29, %v604_v23  ;;  %v625_v45 = vmul.f32 %v4168_v42, %v602_v39  ;;  %785 = vmatpush.bf16.msrb.mxu2 %v734_v30  ;;  %799 = vmatpush.bf16.msrb.mxu3 %v735_v3  ;;  %v418_v11 = vmul.f32 %v4183_v50, %v407_v61  ;;  %v1055_v9 = vunpack.c.h.b16 %v4243_v10  ;;  %v6304_v23 = vld [vmem:[#allocation25_spill] sm:$0xff] }
 0x18c   :  { %v935_v54 = vsel %vm934_vm8, %v3918_v49, %v3956_v8  ;;  %v941_v32 = vsel %vm934_vm8, %v3956_v8, %v6302_v46  ;;  %v573_v40 = vunpack.c.h.b16 %v521_v14  ;;  %v687_v44 = vunpack.c.h.b16 %v627_v0 }
 0x18d   :  { %v629_v2 = vpack.c.bf16 %v625_v45, %v624_v52  ;;  %v548_v61 = vunpack.c.l.b16 %v4271_v12  ;;  %v421_v17 = vmul.f32 %v4186_v22, %v401_v38  ;;  %v954_v39 = vmul.f32 %v4223_v1, %v935_v54 }
 0x18e   :  { %v955_v8 = vmul.f32 %v4226_v15, %v941_v32  ;;  %v420_v59 = vmul.f32 %v4129_v34, %v403_v53  ;;  %v1056_v14 = vunpack.c.l.b16 %v4279_v37  ;;  %v4306_v52 = vpack.c.bf16 %v4178_v31, %v418_v11 }
 0x18f   :  { %v690_v63 = vunpack.c.l.b16 %v629_v2  ;;  %v691_v24 = vunpack.c.h.b16 %v629_v2  ;;  %786 = vmatpush.bf16.msrb.mxu2 %v6303_v55  ;;  %800 = vmatpush.bf16.msrb.mxu3 %v6304_v23  ;;  %v549_v0 = vunpack.c.h.b16 %v4271_v12  ;;  %v982_v45 = vsel %vm980_vm6, %v975_v35, %v4112_v16 }
 0x190   :  { %v4296_v5 = vpop.permute.xlu0 %928  ;;  %v576_v2 = vpack.c.b16 %v572_v7, %v568_v57  ;;  %v552_v38 = vunpack.c.l.b16 %v475_v6  ;;  %v577_v32 = vpack.c.b16 %v573_v40, %v569_v43  ;;  %v553_v31 = vunpack.c.h.b16 %v475_v6  ;;  %v6307_v7 = vld [vmem:[#allocation17_spill] sm:$0xff]  ;;  %v923_v6 = vpop.permute.xlu2 %922 }
 0x191   :  { %v971_v60 = vpop.permute.xlu1 %970  ;;  %v694_v30 = vpack.c.b16 %v690_v63, %v686_v41  ;;  %v695_v3 = vpack.c.b16 %v691_v24, %v687_v44  ;;  %v6305_v41 = vld [vmem:[#allocation28_spill] sm:$0xff]  ;;  %v1057_v11 = vunpack.c.h.b16 %v4279_v37  ;;  %v4318_v12 = vpack.c.bf16 %v421_v17, %v420_v59 }
 0x192   :  { %v984_v54 = vsel %vm980_vm6, %v971_v60, %v975_v35  ;;  %v986_v53 = vsel %vm980_vm6, %v6305_v41, %v971_v60  ;;  %v4320_v63 = vpack.c.bf16 %v955_v8, %v954_v39  ;;  %v988_v57 = vsel %vm980_vm6, %v4112_v16, %v6305_v41  ;;  %v6306_v35 = vld [vmem:[#allocation27_spill] sm:$0xff] }
 0x193   :  { %787 = vmatpush.bf16.msrb.mxu2 %v694_v30  ;;  %801 = vmatpush.bf16.msrb.mxu3 %v695_v3  ;;  %v404_v24 = vsel %vm400_vm5, %v6307_v7, %v6306_v35  ;;  %v1004_v43 = vmul.f32 %v4175_v48, %v982_v45  ;;  %v526_v40 = vunpack.c.l.b16 %v4306_v52  ;;  %v527_v55 = vunpack.c.h.b16 %v4306_v52  ;;  %v6310_v52 = vld [vmem:[#allocation13_spill] sm:$0xff] }
 0x194   :  { %v4334_v44 = vperm.slane %v4195_v25, 0  ;;  %v1002_v16 = vmul.f32 %v4110_v13, %v986_v53  ;;  %v1003_v17 = vmul.f32 %v4118_v56, %v984_v54  ;;  %v556_v39 = vpack.c.b16 %v552_v38, %v548_v61 }
 0x195   :  { %v1005_v8 = vmul.f32 %v4180_v4, %v988_v57  ;;  %v4342_v23 = vperm.slane %v4195_v25, 1  ;;  %v936_v60 = vsel %vm934_vm8, %v4296_v5, %v4207_v21  ;;  %v557_v30 = vpack.c.b16 %v553_v31, %v549_v0 }
 0x196   :  { %6308 = vst [vmem:[#allocation12_spill] sm:$0xff] %v4334_v44  ;;  %3326 = vmatmul.msk.bf16.vlgmr.msrb.gmra.mxu2 %vm748_vm7, %v4116_v47  ;;  %3327 = vmatmul.msk.bf16.vlgmr.msrb.gmra.mxu3 %vm748_vm7, %v4116_v47  ;;  %v406_v61 = vsel %vm400_vm5, %v6310_v52, %v6307_v7  ;;  %v937_v25 = vsel %vm934_vm8, %v923_v6, %v3918_v49  ;;  %v528_v47 = vunpack.c.l.b16 %v4318_v12  ;;  %v1037_v37 = vunpack.c.h.b16 %v4320_v63 }
 0x197   :  { %849 = vmatpush.bf16.msra.mxu2 %v576_v2  ;;  %863 = vmatpush.bf16.msra.mxu3 %v577_v32  ;;  %6309 = vst [vmem:[#allocation23_spill] sm:$0xff] %v4342_v23  ;;  %v939_v45 = vsel %vm934_vm8, %v6302_v46, %v923_v6  ;;  %v424_v0 = vmul.f32 %v4129_v34, %v404_v24 }
 0x198   :  { %v4350_v59 = vpop.permute.xlu0 %884  ;;  %v942_v2 = vsel %vm934_vm8, %v4207_v21, %v4114_v19  ;;  %v1009_v38 = vpack.c.bf16 %v1005_v8, %v1004_v43  ;;  %v958_v54 = vmul.f32 %v4223_v1, %v936_v60  ;;  %v1008_v46 = vpack.c.bf16 %v1003_v17, %v1002_v16  ;;  %v381_v8 = vld [vmem:[%s6146_s5 + $0x8] sm:$0xff] }
 0x199   :  { %v397_v3 = vpop.permute.xlu1 %396  ;;  %v423_v32 = vmul.f32 %v4100_v58, %v406_v61  ;;  %v952_v31 = vmul.f32 %v4334_v44, %v939_v45  ;;  %v953_v21 = vmul.f32 %v4342_v23, %v937_v25  ;;  %v959_v7 = vmul.f32 %v4226_v15, %v942_v2  ;;  %1152 = vperm.xlu1 %3448, %v381_v8   ;;  %v6325_v1 = vld [vmem:[#allocation15_spill] sm:$0xff] }
 0x19a   :  { %v402_v49 = vsel %vm400_vm5, %v6306_v35, %v397_v3  ;;  %v408_v41 = vsel %vm400_vm5, %v397_v3, %v6310_v52  ;;  %v4381_v35 = vld [vmem:[#allocation2 + $0x5] ss:$8 sm:$0xf]  ;;  %v529_v43 = vunpack.c.h.b16 %v4318_v12  ;;  %v1060_v6 = vunpack.c.l.b16 %v1009_v38 }
 0x19b   :  { %850 = vmatpush.bf16.msra.mxu2 %v556_v39  ;;  %864 = vmatpush.bf16.msra.mxu3 %v557_v30  ;;  %v425_v53 = vmul.f32 %v4186_v22, %v402_v49  ;;  %v422_v57 = vmul.f32 %v4183_v50, %v408_v41  ;;  %v1061_v16 = vunpack.c.h.b16 %v1009_v38  ;;  %v4386_v39 = vperm.slane %v4381_v35, 2 }
 0x19c   :  { %v963_v60 = vpack.c.bf16 %v959_v7, %v958_v54  ;;  %v1058_v30 = vunpack.c.l.b16 %v1008_v46  ;;  %v960_v25 = vpack.c.bf16 %v953_v21, %v952_v31  ;;  %v1059_v45 = vunpack.c.h.b16 %v1008_v46 }
 0x19d   :  { %v429_v24 = vpack.c.bf16 %v425_v53, %v424_v0  ;;  %v428_v17 = vpack.c.bf16 %v423_v32, %v422_v57  ;;  %6311 = vst [vmem:[#allocation25_spill] sm:$0xff] %v4386_v39  ;;  %v1064_v31 = vpack.c.b16 %v1060_v6, %v1056_v14  ;;  %v3420_v57 = vld [vmem:[#allocation5] sm:$0xff] }
 0x19e   :  { %v1063_v14 = vpack.c.b16 %v1059_v45, %v1055_v9  ;;  %v1035_v9 = vunpack.c.h.b16 %v960_v25  ;;  %v4432_v45 = vperm.slane %v4381_v35, 1 }
 0x19f   :  { %v532_v52 = vunpack.c.l.b16 %v429_v24  ;;  %v533_v61 = vunpack.c.h.b16 %v429_v24  ;;  %v530_v0 = vunpack.c.l.b16 %v428_v17  ;;  %v531_v12 = vunpack.c.h.b16 %v428_v17  ;;  %v879_v17 = vpop.permute.xlu2 %878 }
 0x1a0   :  { %v925_v3 = vpop.permute.xlu0 %924  ;;  %v4414_v24 = vperm.slane %v4381_v35, 3  ;;  %6315 = vst [vmem:[#allocation17_spill] sm:$0xff] %v4432_v45 }
 0x1a1   :  { %v938_v2 = vsel %vm934_vm8, %v925_v3, %v4296_v5  ;;  %v940_v38 = vsel %vm934_vm8, %v4114_v19, %v925_v3  ;;  %v4397_v49 = vpop.permute.xlu1 %880  ;;  %v536_v54 = vpack.c.b16 %v532_v52, %v528_v47  ;;  %v537_v41 = vpack.c.b16 %v533_v61, %v529_v43  ;;  %v6313_v43 = vld [vmem:[#allocation16_spill] sm:$0xff] }
 0x1a2   :  { %v956_v53 = vmul.f32 %v4334_v44, %v940_v38  ;;  %v957_v32 = vmul.f32 %v4342_v23, %v938_v2  ;;  %v534_v46 = vpack.c.b16 %v530_v0, %v526_v40  ;;  %v535_v21 = vpack.c.b16 %v531_v12, %v527_v55  ;;  %6312 = vst [vmem:[#allocation28_spill] sm:$0xff] %v4414_v24  ;;  %v6316_v12 = vld [vmem:[#allocation18_spill] sm:$0xff] }
 0x1a3   :  { %851 = vmatpush.bf16.msra.mxu2 %v536_v54  ;;  %865 = vmatpush.bf16.msra.mxu3 %v537_v41  ;;  %v1062_v5 = vpack.c.b16 %v1058_v30, %v1054_v51  ;;  %v1065_v19 = vpack.c.b16 %v1061_v16, %v1057_v11  ;;  %v1040_v47 = vunpack.c.l.b16 %v963_v60  ;;  %v889_v40 = vsel %vm888_vm9, %v4397_v49, %v4350_v59 }
 0x1a4   :  { %v962_v7 = vpack.c.bf16 %v957_v32, %v956_v53  ;;  %823 = vmatpush.bf16.msra.mxu0 %v534_v46  ;;  %v1041_v55 = vunpack.c.h.b16 %v963_v60  ;;  %837 = vmatpush.bf16.msra.mxu1 %v535_v21  ;;  %v1036_v51 = vunpack.c.l.b16 %v4320_v63  ;;  %v1034_v11 = vunpack.c.l.b16 %v960_v25 }
 0x1a5   :  { %v895_v6 = vsel %vm888_vm9, %v4350_v59, %v6313_v43  ;;  %v908_v8 = vmul.f32 %v4386_v39, %v889_v40  ;;  %v4428_v52 = vperm.slane %v4381_v35, 0  ;;  %v892_v3 = vsel %vm888_vm9, %v879_v17, %v4273_v18 }
 0x1a6   :  { %v1038_v10 = vunpack.c.l.b16 %v962_v7  ;;  %v1039_v16 = vunpack.c.h.b16 %v962_v7  ;;  %3334 = vmatmul.msk.bf16.vlgmr.msra.gmra.mxu2 %vm748_vm7, %v3420_v57  ;;  %v1044_v60 = vpack.c.b16 %v1040_v47, %v1036_v51  ;;  %3335 = vmatmul.msk.bf16.vlgmr.msra.gmra.mxu3 %vm748_vm7, %v3420_v57  ;;  %v1045_v63 = vpack.c.b16 %v1041_v55, %v1037_v37  ;;  %v3422_v37 = vld [vmem:[#allocation5 + $0x10] sm:$0xff] }
 0x1a7   :  { %1114 = vmatpush.bf16.msrb.mxu2 %v1064_v31  ;;  %1128 = vmatpush.bf16.msrb.mxu3 %v1065_v19  ;;  %6314 = vst [vmem:[#allocation27_spill] sm:$0xff] %v4428_v52  ;;  %v909_v61 = vmul.f32 %v4414_v24, %v895_v6  ;;  %v894_v38 = vsel %vm888_vm9, %v6316_v12, %v879_v17 }
 0x1a8   :  { %1086 = vmatpush.bf16.msrb.mxu0 %v1062_v5  ;;  %1100 = vmatpush.bf16.msrb.mxu1 %v1063_v14  ;;  %v1042_v30 = vpack.c.b16 %v1038_v10, %v1034_v11  ;;  %v1043_v59 = vpack.c.b16 %v1039_v16, %v1035_v9  ;;  %v910_v32 = vmul.f32 %v4428_v52, %v894_v38 }
 0x1a9   :  { %3332 = vmatmul.msk.bf16.vlgmr.msra.gmra.mxu0 %vm748_vm7, %v3420_v57  ;;  %3333 = vmatmul.msk.bf16.vlgmr.msra.gmra.mxu1 %vm748_vm7, %v3420_v57  ;;  %v887_v25 = vpop.permute.xlu1 %886  ;;  %v915_v35 = vpack.c.bf16 %v909_v61, %v908_v8 }
 0x1aa   :  { %v890_v0 = vsel %vm888_vm9, %v4273_v18, %v887_v25  ;;  %v896_v2 = vsel %vm888_vm9, %v887_v25, %v6316_v12  ;;  %v911_v18 = vmul.f32 %v4432_v45, %v892_v3 }
 0x1ab   :  { %1115 = vmatpush.bf16.msrb.mxu2 %v1044_v60  ;;  %1129 = vmatpush.bf16.msrb.mxu3 %v1045_v63  ;;  %v912_v54 = vmul.f32 %v4386_v39, %v890_v0  ;;  %v913_v41 = vmul.f32 %v4414_v24, %v896_v2  ;;  %v1016_v46 = vunpack.c.l.b16 %v915_v35  ;;  %v1017_v21 = vunpack.c.h.b16 %v915_v35  ;;  %v6323_v39 = vld [vmem:[#allocation14_spill] sm:$0xff] }
 0x1ac   :  { %1087 = vmatpush.bf16.msrb.mxu0 %v1042_v30  ;;  %1101 = vmatpush.bf16.msrb.mxu1 %v1043_v59  ;;  %v916_v14 = vpack.c.bf16 %v911_v18, %v910_v32 }
 0x1ad   :  { %v917_v53 = vpack.c.bf16 %v913_v41, %v912_v54 }
 0x1ae   :  { %v1018_v10 = vunpack.c.l.b16 %v916_v14  ;;  %v1019_v16 = vunpack.c.h.b16 %v916_v14 }
 0x1af   :  { %v1020_v31 = vunpack.c.l.b16 %v917_v53  ;;  %v1021_v5 = vunpack.c.h.b16 %v917_v53 }
 0x1b1   :  { %v877_v19 = vpop.permute.xlu1 %876  ;;  %v1024_v57 = vpack.c.b16 %v1020_v31, %v1016_v46  ;;  %v1025_v47 = vpack.c.b16 %v1021_v5, %v1017_v21 }
 0x1b2   :  { %v891_v7 = vsel %vm888_vm9, %v877_v19, %v4397_v49  ;;  %v893_v40 = vsel %vm888_vm9, %v6313_v43, %v877_v19 }
 0x1b3   :  { %v906_v55 = vmul.f32 %v4428_v52, %v893_v40  ;;  %v907_v51 = vmul.f32 %v4432_v45, %v891_v7  ;;  %1116 = vmatpush.bf16.msrb.mxu2 %v1024_v57  ;;  %1130 = vmatpush.bf16.msrb.mxu3 %v1025_v47  ;;  %v1148_v47 = vpop.permute.xlu0 %1147 }
 0x1b5   :  { %v914_v11 = vpack.c.bf16 %v907_v51, %v906_v55 }
 0x1b6   :  { %3342 = vmatmul.msk.bf16.vlgmr.msrb.gmra.mxu2 %vm748_vm7, %v3422_v37  ;;  %3343 = vmatmul.msk.bf16.vlgmr.msrb.gmra.mxu3 %vm748_vm7, %v3422_v37 }
 0x1b7   :  { %v1014_v6 = vunpack.c.l.b16 %v914_v11  ;;  %v1015_v9 = vunpack.c.h.b16 %v914_v11 }
 0x1b9   :  { %v1022_v49 = vpack.c.b16 %v1018_v10, %v1014_v6  ;;  %v1023_v17 = vpack.c.b16 %v1019_v16, %v1015_v9 }
 0x1bb   :  { %1088 = vmatpush.bf16.msrb.mxu0 %v1022_v49  ;;  %1102 = vmatpush.bf16.msrb.mxu1 %v1023_v17 }
 0x1be   :  { %3340 = vmatmul.msk.bf16.vlgmr.msrb.gmra.mxu0 %vm748_vm7, %v3422_v37  ;;  %3341 = vmatmul.msk.bf16.vlgmr.msrb.gmra.mxu1 %vm748_vm7, %v3422_v37 }
 0x1fa   :  { %v761_v43 = vpop.f32.mrf.mxu0  ;;  %v775_v8 = vpop.f32.mrf.mxu1 }
 0x202   :  { %v763_v63 = vpop.f32.mrf.mxu0  ;;  %v777_v59 = vpop.f32.mrf.mxu1 }
 0x219   :  { %v789_v60 = vpop.f32.mrf.mxu2  ;;  %v803_v30 = vpop.f32.mrf.mxu3 }
 0x221   :  { %v791_v61 = vpop.f32.mrf.mxu2  ;;  %v805_v25 = vpop.f32.mrf.mxu3 }
 0x226   :  { %v825_v3 = vpop.f32.mrf.mxu0  ;;  %v839_v0 = vpop.f32.mrf.mxu1 }
 0x227   :  { %v826_v31 = vadd.f32 %v825_v3, %v761_v43  ;;  %v840_v21 = vadd.f32 %v839_v0, %v775_v8 }
 0x229   :  { %v853_v12 = vpop.f32.mrf.mxu2  ;;  %v867_v2 = vpop.f32.mrf.mxu3 }
 0x22a   :  { %v854_v37 = vadd.f32 %v853_v12, %v789_v60  ;;  %v868_v10 = vadd.f32 %v867_v2, %v803_v30 }
 0x22e   :  { %v827_v38 = vpop.f32.mrf.mxu0  ;;  %v841_v54 = vpop.f32.mrf.mxu1 }
 0x22f   :  { %v828_v35 = vadd.f32 %v827_v38, %v763_v63  ;;  %v842_v41 = vadd.f32 %v841_v54, %v777_v59 }
 0x231   :  { %v855_v53 = vpop.f32.mrf.mxu2  ;;  %v869_v18 = vpop.f32.mrf.mxu3 }
 0x232   :  { %v4462_v32 = vadd.f32 %v855_v53, %v791_v61  ;;  %v4464_v46 = vadd.f32 %v869_v18, %v805_v25  ;;  %v1153_v61 = vpop.permute.xlu1 %1152 }
 0x239   :  { %v1118_v11 = vpop.f32.mrf.mxu2  ;;  %v1132_v16 = vpop.f32.mrf.mxu3 }
 0x23a   :  { %v1139_v6 = vadd.f32 %v1118_v11, %v854_v37  ;;  %v1140_v49 = vadd.f32 %v1132_v16, %v868_v10 }
 0x23b   :  { %v1090_v5 = vpop.f32.mrf.mxu0  ;;  %v1104_v57 = vpop.f32.mrf.mxu1 }
 0x23c   :  { %v1137_v19 = vadd.f32 %v1090_v5, %v826_v31  ;;  %v1138_v7 = vadd.f32 %v1104_v57, %v840_v21  ;;  %v1157_v9 = vadd.f32 %v1148_v47, %v1139_v6  ;;  %v1158_v43 = vadd.f32 %v1148_v47, %v1140_v49 }
 0x23e   :  { %v1155_v40 = vadd.f32 %v1148_v47, %v1137_v19  ;;  %v1156_v14 = vadd.f32 %v1148_v47, %v1138_v7  ;;  %v4488_v17 = vmax.f32 %v1157_v9, 0.0  ;;  %v4496_v8 = vmax.f32 %v1158_v43, 0.0 }
 0x240   :  { %v4466_v55 = vmax.f32 %v1155_v40, 0.0  ;;  %v4468_v51 = vmax.f32 %v1156_v14, 0.0 }
 0x241   :  { %v1120_v2 = vpop.f32.mrf.mxu2 }
 0x242   :  { %1385 = vrot.lane.b32.xlu2 %v4466_v55, %s3594_s3  ;;  %1250 = vrot.lane.b32.xlu0 %v4468_v51, %s3593_s2  ;;  %v1143_v38 = vadd.f32 %v1120_v2, %v4462_v32  ;;  %v1134_v32 = vpop.f32.mrf.mxu3  ;;  %v3345_v2 = vld [vmem:[%s6146_s5 + $0x18] sm:$0xff] }
 0x243   :  { %1349 = vrot.lane.b32.xlu1 %v4468_v51, %s3597_s21  ;;  %v1106_v60 = vpop.f32.mrf.mxu1  ;;  %v1092_v63 = vpop.f32.mrf.mxu0  ;;  %v1144_v18 = vadd.f32 %v1134_v32, %v4464_v46 }
 0x244   :  { %v1142_v30 = vadd.f32 %v1106_v60, %v842_v41  ;;  %v1141_v59 = vadd.f32 %v1092_v63, %v828_v35  ;;  %v1161_v35 = vadd.f32 %v1153_v61, %v1143_v38 }
 0x245   :  { %v1162_v31 = vadd.f32 %v1153_v61, %v1144_v18 }
 0x246   :  { %v1160_v25 = vadd.f32 %v1153_v61, %v1142_v30  ;;  %v1159_v3 = vadd.f32 %v1153_v61, %v1141_v59  ;;  %v4553_v41 = vmax.f32 %v1161_v35, 0.0 }
 0x247   :  { %v4572_v5 = vmax.f32 %v1162_v31, 0.0 }
 0x248   :  { %v4528_v0 = vmax.f32 %v1160_v25, 0.0  ;;  %v4530_v12 = vmax.f32 %v1159_v3, 0.0  ;;  %v3344_v3 = vld [vmem:[%s6146_s5 + $0x10] sm:$0xff] }
 0x24a   :  { %1389 = vrot.lane.b32.xlu2 %v4468_v51, %s3594_s3  ;;  %1214 = vrot.lane.b32.xlu0 %v4468_v51, %s3595_s20 }
 0x24b   :  { %1345 = vrot.lane.b32.xlu1 %v4466_v55, %s3597_s21 }
 0x252   :  { %1178 = vrot.lane.b32.xlu2 %v4468_v51, %s3596_s1  ;;  %1246 = vrot.lane.b32.xlu0 %v4466_v55, %s3593_s2 }
 0x253   :  { %1174 = vrot.lane.b32.xlu1 %v4466_v55, %s3596_s1 }
 0x25a   :  { %1210 = vrot.lane.b32.xlu2 %v4466_v55, %s3595_s20  ;;  %1684 = vrot.lane.b32.xlu0 %v4466_v55, %s3598_s6 }
 0x25b   :  { %1393 = vrot.lane.b32.xlu1 %v4488_v17, %s3594_s3 }
 0x262   :  { %1357 = vrot.lane.b32.xlu2 %v4496_v8, %s3597_s21  ;;  %1648 = vrot.lane.b32.xlu0 %v4466_v55, %s3599_s22 }
 0x263   :  { %1258 = vrot.lane.b32.xlu1 %v4496_v8, %s3593_s2 }
 0x26a   :  { %1254 = vrot.lane.b32.xlu2 %v4488_v17, %s3593_s2  ;;  %1688 = vrot.lane.b32.xlu0 %v4468_v51, %s3598_s6 }
 0x26b   :  { %1222 = vrot.lane.b32.xlu1 %v4496_v8, %s3595_s20 }
 0x272   :  { %1218 = vrot.lane.b32.xlu2 %v4488_v17, %s3595_s20  ;;  %1397 = vrot.lane.b32.xlu0 %v4496_v8, %s3594_s3 }
 0x273   :  { %1182 = vrot.lane.b32.xlu1 %v4488_v17, %s3596_s1 }
 0x27a   :  { %1692 = vrot.lane.b32.xlu2 %v4488_v17, %s3598_s6  ;;  %1353 = vrot.lane.b32.xlu0 %v4488_v17, %s3597_s21 }
 0x27b   :  { %1696 = vrot.lane.b32.xlu1 %v4496_v8, %s3598_s6 }
 0x282   :  { %1656 = vrot.lane.b32.xlu2 %v4488_v17, %s3599_s22  ;;  %1186 = vrot.lane.b32.xlu0 %v4496_v8, %s3596_s1 }
 0x283   :  { %1660 = vrot.lane.b32.xlu1 %v4496_v8, %s3599_s22 }
 0x28a   :  { %1351 = vrot.lane.b32.xlu2 %v4528_v0, %s3597_s21  ;;  %1387 = vrot.lane.b32.xlu0 %v4530_v12, %s3594_s3 }
 0x28b   :  { %1252 = vrot.lane.b32.xlu1 %v4528_v0, %s3593_s2 }
 0x292   :  { %1347 = vrot.lane.b32.xlu2 %v4530_v12, %s3597_s21  ;;  %1391 = vrot.lane.b32.xlu0 %v4528_v0, %s3594_s3 }
 0x293   :  { %1216 = vrot.lane.b32.xlu1 %v4528_v0, %s3595_s20 }
 0x29a   :  { %1176 = vrot.lane.b32.xlu2 %v4530_v12, %s3596_s1  ;;  %1180 = vrot.lane.b32.xlu0 %v4528_v0, %s3596_s1 }
 0x29b   :  { %1248 = vrot.lane.b32.xlu1 %v4530_v12, %s3593_s2 }
 0x29c   :  { %v4551_v54 = vpop.permute.xlu2 %1385 }
 0x2a2   :  { %1395 = vrot.lane.b32.xlu2 %v4553_v41, %s3594_s3  ;;  %1212 = vrot.lane.b32.xlu0 %v4530_v12, %s3595_s20 }
 0x2a3   :  { %1686 = vrot.lane.b32.xlu1 %v4530_v12, %s3598_s6 }
 0x2a4   :  { %v4561_v53 = vpop.permute.xlu2 %1389 }
 0x2aa   :  { %1612 = vrot.lane.b32.xlu2 %v4466_v55, %s3600_s23  ;;  %1614 = vrot.lane.b32.xlu0 %v4530_v12, %s3600_s23 }
 0x2ab   :  { %1650 = vrot.lane.b32.xlu1 %v4530_v12, %s3599_s22 }
 0x2ac   :  { %v4570_v21 = vpop.permute.xlu2 %1178 }
 0x2b2   :  { %1260 = vrot.lane.b32.xlu2 %v4572_v5, %s3593_s2  ;;  %1359 = vrot.lane.b32.xlu0 %v4572_v5, %s3597_s21 }
 0x2b3   :  { %1399 = vrot.lane.b32.xlu1 %v4572_v5, %s3594_s3 }
 0x2b4   :  { %v4580_v46 = vpop.permute.xlu2 %1210  ;;  %v4582_v19 = vpop.permute.xlu0 %1250 }
 0x2b5   :  { %v4584_v57 = vpop.permute.xlu1 %1349 }
 0x2ba   :  { %1224 = vrot.lane.b32.xlu2 %v4572_v5, %s3595_s20  ;;  %1256 = vrot.lane.b32.xlu0 %v4553_v41, %s3593_s2 }
 0x2bb   :  { %1355 = vrot.lane.b32.xlu1 %v4553_v41, %s3597_s21 }
 0x2bc   :  { %v4592_v47 = vpop.permute.xlu2 %1357  ;;  %v4594_v7 = vpop.permute.xlu0 %1214 }
 0x2bd   :  { %v4596_v40 = vpop.permute.xlu1 %1345 }
 0x2c2   :  { %1184 = vrot.lane.b32.xlu2 %v4553_v41, %s3596_s1  ;;  %1220 = vrot.lane.b32.xlu0 %v4553_v41, %s3595_s20 }
 0x2c3   :  { %1690 = vrot.lane.b32.xlu1 %v4528_v0, %s3598_s6 }
 0x2c4   :  { %v4604_v14 = vpop.permute.xlu2 %1254  ;;  %v4606_v37 = vpop.permute.xlu0 %1246 }
 0x2c5   :  { %v4608_v11 = vpop.permute.xlu1 %1174 }
 0x2ca   :  { %1652 = vrot.lane.b32.xlu2 %v4468_v51, %s3599_s22  ;;  %1624 = vrot.lane.b32.xlu0 %v4496_v8, %s3600_s23 }
 0x2cb   :  { %1188 = vrot.lane.b32.xlu1 %v4572_v5, %s3596_s1 }
 0x2cc   :  { %v4616_v6 = vpop.permute.xlu2 %1218  ;;  %v4618_v10 = vpop.permute.xlu0 %1684 }
 0x2cd   :  { %v4620_v9 = vpop.permute.xlu1 %1393 }
 0x2d2   :  { %1698 = vrot.lane.b32.xlu2 %v4572_v5, %s3598_s6  ;;  %1694 = vrot.lane.b32.xlu0 %v4553_v41, %s3598_s6 }
 0x2d3   :  { %1620 = vrot.lane.b32.xlu1 %v4488_v17, %s3600_s23 }
 0x2d4   :  { %v4628_v16 = vpop.permute.xlu2 %1692  ;;  %v4630_v49 = vpop.permute.xlu0 %1648 }
 0x2d5   :  { %6317 = vst [vmem:[#allocation13_spill] sm:$0xff] %v4630_v49  ;;  %v4632_v43 = vpop.permute.xlu1 %1258 }
 0x2da   :  { %1662 = vrot.lane.b32.xlu2 %v4572_v5, %s3599_s22  ;;  %1658 = vrot.lane.b32.xlu0 %v4553_v41, %s3599_s22 }
 0x2db   :  { %1626 = vrot.lane.b32.xlu1 %v4572_v5, %s3600_s23 }
 0x2dc   :  { %v4640_v60 = vpop.permute.xlu2 %1656  ;;  %v4642_v63 = vpop.permute.xlu0 %1688 }
 0x2dd   :  { %6318 = vst [vmem:[#allocation16_spill] sm:$0xff] %v4640_v60  ;;  %v4644_v30 = vpop.permute.xlu1 %1222 }
 0x2e2   :  { %1622 = vrot.lane.b32.xlu2 %v4553_v41, %s3600_s23  ;;  %1654 = vrot.lane.b32.xlu0 %v4528_v0, %s3599_s22 }
 0x2e3   :  { %1616 = vrot.lane.b32.xlu1 %v4468_v51, %s3600_s23 }
 0x2e4   :  { %v4652_v59 = vpop.permute.xlu2 %1351  ;;  %v4654_v61 = vpop.permute.xlu0 %1397 }
 0x2e5   :  { %v4656_v25 = vpop.permute.xlu1 %1182 }
 0x2e6   :  { %6319 = vst [vmem:[#allocation18_spill] sm:$0xff] %v4656_v25 }
 0x2ea   :  { %1618 = vrot.lane.b32.xlu2 %v4528_v0, %s3600_s23  ;;  %1857 = vperm.xlu0 %3447, %v3344_v3   ;;  %v1403_v3 = vsel %vm650_vm1, %v4561_v53, %v4620_v9 }
 0x2eb   :  { %1862 = vperm.xlu1 %3448, %v3345_v2   ;;  %v1405_v2 = vsel %vm650_vm1, %v4551_v54, %v4561_v53  ;;  %v1410_v24 = vmul.f32 %v1403_v3, %v6323_v39 }
 0x2ec   :  { %v4666_v38 = vpop.permute.xlu2 %1347  ;;  %v4668_v35 = vpop.permute.xlu0 %1353  ;;  %v1409_v49 = vmul.f32 %v1405_v2, %v6325_v1  ;;  %v1383_v2 = vpack.c.bf16 %v4528_v0, %v4530_v12 }
 0x2ed   :  { %v4670_v32 = vpop.permute.xlu1 %1696 }
 0x2ee   :  { %6320 = vst [vmem:[#allocation41_spill] sm:$0xff] %v4670_v32  ;;  %v1417_v4 = vpack.c.bf16 %v1410_v24, %v1409_v49 }
 0x2f0   :  { %v1466_v50 = vunpack.c.h.b16 %v1417_v4 }
 0x2f4   :  { %v4672_v18 = vpop.permute.xlu2 %1176  ;;  %v4674_v31 = vpop.permute.xlu0 %1186 }
 0x2f5   :  { %6321 = vst [vmem:[#allocation42_spill] sm:$0xff] %v4672_v18  ;;  %v4676_v45 = vpop.permute.xlu1 %1660  ;;  %v1465_v18 = vunpack.c.l.b16 %v1417_v4 }
 0x2f6   :  { %6322 = vst [vmem:[#allocation43_spill] sm:$0xff] %v4676_v45 }
 0x2fc   :  { %v4678_v52 = vpop.permute.xlu2 %1395  ;;  %v4680_v23 = vpop.permute.xlu0 %1387 }
 0x2fd   :  { %v4682_v44 = vpop.permute.xlu1 %1252 }
 0x304   :  { %v4693_v15 = vpop.permute.xlu2 %1612  ;;  %v1392_v60 = vpop.permute.xlu0 %1391 }
 0x305   :  { %6324 = vst [vmem:[#allocation44_spill] sm:$0xff] %v4693_v15  ;;  %v4696_v45 = vpop.permute.xlu1 %1216  ;;  %v1404_v34 = vsel %vm650_vm1, %v1392_v60, %v4678_v52  ;;  %v1406_v22 = vsel %vm650_vm1, %v4680_v23, %v1392_v60  ;;  %v1381_v15 = vpack.c.bf16 %v4468_v51, %v4466_v55  ;;  %v1449_v60 = vunpack.c.l.b16 %v1383_v2 }
 0x306   :  { %v1413_v53 = vmul.f32 %v1406_v22, %v6325_v1  ;;  %v1414_v3 = vmul.f32 %v1404_v34, %v6323_v39  ;;  %v1450_v34 = vunpack.c.h.b16 %v1383_v2  ;;  %v1367_v51 = vsel %vm600_vm2, %v4592_v47, %v4596_v40  ;;  %v6328_v2 = vld [vmem:[#allocation19_spill] sm:$0xff]  ;;  %v6332_v39 = vld [vmem:[#allocation22_spill] sm:$0xff] }
 0x307   :  { %v1446_v0 = vunpack.c.h.b16 %v1381_v15 }
 0x308   :  { %v1419_v48 = vpack.c.bf16 %v1414_v3, %v1413_v53  ;;  %v1445_v53 = vunpack.c.l.b16 %v1381_v15  ;;  %v4728_v15 = vpack.c.bf16 %v4572_v5, %v4553_v41  ;;  %v1268_v41 = vsel %vm492_vm3, %v4632_v43, %v4606_v37 }
 0x309   :  { %v1454_v3 = vpack.c.b16 %v1450_v34, %v1446_v0 }
 0x30a   :  { %v1469_v25 = vunpack.c.l.b16 %v1419_v48  ;;  %v1470_v32 = vunpack.c.h.b16 %v1419_v48  ;;  %v1453_v12 = vpack.c.b16 %v1449_v60, %v1445_v53  ;;  %v1230_v60 = vsel %vm446_vm4, %v4580_v46, %v4594_v7 }
 0x30c   :  { %v4710_v58 = vpop.permute.xlu2 %1260  ;;  %v4712_v56 = vpop.permute.xlu0 %1180  ;;  %v1473_v49 = vpack.c.b16 %v1469_v25, %v1465_v18  ;;  %v1474_v22 = vpack.c.b16 %v1470_v32, %v1466_v50  ;;  %v1365_v50 = vsel %vm600_vm2, %v4596_v40, %v4584_v57  ;;  %v4732_v25 = vpack.c.bf16 %v4496_v8, %v4488_v17  ;;  %v6327_v32 = vld [vmem:[#allocation20_spill] sm:$0xff] }
 0x30d   :  { %v1249_v24 = vpop.permute.xlu1 %1248  ;;  %v1370_v18 = vmul.f32 %v1365_v50, %v6327_v32  ;;  %v6331_v50 = vld [vmem:[#allocation26_spill] sm:$0xff] }
 0x30e   :  { %1497 = vmatpush.bf16.msra.mxu0 %v1473_v49  ;;  %1511 = vmatpush.bf16.msra.mxu1 %v1474_v22  ;;  %v1369_v49 = vmul.f32 %v1367_v51, %v6328_v2  ;;  %v1451_v22 = vunpack.c.l.b16 %v4728_v15  ;;  %v1267_v17 = vsel %vm492_vm3, %v1249_v24, %v4682_v44  ;;  %v1269_v8 = vsel %vm492_vm3, %v4710_v58, %v1249_v24 }
 0x30f   :  { %v1447_v53 = vunpack.c.l.b16 %v4732_v25  ;;  %v1235_v51 = vmul.f32 %v1230_v60, %v6331_v50  ;;  %v1274_v60 = vmul.f32 %v1269_v8, %v6332_v39 }
 0x310   :  { %v4758_v0 = vpack.c.bf16 %v1370_v18, %v1369_v49  ;;  %v1264_v18 = vsel %vm492_vm3, %v4582_v19, %v4604_v14 }
 0x311   :  { %v4774_v49 = vpack.c.b16 %v1451_v22, %v1447_v53 }
 0x312   :  { %1498 = vmatpush.bf16.msra.mxu0 %v1453_v12  ;;  %1512 = vmatpush.bf16.msra.mxu1 %v1454_v3  ;;  %v1401_v12 = vsel %vm650_vm1, %v4620_v9, %v4654_v61  ;;  %v1407_v3 = vsel %vm650_vm1, %v4654_v61, %v4551_v54  ;;  %v1266_v9 = vsel %vm492_vm3, %v4606_v37, %v4582_v19  ;;  %v6333_v61 = vld [vmem:[#allocation21_spill] sm:$0xff] }
 0x313   :  { %v1270_v54 = vmul.f32 %v1268_v41, %v6332_v39  ;;  %v1275_v24 = vmul.f32 %v1267_v17, %v6333_v61  ;;  %v1232_v19 = vsel %vm446_vm4, %v4644_v30, %v4580_v46  ;;  %v1363_v37 = vsel %vm600_vm2, %v4584_v57, %v4668_v35 }
 0x314   :  { %v4714_v4 = vpop.permute.xlu2 %1224  ;;  %v1213_v48 = vpop.permute.xlu0 %1212  ;;  %v1425_v41 = vunpack.c.l.b16 %v4758_v0  ;;  %v1426_v17 = vunpack.c.h.b16 %v4758_v0  ;;  %v1271_v8 = vmul.f32 %v1266_v9, %v6333_v61  ;;  %v1361_v46 = vsel %vm600_vm2, %v4668_v35, %v4592_v47  ;;  %v6334_v9 = vld [vmem:[#allocation24_spill] sm:$0xff] }
 0x315   :  { %v4716_v55 = vpop.permute.xlu1 %1686  ;;  %v1231_v22 = vsel %vm446_vm4, %v1213_v48, %v4696_v45  ;;  %v1233_v53 = vsel %vm446_vm4, %v4714_v4, %v1213_v48  ;;  %v1262_v48 = vsel %vm492_vm3, %v4604_v14, %v4632_v43  ;;  %v1366_v57 = vsel %vm600_vm2, %v4666_v38, %v4652_v59 }
 0x316   :  { %6326 = vst [vmem:[#allocation45_spill] sm:$0xff] %v4716_v55  ;;  %v1280_v0 = vpack.c.bf16 %v1275_v24, %v1274_v60  ;;  %v1278_v1 = vpack.c.bf16 %v1271_v8, %v1270_v54  ;;  %v1234_v39 = vmul.f32 %v1232_v19, %v6334_v9  ;;  %v1371_v14 = vmul.f32 %v1363_v37, %v4149_v29 }
 0x317   :  { %v1372_v47 = vmul.f32 %v1361_v46, %v4168_v42 }
 0x318   :  { %v1330_v19 = vunpack.c.l.b16 %v1280_v0  ;;  %v1331_v37 = vunpack.c.h.b16 %v1280_v0  ;;  %v1327_v46 = vunpack.c.h.b16 %v1278_v1 }
 0x31c   :  { %v4741_v40 = vpop.permute.xlu2 %1184  ;;  %v4753_v5 = vpop.permute.xlu0 %1614 }
 0x31d   :  { %6329 = vst [vmem:[#allocation20_spill] sm:$0xff] %v4753_v5  ;;  %v4755_v34 = vpop.permute.xlu1 %1650  ;;  %v1411_v5 = vmul.f32 %v1401_v12, %v4123_v36  ;;  %v1272_v12 = vmul.f32 %v1264_v18, %v4065_v27  ;;  %v1238_v18 = vmul.f32 %v1233_v53, %v6334_v9 }
 0x31e   :  { %6330 = vst [vmem:[#allocation46_spill] sm:$0xff] %v4755_v34  ;;  %v1412_v34 = vmul.f32 %v1407_v3, %v4126_v20  ;;  %v1239_v3 = vmul.f32 %v1231_v22, %v6331_v50 }
 0x320   :  { %v1418_v61 = vpack.c.bf16 %v1412_v34, %v1411_v5  ;;  %v1374_v5 = vmul.f32 %v1366_v57, %v6327_v32  ;;  %v1244_v8 = vpack.c.bf16 %v1239_v3, %v1238_v18  ;;  %v1335_v3 = vpack.c.b16 %v1331_v37, %v1327_v46 }
 0x321   :  { %v1228_v37 = vsel %vm446_vm4, %v4594_v7, %v4616_v6 }
 0x322   :  { %v1467_v57 = vunpack.c.l.b16 %v1418_v61  ;;  %v1310_v18 = vunpack.c.l.b16 %v1244_v8 }
 0x324   :  { %v1360_v43 = vpop.permute.xlu0 %1359  ;;  %v4830_v60 = vpop.permute.xlu2 %1652 }
 0x325   :  { %v1400_v55 = vpop.permute.xlu1 %1399  ;;  %v1368_v35 = vsel %vm600_vm2, %v1360_v43, %v4666_v38  ;;  %v1273_v38 = vmul.f32 %v1262_v48, %v4102_v33 }
 0x326   :  { %v1402_v24 = vsel %vm650_vm1, %v4678_v52, %v1400_v55  ;;  %v1408_v54 = vsel %vm650_vm1, %v1400_v55, %v4680_v23  ;;  %v1373_v34 = vmul.f32 %v1368_v35, %v6328_v2  ;;  %v1326_v52 = vunpack.c.l.b16 %v1278_v1 }
 0x327   :  { %v1415_v22 = vmul.f32 %v1402_v24, %v4123_v36  ;;  %v1416_v53 = vmul.f32 %v1408_v54, %v4126_v20  ;;  %v1226_v23 = vsel %vm446_vm4, %v4616_v6, %v4644_v30  ;;  %v1242_v55 = vpack.c.bf16 %v1235_v51, %v1234_v39 }
 0x328   :  { %v1379_v9 = vpack.c.bf16 %v1374_v5, %v1373_v34  ;;  %v1468_v35 = vunpack.c.h.b16 %v1418_v61  ;;  %v4841_v24 = vpack.c.bf16 %v1372_v47, %v1371_v14  ;;  %v1334_v0 = vpack.c.b16 %v1330_v19, %v1326_v52  ;;  %v4854_v61 = vld [vmem:[#allocation5 + $0x20] sm:$0xff] }
 0x329   :  { %v1420_v50 = vpack.c.bf16 %v1416_v53, %v1415_v22  ;;  %v1311_v2 = vunpack.c.h.b16 %v1244_v8  ;;  %v1306_v19 = vunpack.c.l.b16 %v1242_v55 }
 0x32a   :  { %v1429_v20 = vunpack.c.l.b16 %v1379_v9  ;;  %v1430_v48 = vunpack.c.h.b16 %v1379_v9  ;;  %v1279_v9 = vpack.c.bf16 %v1273_v38, %v1272_v12  ;;  %v1307_v12 = vunpack.c.h.b16 %v1242_v55 }
 0x32b   :  { %v1471_v54 = vunpack.c.l.b16 %v1420_v50  ;;  %v1472_v36 = vunpack.c.h.b16 %v1420_v50  ;;  %v1427_v38 = vunpack.c.l.b16 %v4841_v24  ;;  %v1236_v55 = vmul.f32 %v1228_v37, %v4094_v28 }
 0x32c   :  { %v1257_v1 = vpop.permute.xlu0 %1256  ;;  %v1433_v34 = vpack.c.b16 %v1429_v20, %v1425_v41  ;;  %v1434_v22 = vpack.c.b16 %v1430_v48, %v1426_v17  ;;  %v1315_v6 = vpack.c.b16 %v1311_v2, %v1307_v12  ;;  %v1329_v48 = vunpack.c.h.b16 %v1279_v9 }
 0x32d   :  { %v1356_v5 = vpop.permute.xlu1 %1355  ;;  %v1475_v53 = vpack.c.b16 %v1471_v54, %v1467_v57  ;;  %v1263_v39 = vsel %vm492_vm3, %v1257_v1, %v4710_v58  ;;  %v1265_v30 = vsel %vm492_vm3, %v4682_v44, %v1257_v1  ;;  %v4860_v44 = vpop.permute.xlu2 %1698  ;;  %v1476_v14 = vpack.c.b16 %v1472_v36, %v1468_v35 }
 0x32e   :  { %v1362_v50 = vsel %vm600_vm2, %v1356_v5, %v1360_v43  ;;  %v1364_v51 = vsel %vm600_vm2, %v4652_v59, %v1356_v5  ;;  %v1276_v20 = vmul.f32 %v1265_v30, %v4065_v27  ;;  %v1277_v41 = vmul.f32 %v1263_v39, %v4102_v33  ;;  %1499 = vmatpush.bf16.msra.mxu0 %v1433_v34 }
 0x32f   :  { %v1375_v17 = vmul.f32 %v1364_v51, %v4149_v29  ;;  %v1376_v58 = vmul.f32 %v1362_v50, %v4168_v42  ;;  %1513 = vmatpush.bf16.msra.mxu1 %v1434_v22  ;;  %1525 = vmatpush.bf16.msra.mxu2 %v1475_v53  ;;  %v6335_v43 = vunpack.c.h.b16 %v4732_v25  ;;  %v6336_v59 = vunpack.c.h.b16 %v4728_v15  ;;  %v6337_v50 = vld [vmem:[#allocation31_spill] sm:$0xff] }
 0x330   :  { %v1281_v8 = vpack.c.bf16 %v1277_v41, %v1276_v20  ;;  %v1194_v36 = vsel %vm400_vm5, %v4608_v11, %v4570_v21  ;;  %v1237_v25 = vmul.f32 %v1226_v23, %v4120_v26  ;;  %1539 = vmatpush.bf16.msra.mxu3 %v1476_v14  ;;  %v1314_v15 = vpack.c.b16 %v1310_v18, %v1306_v19  ;;  %v6338_v20 = vld [vmem:[#allocation29_spill] sm:$0xff] }
 0x331   :  { %v1456_v47 = vpack.c.b16 %v6336_v59, %v6335_v43  ;;  %v1380_v52 = vpack.c.bf16 %v1376_v58, %v1375_v17  ;;  %3350 = vmatmul.msk.bf16.vlgmr.msra.gmra.mxu0 %vm748_vm7, %v4854_v61  ;;  %v1328_v35 = vunpack.c.l.b16 %v1279_v9  ;;  %v1428_v23 = vunpack.c.h.b16 %v4841_v24  ;;  %v6340_v9 = vld [vmem:[#allocation18_spill] sm:$0xff]  ;;  %v6341_v43 = vld [vmem:[#allocation37_spill] sm:$0xff] }
 0x332   :  { %1561 = vmatpush.bf16.msrb.mxu0 %v1334_v0  ;;  %v1332_v7 = vunpack.c.l.b16 %v1281_v8  ;;  %3351 = vmatmul.msk.bf16.vlgmr.msra.gmra.mxu1 %vm748_vm7, %v4854_v61  ;;  %v1333_v54 = vunpack.c.h.b16 %v1281_v8  ;;  %v1702_v0 = vsel %vm980_vm6, %v4642_v63, %v4628_v16  ;;  %v1704_v2 = vsel %vm980_vm6, %v4618_v10, %v4642_v63 }
 0x333   :  { %1575 = vmatpush.bf16.msrb.mxu1 %v1335_v3  ;;  %v1431_v46 = vunpack.c.l.b16 %v1380_v52  ;;  %v1432_v57 = vunpack.c.h.b16 %v1380_v52  ;;  %1526 = vmatpush.bf16.msra.mxu2 %v4774_v49  ;;  %v1243_v49 = vpack.c.bf16 %v1237_v25, %v1236_v55  ;;  %v1196_v63 = vsel %vm400_vm5, %v4674_v31, %v4608_v11 }
 0x334   :  { %v1221_v3 = vpop.permute.xlu0 %1220  ;;  %1540 = vmatpush.bf16.msra.mxu3 %v1456_v47  ;;  %v1336_v39 = vpack.c.b16 %v1332_v7, %v1328_v35  ;;  %v1708_v30 = vmul.f32 %v1704_v2, %v4110_v13  ;;  %v1709_v51 = vmul.f32 %v1702_v0, %v6337_v50  ;;  %v1199_v41 = vmul.f32 %v1194_v36, %v6338_v20  ;;  %v6343_v36 = vld [vmem:[#allocation35_spill] sm:$0xff]  ;;  %v6346_v0 = vld [vmem:[#allocation34_spill] sm:$0xff] }
 0x335   :  { %v4891_v18 = vpop.permute.xlu1 %1690  ;;  %v1435_v1 = vpack.c.b16 %v1431_v46, %v1427_v38  ;;  %v1227_v24 = vsel %vm446_vm4, %v1221_v3, %v4714_v4  ;;  %v1229_v5 = vsel %vm446_vm4, %v4696_v45, %v1221_v3  ;;  %v1436_v34 = vpack.c.b16 %v1432_v57, %v1428_v23  ;;  %v6339_v45 = vld [vmem:[#allocation41_spill] sm:$0xff]  ;;  %v4921_v47 = vpop.permute.xlu2 %1662  ;;  %v6344_v38 = vld [vmem:[#allocation36_spill] sm:$0xff] }
 0x336   :  { %1562 = vmatpush.bf16.msrb.mxu0 %v1314_v15  ;;  %v1240_v22 = vmul.f32 %v1229_v5, %v4094_v28  ;;  %v1241_v53 = vmul.f32 %v1227_v24, %v4120_v26  ;;  %v1337_v4 = vpack.c.b16 %v1333_v54, %v1329_v48  ;;  %v1700_v17 = vsel %vm980_vm6, %v4628_v16, %v6339_v45  ;;  %v6342_v16 = vld [vmem:[#allocation42_spill] sm:$0xff] }
 0x337   :  { %1576 = vmatpush.bf16.msrb.mxu1 %v1315_v6  ;;  %1527 = vmatpush.bf16.msra.mxu2 %v1435_v1  ;;  %v1706_v11 = vsel %vm980_vm6, %v6339_v45, %v4618_v10  ;;  %v1190_v14 = vsel %vm400_vm5, %v6340_v9, %v4674_v31  ;;  %v1198_v59 = vmul.f32 %v1196_v63, %v6341_v43  ;;  %v1308_v19 = vunpack.c.l.b16 %v1243_v49  ;;  %v6345_v6 = vld [vmem:[#allocation38_spill] sm:$0xff]  ;;  %v6347_v63 = vld [vmem:[#allocation43_spill] sm:$0xff] }
 0x338   :  { %v1245_v58 = vpack.c.bf16 %v1241_v53, %v1240_v22  ;;  %1541 = vmatpush.bf16.msra.mxu3 %v1436_v34  ;;  %v1195_v37 = vsel %vm400_vm5, %v6342_v16, %v4712_v56  ;;  %v1309_v8 = vunpack.c.h.b16 %v1243_v49  ;;  %v4929_v12 = vpack.c.bf16 %v1709_v51, %v1708_v30  ;;  %v6348_v22 = vld [vmem:[#allocation16_spill] sm:$0xff] }
 0x339   :  { %v1192_v31 = vsel %vm400_vm5, %v4570_v21, %v6340_v9  ;;  %v1710_v25 = vmul.f32 %v1700_v17, %v6343_v36  ;;  %v1193_v15 = vsel %vm400_vm5, %v4712_v56, %v4741_v40  ;;  %v1711_v7 = vmul.f32 %v1706_v11, %v6344_v38  ;;  %v6350_v17 = vld [vmem:[#allocation45_spill] sm:$0xff] }
 0x33a   :  { %3352 = vmatmul.msk.bf16.vlgmr.msra.gmra.mxu2 %vm748_vm7, %v4854_v61  ;;  %v1312_v10 = vunpack.c.l.b16 %v1245_v58  ;;  %v1313_v52 = vunpack.c.h.b16 %v1245_v58  ;;  %v1201_v46 = vmul.f32 %v1190_v14, %v6345_v6  ;;  %v1206_v23 = vpack.c.bf16 %v1199_v41, %v1198_v59 }
 0x33b   :  { %1589 = vmatpush.bf16.msrb.mxu2 %v1336_v39  ;;  %3353 = vmatmul.msk.bf16.vlgmr.msra.gmra.mxu3 %vm748_vm7, %v4854_v61  ;;  %v1203_v21 = vmul.f32 %v1195_v37, %v6338_v20  ;;  %v1204_v2 = vmul.f32 %v1193_v15, %v6346_v0  ;;  %v1200_v61 = vmul.f32 %v1192_v31, %v6346_v0  ;;  %v1764_v49 = vunpack.c.l.b16 %v4929_v12  ;;  %v6349_v39 = vld [vmem:[#allocation13_spill] sm:$0xff]  ;;  %v6352_v37 = vld [vmem:[#allocation40_spill] sm:$0xff] }
 0x33c   :  { %1603 = vmatpush.bf16.msrb.mxu3 %v1337_v4  ;;  %v1625_v57 = vpop.permute.xlu0 %1624  ;;  %v1316_v35 = vpack.c.b16 %v1312_v10, %v1308_v19  ;;  %v1317_v54 = vpack.c.b16 %v1313_v52, %v1309_v8  ;;  %v4956_v34 = vpack.c.bf16 %v1711_v7, %v1710_v25  ;;  %v1664_v53 = vsel %vm934_vm8, %v6348_v22, %v6347_v63  ;;  %v6351_v19 = vld [vmem:[#allocation39_spill] sm:$0xff] }
 0x33d   :  { %v1189_v55 = vpop.permute.xlu1 %1188  ;;  %v1670_v30 = vsel %vm934_vm8, %v6347_v63, %v6349_v39  ;;  %v1286_v51 = vunpack.c.l.b16 %v1206_v23  ;;  %v1287_v41 = vunpack.c.h.b16 %v1206_v23  ;;  %v1707_v58 = vsel %vm980_vm6, %v4860_v44, %v6350_v17  ;;  %v4974_v9 = vpop.permute.xlu2 %1622 }
 0x33e   :  { %v1191_v48 = vsel %vm400_vm5, %v4741_v40, %v1189_v55  ;;  %v1197_v56 = vsel %vm400_vm5, %v1189_v55, %v6342_v16  ;;  %v1207_v40 = vpack.c.bf16 %v1201_v46, %v1200_v61  ;;  %v1705_v11 = vsel %vm980_vm6, %v6350_v17, %v4891_v18  ;;  %v6355_v17 = vld [vmem:[#allocation28_spill] sm:$0xff] }
 0x33f   :  { %v1202_v3 = vmul.f32 %v1197_v56, %v6341_v43  ;;  %v1205_v1 = vmul.f32 %v1191_v48, %v6345_v6  ;;  %1590 = vmatpush.bf16.msrb.mxu2 %v1316_v35  ;;  %v1674_v16 = vmul.f32 %v1664_v53, %v6351_v19  ;;  %v1675_v10 = vmul.f32 %v1670_v30, %v6352_v37  ;;  %v3423_v48 = vld [vmem:[#allocation5 + $0x18] sm:$0xff] }
 0x340   :  { %1604 = vmatpush.bf16.msrb.mxu3 %v1317_v54  ;;  %v1288_v46 = vunpack.c.l.b16 %v1207_v40  ;;  %v1289_v55 = vunpack.c.h.b16 %v1207_v40  ;;  %v1715_v35 = vmul.f32 %v1707_v58, %v6344_v38  ;;  %v1712_v54 = vmul.f32 %v1705_v11, %v4110_v13 }
 0x341   :  { %v1208_v24 = vpack.c.bf16 %v1203_v21, %v1202_v3  ;;  %v1209_v5 = vpack.c.bf16 %v1205_v1, %v1204_v2  ;;  %v1765_v56 = vunpack.c.h.b16 %v4929_v12  ;;  %v6353_v2 = vld [vmem:[#allocation46_spill] sm:$0xff]  ;;  %v6354_v1 = vld [vmem:[#allocation44_spill] sm:$0xff]  ;;  %v1766_v12 = vunpack.c.l.b16 %v4956_v34 }
 0x342   :  { %v1634_v61 = vsel %vm888_vm9, %v1625_v57, %v6354_v1  ;;  %v1767_v63 = vunpack.c.h.b16 %v4956_v34  ;;  %v1681_v53 = vpack.c.bf16 %v1675_v10, %v1674_v16  ;;  %v1666_v30 = vsel %vm934_vm8, %v4830_v60, %v6348_v22  ;;  %v6356_v22 = vld [vmem:[#allocation25_spill] sm:$0xff] }
 0x343   :  { %v1290_v4 = vunpack.c.l.b16 %v1208_v24  ;;  %v1291_v45 = vunpack.c.h.b16 %v1208_v24  ;;  %v1292_v14 = vunpack.c.l.b16 %v1209_v5  ;;  %v1293_v59 = vunpack.c.h.b16 %v1209_v5 }
 0x344   :  { %v1695_v8 = vpop.permute.xlu0 %1694  ;;  %v1639_v58 = vmul.f32 %v1634_v61, %v6355_v17 }
 0x345   :  { %v4978_v52 = vpop.permute.xlu1 %1620  ;;  %v1294_v31 = vpack.c.b16 %v1290_v4, %v1286_v51  ;;  %v1295_v25 = vpack.c.b16 %v1291_v45, %v1287_v41  ;;  %v1701_v15 = vsel %vm980_vm6, %v1695_v8, %v4860_v44  ;;  %v1703_v7 = vsel %vm980_vm6, %v4891_v18, %v1695_v8 }
 0x346   :  { %v1713_v23 = vmul.f32 %v1703_v7, %v6337_v50  ;;  %v1714_v21 = vmul.f32 %v1701_v15, %v6343_v36  ;;  %v1671_v44 = vsel %vm934_vm8, %v4921_v47, %v6353_v2  ;;  %v1296_v18 = vpack.c.b16 %v1292_v14, %v1288_v46 }
 0x347   :  { %1563 = vmatpush.bf16.msrb.mxu0 %v1294_v31  ;;  %1577 = vmatpush.bf16.msrb.mxu1 %v1295_v25  ;;  %v1297_v3 = vpack.c.b16 %v1293_v59, %v1289_v55  ;;  %v1628_v40 = vsel %vm888_vm9, %v4978_v52, %v1625_v57  ;;  %v1668_v57 = vsel %vm934_vm8, %v6349_v39, %v4830_v60  ;;  %v1619_v31 = vpop.permute.xlu2 %1618  ;;  %v6357_v25 = vld [vmem:[#allocation20_spill] sm:$0xff] }
 0x348   :  { %v1718_v24 = vpack.c.bf16 %v1713_v23, %v1712_v54  ;;  %v1719_v5 = vpack.c.bf16 %v1715_v35, %v1714_v21  ;;  %1591 = vmatpush.bf16.msrb.mxu2 %v1296_v18  ;;  %v1679_v34 = vmul.f32 %v1671_v44, %v6352_v37  ;;  %v1638_v11 = vmul.f32 %v1628_v40, %v6356_v22  ;;  %v6358_v35 = vld [vmem:[#allocation12_spill] sm:$0xff] }
 0x349   :  { %1605 = vmatpush.bf16.msrb.mxu3 %v1297_v3  ;;  %v1672_v54 = vmul.f32 %v1668_v57, %v6358_v35  ;;  %v1746_v3 = vunpack.c.l.b16 %v1681_v53 }
 0x34a   :  { %v1768_v51 = vunpack.c.l.b16 %v1718_v24  ;;  %v1769_v4 = vunpack.c.h.b16 %v1718_v24  ;;  %v1770_v41 = vunpack.c.l.b16 %v1719_v5  ;;  %v1771_v45 = vunpack.c.h.b16 %v1719_v5  ;;  %3358 = vmatmul.msk.bf16.vlgmr.msrb.gmra.mxu0 %vm748_vm7, %v3423_v48  ;;  %3359 = vmatmul.msk.bf16.vlgmr.msrb.gmra.mxu1 %vm748_vm7, %v3423_v48 }
 0x34b   :  { %3360 = vmatmul.msk.bf16.vlgmr.msrb.gmra.mxu2 %vm748_vm7, %v3423_v48  ;;  %v1645_v21 = vpack.c.bf16 %v1639_v58, %v1638_v11  ;;  %v1747_v24 = vunpack.c.h.b16 %v1681_v53 }
 0x34c   :  { %v1659_v14 = vpop.permute.xlu0 %1658  ;;  %3361 = vmatmul.msk.bf16.vlgmr.msrb.gmra.mxu3 %vm748_vm7, %v3423_v48  ;;  %v1772_v16 = vpack.c.b16 %v1768_v51, %v1764_v49  ;;  %v1773_v10 = vpack.c.b16 %v1769_v4, %v1765_v56  ;;  %v1774_v8 = vpack.c.b16 %v1770_v41, %v1766_v12  ;;  %v1775_v7 = vpack.c.b16 %v1771_v45, %v1767_v63  ;;  %v6360_v12 = vld [vmem:[#allocation27_spill] sm:$0xff] }
 0x34d   :  { %v1627_v59 = vpop.permute.xlu1 %1626  ;;  %v1665_v60 = vsel %vm934_vm8, %v1659_v14, %v4921_v47  ;;  %v6359_v47 = vld [vmem:[#allocation23_spill] sm:$0xff]  ;;  %v1631_v48 = vsel %vm888_vm9, %v1619_v31, %v4974_v9  ;;  %v1633_v56 = vsel %vm888_vm9, %v6357_v25, %v1619_v31  ;;  %v1726_v4 = vunpack.c.l.b16 %v1645_v21 }
 0x34e   :  { %v1629_v39 = vsel %vm888_vm9, %v4974_v9, %v1627_v59  ;;  %v1635_v15 = vsel %vm888_vm9, %v1627_v59, %v6357_v25  ;;  %v1678_v46 = vmul.f32 %v1665_v60, %v6351_v19  ;;  %1796 = vmatpush.bf16.msra.mxu0 %v1772_v16  ;;  %1810 = vmatpush.bf16.msra.mxu1 %v1773_v10  ;;  %v1727_v60 = vunpack.c.h.b16 %v1645_v21 }
 0x34f   :  { %v1642_v49 = vmul.f32 %v1629_v39, %v6356_v22  ;;  %v1643_v55 = vmul.f32 %v1635_v15, %v6355_v17  ;;  %v1673_v23 = vmul.f32 %v1666_v30, %v6359_v47  ;;  %1824 = vmatpush.bf16.msra.mxu2 %v1774_v8  ;;  %1838 = vmatpush.bf16.msra.mxu3 %v1775_v7  ;;  %v6361_v30 = vld [vmem:[#allocation17_spill] sm:$0xff] }
 0x350   :  { %v1683_v44 = vpack.c.bf16 %v1679_v34, %v1678_v46  ;;  %v1640_v63 = vmul.f32 %v1633_v56, %v6360_v12  ;;  %v1641_v51 = vmul.f32 %v1631_v48, %v6361_v30 }
 0x351   :  { %v1647_v18 = vpack.c.bf16 %v1643_v55, %v1642_v49  ;;  %v1680_v40 = vpack.c.bf16 %v1673_v23, %v1672_v54 }
 0x352   :  { %v1750_v61 = vunpack.c.l.b16 %v1683_v44  ;;  %v1751_v5 = vunpack.c.h.b16 %v1683_v44  ;;  %v1646_v46 = vpack.c.bf16 %v1641_v51, %v1640_v63 }
 0x353   :  { %v1730_v58 = vunpack.c.l.b16 %v1647_v18  ;;  %v1731_v11 = vunpack.c.h.b16 %v1647_v18  ;;  %v1744_v7 = vunpack.c.l.b16 %v1680_v40  ;;  %v1745_v49 = vunpack.c.h.b16 %v1680_v40 }
 0x354   :  { %v1655_v41 = vpop.permute.xlu0 %1654  ;;  %v1754_v57 = vpack.c.b16 %v1750_v61, %v1746_v3  ;;  %v1755_v9 = vpack.c.b16 %v1751_v5, %v1747_v24  ;;  %v1728_v21 = vunpack.c.l.b16 %v1646_v46  ;;  %v1729_v44 = vunpack.c.h.b16 %v1646_v46 }
 0x355   :  { %v1617_v45 = vpop.permute.xlu1 %1616  ;;  %v1667_v34 = vsel %vm934_vm8, %v1655_v41, %v1659_v14  ;;  %v1669_v53 = vsel %vm934_vm8, %v6353_v2, %v1655_v41  ;;  %v1734_v25 = vpack.c.b16 %v1730_v58, %v1726_v4  ;;  %v1735_v15 = vpack.c.b16 %v1731_v11, %v1727_v60 }
 0x356   :  { %v1630_v59 = vsel %vm888_vm9, %v1617_v45, %v4978_v52  ;;  %v1632_v16 = vsel %vm888_vm9, %v6354_v1, %v1617_v45  ;;  %v1676_v10 = vmul.f32 %v1669_v53, %v6358_v35  ;;  %v1677_v8 = vmul.f32 %v1667_v34, %v6359_v47  ;;  %1825 = vmatpush.bf16.msra.mxu2 %v1754_v57  ;;  %v3425_v52 = vld [vmem:[#allocation5 + $0x28] sm:$0xff] }
 0x357   :  { %v1636_v31 = vmul.f32 %v1632_v16, %v6360_v12  ;;  %v1637_v14 = vmul.f32 %v1630_v59, %v6361_v30  ;;  %1839 = vmatpush.bf16.msra.mxu3 %v1755_v9  ;;  %v6366_v30 = vld [vmem:[#allocation24_spill] sm:$0xff] }
 0x358   :  { %v1682_v2 = vpack.c.bf16 %v1677_v8, %v1676_v10 }
 0x359   :  { %v1644_v39 = vpack.c.bf16 %v1637_v14, %v1636_v31 }
 0x35a   :  { %1826 = vmatpush.bf16.msra.mxu2 %v1734_v25  ;;  %v1748_v1 = vunpack.c.l.b16 %v1682_v2  ;;  %v1749_v55 = vunpack.c.h.b16 %v1682_v2 }
 0x35b   :  { %1840 = vmatpush.bf16.msra.mxu3 %v1735_v15  ;;  %v1724_v48 = vunpack.c.l.b16 %v1644_v39  ;;  %v1725_v56 = vunpack.c.h.b16 %v1644_v39 }
 0x35c   :  { %v1752_v54 = vpack.c.b16 %v1748_v1, %v1744_v7  ;;  %v1753_v23 = vpack.c.b16 %v1749_v55, %v1745_v49  ;;  %v1858_v15 = vpop.permute.xlu0 %1857 }
 0x35d   :  { %3368 = vmatmul.msk.bf16.vlgmr.msra.gmra.mxu2 %vm748_vm7, %v3425_v52  ;;  %v1732_v18 = vpack.c.b16 %v1728_v21, %v1724_v48  ;;  %v1733_v3 = vpack.c.b16 %v1729_v44, %v1725_v56 }
 0x35e   :  { %3369 = vmatmul.msk.bf16.vlgmr.msra.gmra.mxu3 %vm748_vm7, %v3425_v52  ;;  %1797 = vmatpush.bf16.msra.mxu0 %v1752_v54 }
 0x35f   :  { %1811 = vmatpush.bf16.msra.mxu1 %v1753_v23 }
 0x362   :  { %1798 = vmatpush.bf16.msra.mxu0 %v1732_v18 }
 0x363   :  { %1812 = vmatpush.bf16.msra.mxu1 %v1733_v3 }
 0x365   :  { %3366 = vmatmul.msk.bf16.vlgmr.msra.gmra.mxu0 %vm748_vm7, %v3425_v52 }
 0x366   :  { %3367 = vmatmul.msk.bf16.vlgmr.msra.gmra.mxu1 %vm748_vm7, %v3425_v52 }
 0x3ae   :  { %v1501_v61 = vpop.f32.mrf.mxu0 }
 0x3af   :  { %v1515_v24 = vpop.f32.mrf.mxu1 }
 0x3b6   :  { %v1503_v5 = vpop.f32.mrf.mxu0 }
 0x3b7   :  { %v1517_v40 = vpop.f32.mrf.mxu1 }
 0x3bd   :  { %v1529_v63 = vpop.f32.mrf.mxu2 }
 0x3be   :  { %v1543_v51 = vpop.f32.mrf.mxu3 }
 0x3c5   :  { %v1531_v4 = vpop.f32.mrf.mxu2 }
 0x3c6   :  { %v1545_v57 = vpop.f32.mrf.mxu3 }
 0x3c7   :  { %v1565_v41 = vpop.f32.mrf.mxu0  ;;  %v1579_v45 = vpop.f32.mrf.mxu1 }
 0x3c8   :  { %v1566_v14 = vadd.f32 %v1565_v41, %v1501_v61  ;;  %v1580_v60 = vadd.f32 %v1579_v45, %v1515_v24 }
 0x3ce   :  { %v1593_v53 = vpop.f32.mrf.mxu2 }
 0x3cf   :  { %v1567_v9 = vpop.f32.mrf.mxu0  ;;  %v1581_v58 = vpop.f32.mrf.mxu1  ;;  %v1594_v55 = vadd.f32 %v1593_v53, %v1529_v63 }
 0x3d0   :  { %v1568_v11 = vadd.f32 %v1567_v9, %v1503_v5  ;;  %v1582_v34 = vadd.f32 %v1581_v58, %v1517_v40  ;;  %v1607_v59 = vpop.f32.mrf.mxu3 }
 0x3d1   :  { %v1608_v48 = vadd.f32 %v1607_v59, %v1543_v51  ;;  %v1863_v51 = vpop.permute.xlu1 %1862 }
 0x3d6   :  { %v1595_v16 = vpop.f32.mrf.mxu2 }
 0x3d7   :  { %v5059_v8 = vadd.f32 %v1595_v16, %v1531_v4 }
 0x3d8   :  { %v1609_v10 = vpop.f32.mrf.mxu3 }
 0x3d9   :  { %v5061_v31 = vadd.f32 %v1609_v10, %v1545_v57 }
 0x3e0   :  { %v1828_v54 = vpop.f32.mrf.mxu2 }
 0x3e1   :  { %v1849_v23 = vadd.f32 %v1828_v54, %v1594_v55  ;;  %v1842_v21 = vpop.f32.mrf.mxu3 }
 0x3e2   :  { %v1800_v2 = vpop.f32.mrf.mxu0  ;;  %v1850_v44 = vadd.f32 %v1842_v21, %v1608_v48 }
 0x3e3   :  { %v1847_v39 = vadd.f32 %v1800_v2, %v1566_v14  ;;  %v1814_v25 = vpop.f32.mrf.mxu1  ;;  %v1867_v56 = vadd.f32 %v1858_v15, %v1849_v23  ;;  %v6362_v23 = vld [vmem:[#allocation19_spill] sm:$0xff] }
 0x3e4   :  { %v1848_v52 = vadd.f32 %v1814_v25, %v1580_v60  ;;  %v1868_v3 = vadd.f32 %v1858_v15, %v1850_v44 }
 0x3e5   :  { %v1865_v7 = vadd.f32 %v1858_v15, %v1847_v39  ;;  %v5085_v18 = vmax.f32 %v1867_v56, 0.0 }
 0x3e6   :  { %v1866_v46 = vadd.f32 %v1858_v15, %v1848_v52  ;;  %v5093_v61 = vmax.f32 %v1868_v3, 0.0 }
 0x3e7   :  { %v5063_v1 = vmax.f32 %v1865_v7, 0.0 }
 0x3e8   :  { %v5065_v49 = vmax.f32 %v1866_v46, 0.0  ;;  %v1830_v9 = vpop.f32.mrf.mxu2 }
 0x3e9   :  { %2095 = vrot.lane.b32.xlu2 %v5063_v1, %s3594_s3  ;;  %v1853_v58 = vadd.f32 %v1830_v9, %v5059_v8  ;;  %v1844_v16 = vpop.f32.mrf.mxu3 }
 0x3ea   :  { %1960 = vrot.lane.b32.xlu0 %v5065_v49, %s3593_s2  ;;  %2059 = vrot.lane.b32.xlu1 %v5065_v49, %s3597_s21  ;;  %v1802_v5 = vpop.f32.mrf.mxu0  ;;  %v1854_v10 = vadd.f32 %v1844_v16, %v5061_v31 }
 0x3eb   :  { %v1816_v24 = vpop.f32.mrf.mxu1  ;;  %v1851_v63 = vadd.f32 %v1802_v5, %v1568_v11  ;;  %v1871_v11 = vadd.f32 %v1863_v51, %v1853_v58 }
 0x3ec   :  { %v1852_v40 = vadd.f32 %v1816_v24, %v1582_v34  ;;  %v1872_v8 = vadd.f32 %v1863_v51, %v1854_v10 }
 0x3ed   :  { %v1869_v41 = vadd.f32 %v1863_v51, %v1851_v63  ;;  %v5150_v53 = vmax.f32 %v1871_v11, 0.0 }
 0x3ee   :  { %v1870_v4 = vadd.f32 %v1863_v51, %v1852_v40  ;;  %v5169_v60 = vmax.f32 %v1872_v8, 0.0  ;;  %v6363_v8 = vld [vmem:[#allocation21_spill] sm:$0xff] }
 0x3ef   :  { %v5127_v57 = vmax.f32 %v1869_v41, 0.0 }
 0x3f0   :  { %v5125_v45 = vmax.f32 %v1870_v4, 0.0 }
 0x3f1   :  { %2099 = vrot.lane.b32.xlu2 %v5065_v49, %s3594_s3 }
 0x3f2   :  { %1924 = vrot.lane.b32.xlu0 %v5065_v49, %s3595_s20  ;;  %2055 = vrot.lane.b32.xlu1 %v5063_v1, %s3597_s21 }
 0x3f9   :  { %1888 = vrot.lane.b32.xlu2 %v5065_v49, %s3596_s1 }
 0x3fa   :  { %1956 = vrot.lane.b32.xlu0 %v5063_v1, %s3593_s2  ;;  %1884 = vrot.lane.b32.xlu1 %v5063_v1, %s3596_s1 }
 0x401   :  { %1920 = vrot.lane.b32.xlu2 %v5063_v1, %s3595_s20 }
 0x402   :  { %2394 = vrot.lane.b32.xlu0 %v5063_v1, %s3598_s6  ;;  %2103 = vrot.lane.b32.xlu1 %v5085_v18, %s3594_s3 }
 0x409   :  { %2067 = vrot.lane.b32.xlu2 %v5093_v61, %s3597_s21 }
 0x40a   :  { %2358 = vrot.lane.b32.xlu0 %v5063_v1, %s3599_s22  ;;  %1968 = vrot.lane.b32.xlu1 %v5093_v61, %s3593_s2 }
 0x411   :  { %1964 = vrot.lane.b32.xlu2 %v5085_v18, %s3593_s2 }
 0x412   :  { %2398 = vrot.lane.b32.xlu0 %v5065_v49, %s3598_s6  ;;  %1932 = vrot.lane.b32.xlu1 %v5093_v61, %s3595_s20 }
 0x419   :  { %1928 = vrot.lane.b32.xlu2 %v5085_v18, %s3595_s20 }
 0x41a   :  { %2107 = vrot.lane.b32.xlu0 %v5093_v61, %s3594_s3  ;;  %1892 = vrot.lane.b32.xlu1 %v5085_v18, %s3596_s1 }
 0x421   :  { %2402 = vrot.lane.b32.xlu2 %v5085_v18, %s3598_s6 }
 0x422   :  { %2063 = vrot.lane.b32.xlu0 %v5085_v18, %s3597_s21  ;;  %2406 = vrot.lane.b32.xlu1 %v5093_v61, %s3598_s6 }
 0x429   :  { %2366 = vrot.lane.b32.xlu2 %v5085_v18, %s3599_s22 }
 0x42a   :  { %1896 = vrot.lane.b32.xlu0 %v5093_v61, %s3596_s1  ;;  %2370 = vrot.lane.b32.xlu1 %v5093_v61, %s3599_s22 }
 0x431   :  { %2061 = vrot.lane.b32.xlu2 %v5125_v45, %s3597_s21 }
 0x432   :  { %2097 = vrot.lane.b32.xlu0 %v5127_v57, %s3594_s3  ;;  %1962 = vrot.lane.b32.xlu1 %v5125_v45, %s3593_s2 }
 0x439   :  { %2057 = vrot.lane.b32.xlu2 %v5127_v57, %s3597_s21 }
 0x43a   :  { %2101 = vrot.lane.b32.xlu0 %v5125_v45, %s3594_s3  ;;  %1926 = vrot.lane.b32.xlu1 %v5125_v45, %s3595_s20 }
 0x441   :  { %1886 = vrot.lane.b32.xlu2 %v5127_v57, %s3596_s1 }
 0x442   :  { %1890 = vrot.lane.b32.xlu0 %v5125_v45, %s3596_s1  ;;  %1958 = vrot.lane.b32.xlu1 %v5127_v57, %s3593_s2 }
 0x443   :  { %v5148_v34 = vpop.permute.xlu2 %2095 }
 0x449   :  { %2105 = vrot.lane.b32.xlu2 %v5150_v53, %s3594_s3 }
 0x44a   :  { %1922 = vrot.lane.b32.xlu0 %v5127_v57, %s3595_s20  ;;  %2396 = vrot.lane.b32.xlu1 %v5127_v57, %s3598_s6 }
 0x44b   :  { %v5158_v59 = vpop.permute.xlu2 %2099 }
 0x451   :  { %2322 = vrot.lane.b32.xlu2 %v5063_v1, %s3600_s23 }
 0x452   :  { %2324 = vrot.lane.b32.xlu0 %v5127_v57, %s3600_s23  ;;  %2360 = vrot.lane.b32.xlu1 %v5127_v57, %s3599_s22 }
 0x453   :  { %v5167_v14 = vpop.permute.xlu2 %1888 }
 0x459   :  { %1970 = vrot.lane.b32.xlu2 %v5169_v60, %s3593_s2 }
 0x45a   :  { %2069 = vrot.lane.b32.xlu0 %v5169_v60, %s3597_s21  ;;  %2109 = vrot.lane.b32.xlu1 %v5169_v60, %s3594_s3 }
 0x45b   :  { %v1921_v31 = vpop.permute.xlu2 %1920 }
 0x45c   :  { %v1961_v2 = vpop.permute.xlu0 %1960  ;;  %v5177_v39 = vpop.permute.xlu1 %2059 }
 0x461   :  { %1934 = vrot.lane.b32.xlu2 %v5169_v60, %s3595_s20 }
 0x462   :  { %1966 = vrot.lane.b32.xlu0 %v5150_v53, %s3593_s2  ;;  %2065 = vrot.lane.b32.xlu1 %v5150_v53, %s3597_s21 }
 0x463   :  { %v5185_v25 = vpop.permute.xlu2 %2067 }
 0x464   :  { %v1925_v15 = vpop.permute.xlu0 %1924  ;;  %v2056_v52 = vpop.permute.xlu1 %2055 }
 0x465   :  { %v1940_v7 = vsel %vm446_vm4, %v1921_v31, %v1925_v15  ;;  %v2075_v46 = vsel %vm600_vm2, %v2056_v52, %v5177_v39  ;;  %v2077_v55 = vsel %vm600_vm2, %v5185_v25, %v2056_v52  ;;  %v6364_v52 = vld [vmem:[#allocation22_spill] sm:$0xff] }
 0x466   :  { %v2080_v54 = vmul.f32 %v2075_v46, %v6327_v32  ;;  %v2079_v48 = vmul.f32 %v2077_v55, %v6362_v23 }
 0x468   :  { %v5197_v56 = vpack.c.bf16 %v2080_v54, %v2079_v48 }
 0x469   :  { %1894 = vrot.lane.b32.xlu2 %v5150_v53, %s3596_s1 }
 0x46a   :  { %1930 = vrot.lane.b32.xlu0 %v5150_v53, %s3595_s20  ;;  %2400 = vrot.lane.b32.xlu1 %v5125_v45, %s3598_s6 }
 0x46b   :  { %v1965_v21 = vpop.permute.xlu2 %1964 }
 0x46c   :  { %v1957_v44 = vpop.permute.xlu0 %1956  ;;  %v5205_v3 = vpop.permute.xlu1 %1884  ;;  %v1974_v24 = vsel %vm492_vm3, %v1961_v2, %v1965_v21 }
 0x46d   :  { %v1976_v5 = vsel %vm492_vm3, %v1957_v44, %v1961_v2  ;;  %v5215_v40 = vsel %vm400_vm5, %v5205_v3, %v5167_v14 }
 0x46e   :  { %v1981_v2 = vmul.f32 %v1976_v5, %v6363_v8 }
 0x471   :  { %2362 = vrot.lane.b32.xlu2 %v5065_v49, %s3599_s22 }
 0x472   :  { %2334 = vrot.lane.b32.xlu0 %v5093_v61, %s3600_s23  ;;  %1898 = vrot.lane.b32.xlu1 %v5169_v60, %s3596_s1 }
 0x473   :  { %v1929_v63 = vpop.permute.xlu2 %1928 }
 0x474   :  { %v2395_v51 = vpop.permute.xlu0 %2394  ;;  %v5223_v4 = vpop.permute.xlu1 %2103  ;;  %v1938_v41 = vsel %vm446_vm4, %v1925_v15, %v1929_v63  ;;  %v1982_v15 = vmul.f32 %v1974_v24, %v4065_v27 }
 0x475   :  { %v1946_v5 = vmul.f32 %v1938_v41, %v4094_v28 }
 0x479   :  { %2408 = vrot.lane.b32.xlu2 %v5169_v60, %s3598_s6 }
 0x47a   :  { %2404 = vrot.lane.b32.xlu0 %v5150_v53, %s3598_s6  ;;  %2330 = vrot.lane.b32.xlu1 %v5085_v18, %s3600_s23 }
 0x47b   :  { %v2403_v9 = vpop.permute.xlu2 %2402 }
 0x47c   :  { %v5233_v58 = vpop.permute.xlu0 %2358  ;;  %v1969_v11 = vpop.permute.xlu1 %1968 }
 0x47d   :  { %v1972_v16 = vsel %vm492_vm3, %v1965_v21, %v1969_v11  ;;  %v1978_v10 = vsel %vm492_vm3, %v1969_v11, %v1957_v44  ;;  %v6365_v44 = vld [vmem:[#allocation26_spill] sm:$0xff] }
 0x47e   :  { %v1980_v46 = vmul.f32 %v1978_v10, %v6364_v52  ;;  %v1983_v55 = vmul.f32 %v1972_v16, %v4102_v33  ;;  %v1945_v24 = vmul.f32 %v1940_v7, %v6365_v44 }
 0x480   :  { %v5243_v54 = vpack.c.bf16 %v1981_v2, %v1980_v46  ;;  %v5245_v48 = vpack.c.bf16 %v1983_v55, %v1982_v15 }
 0x481   :  { %2372 = vrot.lane.b32.xlu2 %v5169_v60, %s3599_s22 }
 0x482   :  { %2368 = vrot.lane.b32.xlu0 %v5150_v53, %s3599_s22  ;;  %2336 = vrot.lane.b32.xlu1 %v5169_v60, %s3600_s23 }
 0x483   :  { %v5253_v21 = vpop.permute.xlu2 %2366 }
 0x484   :  { %v2399_v11 = vpop.permute.xlu0 %2398  ;;  %v1933_v16 = vpop.permute.xlu1 %1932 }
 0x485   :  { %v2412_v10 = vsel %vm980_vm6, %v2399_v11, %v2403_v9  ;;  %v2414_v2 = vsel %vm980_vm6, %v2395_v51, %v2399_v11  ;;  %v1936_v15 = vsel %vm446_vm4, %v1929_v63, %v1933_v16  ;;  %v1942_v46 = vsel %vm446_vm4, %v1933_v16, %v1921_v31  ;;  %v6367_v16 = vld [vmem:[#allocation32_spill] sm:$0xff] }
 0x486   :  { %v2418_v55 = vmul.f32 %v2414_v2, %v4110_v13  ;;  %v2419_v7 = vmul.f32 %v2412_v10, %v6337_v50  ;;  %v1944_v41 = vmul.f32 %v1942_v46, %v6366_v30  ;;  %v1947_v12 = vmul.f32 %v1936_v15, %v4120_v26  ;;  %v6368_v2 = vld [vmem:[#allocation33_spill] sm:$0xff]  ;;  %v3370_v46 = vld [vmem:[%s6146_s5 + $0x20] sm:$0xff] }
 0x488   :  { %v5269_v47 = vpack.c.bf16 %v2419_v7, %v2418_v55  ;;  %v5271_v35 = vpack.c.bf16 %v1945_v24, %v1944_v41  ;;  %v5273_v22 = vpack.c.bf16 %v1947_v12, %v1946_v5  ;;  %v3371_v55 = vld [vmem:[%s6146_s5 + $0x28] sm:$0xff] }
 0x489   :  { %2332 = vrot.lane.b32.xlu2 %v5150_v53, %s3600_s23 }
 0x48a   :  { %2364 = vrot.lane.b32.xlu0 %v5125_v45, %s3599_s22  ;;  %2326 = vrot.lane.b32.xlu1 %v5065_v49, %s3600_s23 }
 0x48b   :  { %v5281_v31 = vpop.permute.xlu2 %2061 }
 0x48c   :  { %v2108_v63 = vpop.permute.xlu0 %2107  ;;  %v1893_v11 = vpop.permute.xlu1 %1892 }
 0x48d   :  { %v2111_v24 = vsel %vm650_vm1, %v5223_v4, %v2108_v63  ;;  %v2117_v12 = vsel %vm650_vm1, %v2108_v63, %v5148_v34  ;;  %v1902_v5 = vsel %vm400_vm5, %v5167_v14, %v1893_v11 }
 0x48e   :  { %v2121_v10 = vmul.f32 %v2111_v24, %v6367_v16  ;;  %v2122_v15 = vmul.f32 %v2117_v12, %v6368_v2 }
 0x490   :  { %v5300_v7 = vpack.c.bf16 %v2122_v15, %v2121_v10 }
 0x491   :  { %2328 = vrot.lane.b32.xlu2 %v5125_v45, %s3600_s23 }
 0x492   :  { %2567 = vperm.xlu0 %3447, %v3370_v46   ;;  %2572 = vperm.xlu1 %3448, %v3371_v55  }
 0x493   :  { %v5304_v14 = vpop.permute.xlu2 %2057 }
 0x494   :  { %v2064_v41 = vpop.permute.xlu0 %2063  ;;  %v2407_v63 = vpop.permute.xlu1 %2406 }
 0x495   :  { %v2071_v24 = vsel %vm600_vm2, %v2064_v41, %v5185_v25  ;;  %v2073_v12 = vsel %vm600_vm2, %v5177_v39, %v2064_v41  ;;  %v2410_v10 = vsel %vm980_vm6, %v2403_v9, %v2407_v63  ;;  %v2416_v15 = vsel %vm980_vm6, %v2407_v63, %v2395_v51 }
 0x496   :  { %v2081_v46 = vmul.f32 %v2073_v12, %v4149_v29  ;;  %v2082_v55 = vmul.f32 %v2071_v24, %v4168_v42  ;;  %v2420_v17 = vmul.f32 %v2410_v10, %v6343_v36  ;;  %v2421_v50 = vmul.f32 %v2416_v15, %v6344_v38 }
 0x497   :  { %v1909_v63 = vmul.f32 %v5215_v40, %v6338_v20  ;;  %v1910_v24 = vmul.f32 %v1902_v5, %v6346_v0  ;;  %v2115_v40 = vsel %vm650_vm1, %v5148_v34, %v5158_v59  ;;  %v6372_v5 = vld [vmem:[#allocation14_spill] sm:$0xff] }
 0x498   :  { %v5320_v13 = vpack.c.bf16 %v2082_v55, %v2081_v46  ;;  %v5322_v25 = vpack.c.bf16 %v2421_v50, %v2420_v17 }
 0x49a   :  { %6369 = vst [vmem:[#allocation29_spill] sm:$0xff] %v5322_v25 }
 0x49b   :  { %v5324_v37 = vpop.permute.xlu2 %1886 }
 0x49c   :  { %v1897_v39 = vpop.permute.xlu0 %1896  ;;  %v5326_v41 = vpop.permute.xlu1 %2370 }
 0x49d   :  { %v1900_v51 = vsel %vm400_vm5, %v1893_v11, %v1897_v39  ;;  %v1906_v9 = vsel %vm400_vm5, %v1897_v39, %v5205_v3  ;;  %v2113_v3 = vsel %vm650_vm1, %v5158_v59, %v5223_v4 }
 0x49e   :  { %v1908_v50 = vmul.f32 %v1906_v9, %v6341_v43  ;;  %v1911_v17 = vmul.f32 %v1900_v51, %v6345_v6  ;;  %v2120_v55 = vmul.f32 %v2113_v3, %v6372_v5  ;;  %v6374_v51 = vld [vmem:[#allocation15_spill] sm:$0xff]  ;;  %v2093_v3 = vpack.c.bf16 %v5125_v45, %v5127_v57 }
 0x49f   :  { %v2119_v9 = vmul.f32 %v2115_v40, %v6374_v51  ;;  %v2091_v40 = vpack.c.bf16 %v5065_v49, %v5063_v1 }
 0x4a0   :  { %v5338_v12 = vpack.c.bf16 %v1909_v63, %v1908_v50  ;;  %v5340_v10 = vpack.c.bf16 %v1911_v17, %v1910_v24 }
 0x4a1   :  { %v2127_v17 = vpack.c.bf16 %v2120_v55, %v2119_v9  ;;  %v2156_v45 = vunpack.c.h.b16 %v2091_v40 }
 0x4a2   :  { %6370 = vst [vmem:[#allocation41_spill] sm:$0xff] %v5338_v12 }
 0x4a3   :  { %6371 = vst [vmem:[#allocation18_spill] sm:$0xff] %v5340_v10  ;;  %v2106_v15 = vpop.permute.xlu2 %2105  ;;  %v2176_v36 = vunpack.c.h.b16 %v2127_v17 }
 0x4a4   :  { %v2098_v46 = vpop.permute.xlu0 %2097  ;;  %v5342_v11 = vpop.permute.xlu1 %1962 }
 0x4ab   :  { %v5353_v39 = vpop.permute.xlu2 %2322 }
 0x4ac   :  { %6373 = vst [vmem:[#allocation37_spill] sm:$0xff] %v5353_v39  ;;  %v2102_v63 = vpop.permute.xlu0 %2101  ;;  %v5356_v24 = vpop.permute.xlu1 %1926  ;;  %v2175_v39 = vunpack.c.l.b16 %v2127_v17 }
 0x4ad   :  { %v2114_v50 = vsel %vm650_vm1, %v2102_v63, %v2106_v15  ;;  %v2116_v4 = vsel %vm650_vm1, %v2098_v46, %v2102_v63 }
 0x4ae   :  { %v2123_v25 = vmul.f32 %v2116_v4, %v6374_v51  ;;  %v2124_v34 = vmul.f32 %v2114_v50, %v6372_v5  ;;  %v2159_v4 = vunpack.c.l.b16 %v2093_v3  ;;  %v2160_v50 = vunpack.c.h.b16 %v2093_v3 }
 0x4b0   :  { %v2129_v59 = vpack.c.bf16 %v2124_v34, %v2123_v25  ;;  %v2155_v25 = vunpack.c.l.b16 %v2091_v40  ;;  %v2164_v34 = vpack.c.b16 %v2160_v50, %v2156_v45 }
 0x4b2   :  { %v2179_v38 = vunpack.c.l.b16 %v2129_v59  ;;  %v2180_v10 = vunpack.c.h.b16 %v2129_v59  ;;  %v2163_v57 = vpack.c.b16 %v2159_v4, %v2155_v25 }
 0x4b3   :  { %v5368_v19 = vpop.permute.xlu2 %1970 }
 0x4b4   :  { %v5370_v12 = vpop.permute.xlu0 %1890  ;;  %v1959_v55 = vpop.permute.xlu1 %1958  ;;  %v2183_v9 = vpack.c.b16 %v2179_v38, %v2175_v39  ;;  %v2184_v63 = vpack.c.b16 %v2180_v10, %v2176_v36 }
 0x4b5   :  { %v1977_v36 = vsel %vm492_vm3, %v1959_v55, %v5342_v11  ;;  %v1979_v38 = vsel %vm492_vm3, %v5368_v19, %v1959_v55  ;;  %v2076_v55 = vsel %vm600_vm2, %v5304_v14, %v5281_v31 }
 0x4b6   :  { %2207 = vmatpush.bf16.msrb.mxu0 %v2183_v9  ;;  %2221 = vmatpush.bf16.msrb.mxu1 %v2184_v63  ;;  %v1985_v3 = vmul.f32 %v1977_v36, %v6363_v8  ;;  %v1984_v40 = vmul.f32 %v1979_v38, %v6364_v52 }
 0x4b8   :  { %v1990_v4 = vpack.c.bf16 %v1985_v3, %v1984_v40  ;;  %v2084_v40 = vmul.f32 %v2076_v55, %v6327_v32  ;;  %v2036_v55 = vunpack.c.l.b16 %v5243_v54 }
 0x4ba   :  { %2208 = vmatpush.bf16.msrb.mxu0 %v2163_v57  ;;  %2222 = vmatpush.bf16.msrb.mxu1 %v2164_v34  ;;  %v5404_v34 = vpack.c.bf16 %v5169_v60, %v5150_v53  ;;  %v2040_v60 = vunpack.c.l.b16 %v1990_v4  ;;  %v2041_v51 = vunpack.c.h.b16 %v1990_v4  ;;  %v2178_v4 = vunpack.c.h.b16 %v5300_v7 }
 0x4bb   :  { %v5372_v1 = vpop.permute.xlu2 %1934 }
 0x4bc   :  { %v1923_v49 = vpop.permute.xlu0 %1922  ;;  %v5374_v17 = vpop.permute.xlu1 %2396 }
 0x4bd   :  { %v1941_v9 = vsel %vm446_vm4, %v1923_v49, %v5356_v24  ;;  %v1943_v63 = vsel %vm446_vm4, %v5372_v1, %v1923_v49 }
 0x4be   :  { %v1949_v50 = vmul.f32 %v1941_v9, %v6365_v44  ;;  %v1948_v25 = vmul.f32 %v1943_v63, %v6366_v30 }
 0x4c0   :  { %v1954_v5 = vpack.c.bf16 %v1949_v50, %v1948_v25 }
 0x4c2   :  { %v2021_v8 = vunpack.c.h.b16 %v1954_v5 }
 0x4c3   :  { %v5376_v59 = vpop.permute.xlu2 %1894 }
 0x4c4   :  { %v5384_v10 = vpop.permute.xlu0 %2324  ;;  %v5386_v39 = vpop.permute.xlu1 %2360 }
 0x4cb   :  { %v5413_v3 = vpop.permute.xlu2 %2362 }
 0x4cc   :  { %v2070_v45 = vpop.permute.xlu0 %2069  ;;  %v2110_v57 = vpop.permute.xlu1 %2109 }
 0x4cd   :  { %v2078_v49 = vsel %vm600_vm2, %v2070_v45, %v5304_v14  ;;  %v2112_v36 = vsel %vm650_vm1, %v2106_v15, %v2110_v57  ;;  %v2118_v38 = vsel %vm650_vm1, %v2110_v57, %v2098_v46  ;;  %v2092_v14 = vpack.c.bf16 %v5093_v61, %v5085_v18 }
 0x4ce   :  { %v2083_v9 = vmul.f32 %v2078_v49, %v6362_v23  ;;  %v2125_v63 = vmul.f32 %v2112_v36, %v6367_v16  ;;  %v2126_v53 = vmul.f32 %v2118_v38, %v6368_v2  ;;  %v2135_v46 = vunpack.c.l.b16 %v5197_v56 }
 0x4cf   :  { %v2161_v57 = vunpack.c.l.b16 %v5404_v34  ;;  %v2037_v49 = vunpack.c.h.b16 %v5243_v54  ;;  %v2177_v36 = vunpack.c.l.b16 %v5300_v7  ;;  %v2136_v38 = vunpack.c.h.b16 %v5197_v56 }
 0x4d0   :  { %v2089_v15 = vpack.c.bf16 %v2084_v40, %v2083_v9  ;;  %v2130_v30 = vpack.c.bf16 %v2126_v53, %v2125_v63  ;;  %v2044_v61 = vpack.c.b16 %v2040_v60, %v2036_v55  ;;  %v2020_v9 = vunpack.c.l.b16 %v1954_v5 }
 0x4d1   :  { %v2045_v40 = vpack.c.b16 %v2041_v51, %v2037_v49  ;;  %v5439_v51 = vld [vmem:[#allocation5 + $0x38] sm:$0xff] }
 0x4d2   :  { %v2181_v50 = vunpack.c.l.b16 %v2130_v30  ;;  %v2139_v25 = vunpack.c.l.b16 %v2089_v15  ;;  %v2140_v2 = vunpack.c.h.b16 %v2089_v15  ;;  %v2182_v18 = vunpack.c.h.b16 %v2130_v30 }
 0x4d3   :  { %v5445_v15 = vpop.permute.xlu2 %2408 }
 0x4d4   :  { %v1967_v63 = vpop.permute.xlu0 %1966  ;;  %v2066_v53 = vpop.permute.xlu1 %2065  ;;  %v2143_v16 = vpack.c.b16 %v2139_v25, %v2135_v46  ;;  %v2144_v44 = vpack.c.b16 %v2140_v2, %v2136_v38  ;;  %v2185_v52 = vpack.c.b16 %v2181_v50, %v2177_v36  ;;  %v2162_v46 = vunpack.c.h.b16 %v5404_v34 }
 0x4d5   :  { %v1973_v54 = vsel %vm492_vm3, %v1967_v63, %v5368_v19  ;;  %v1975_v56 = vsel %vm492_vm3, %v5342_v11, %v1967_v63  ;;  %v2072_v30 = vsel %vm600_vm2, %v2066_v53, %v2070_v45  ;;  %v2074_v7 = vsel %vm600_vm2, %v5281_v31, %v2066_v53 }
 0x4d6   :  { %v1986_v2 = vmul.f32 %v1975_v56, %v4065_v27  ;;  %v1987_v5 = vmul.f32 %v1973_v54, %v4102_v33  ;;  %v2085_v60 = vmul.f32 %v2074_v7, %v4149_v29  ;;  %v2086_v19 = vmul.f32 %v2072_v30, %v4168_v42  ;;  %2209 = vmatpush.bf16.msrb.mxu0 %v2143_v16 }
 0x4d7   :  { %2223 = vmatpush.bf16.msrb.mxu1 %v2144_v44  ;;  %2235 = vmatpush.bf16.msrb.mxu2 %v2185_v52  ;;  %v2186_v11 = vpack.c.b16 %v2182_v18, %v2178_v4  ;;  %v2157_v45 = vunpack.c.l.b16 %v2092_v14  ;;  %v2016_v31 = vunpack.c.l.b16 %v5271_v35  ;;  %v2158_v36 = vunpack.c.h.b16 %v2092_v14 }
 0x4d8   :  { %v1991_v55 = vpack.c.bf16 %v1987_v5, %v1986_v2  ;;  %v2090_v49 = vpack.c.bf16 %v2086_v19, %v2085_v60  ;;  %v2017_v38 = vunpack.c.h.b16 %v5271_v35  ;;  %v2137_v25 = vunpack.c.l.b16 %v5320_v13 }
 0x4d9   :  { %2249 = vmatpush.bf16.msrb.mxu3 %v2186_v11  ;;  %v2165_v50 = vpack.c.b16 %v2161_v57, %v2157_v45  ;;  %v2024_v16 = vpack.c.b16 %v2020_v9, %v2016_v31  ;;  %v2138_v52 = vunpack.c.h.b16 %v5320_v13  ;;  %3376 = vmatmul.msk.bf16.vlgmr.msrb.gmra.mxu0 %vm748_vm7, %v5439_v51  ;;  %v2166_v35 = vpack.c.b16 %v2162_v46, %v2158_v36 }
 0x4da   :  { %2271 = vmatpush.bf16.msra.mxu0 %v2044_v61  ;;  %v2042_v44 = vunpack.c.l.b16 %v1991_v55  ;;  %v2025_v34 = vpack.c.b16 %v2021_v8, %v2017_v38  ;;  %v2141_v4 = vunpack.c.l.b16 %v2090_v49  ;;  %v2142_v18 = vunpack.c.h.b16 %v2090_v49  ;;  %3377 = vmatmul.msk.bf16.vlgmr.msrb.gmra.mxu1 %vm748_vm7, %v5439_v51 }
 0x4db   :  { %2285 = vmatpush.bf16.msra.mxu1 %v2045_v40  ;;  %v2043_v14 = vunpack.c.h.b16 %v1991_v55  ;;  %2236 = vmatpush.bf16.msrb.mxu2 %v2165_v50  ;;  %v2038_v57 = vunpack.c.l.b16 %v5245_v48  ;;  %v2039_v63 = vunpack.c.h.b16 %v5245_v48  ;;  %v5466_v5 = vpop.permute.xlu2 %2372  ;;  %v2018_v48 = vunpack.c.l.b16 %v5273_v22 }
 0x4dc   :  { %v1931_v61 = vpop.permute.xlu0 %1930  ;;  %v2401_v40 = vpop.permute.xlu1 %2400  ;;  %v2145_v13 = vpack.c.b16 %v2141_v4, %v2137_v25  ;;  %v2146_v9 = vpack.c.b16 %v2142_v18, %v2138_v52  ;;  %v2019_v60 = vunpack.c.h.b16 %v5273_v22  ;;  %v1903_v11 = vsel %vm400_vm5, %v5370_v12, %v5376_v59  ;;  %v6375_v52 = vld [vmem:[#allocation41_spill] sm:$0xff] }
 0x4dd   :  { %2250 = vmatpush.bf16.msrb.mxu3 %v2166_v35  ;;  %v1937_v8 = vsel %vm446_vm4, %v1931_v61, %v5372_v1  ;;  %v1939_v53 = vsel %vm446_vm4, %v5356_v24, %v1931_v61  ;;  %v2046_v30 = vpack.c.b16 %v2042_v44, %v2038_v57  ;;  %v2047_v7 = vpack.c.b16 %v2043_v14, %v2039_v63  ;;  %v6377_v63 = vld [vmem:[#allocation40_spill] sm:$0xff] }
 0x4de   :  { %2272 = vmatpush.bf16.msra.mxu0 %v2024_v16  ;;  %v1950_v54 = vmul.f32 %v1939_v53, %v4094_v28  ;;  %v1951_v56 = vmul.f32 %v1937_v8, %v4120_v26  ;;  %v1905_v1 = vsel %vm400_vm5, %v5324_v37, %v5370_v12  ;;  %v1914_v38 = vmul.f32 %v1903_v11, %v6346_v0 }
 0x4df   :  { %2286 = vmatpush.bf16.msra.mxu1 %v2025_v34  ;;  %2237 = vmatpush.bf16.msrb.mxu2 %v2145_v13  ;;  %v1913_v49 = vmul.f32 %v1905_v1, %v6338_v20  ;;  %v2474_v25 = vunpack.c.l.b16 %v5269_v47  ;;  %v1996_v44 = vunpack.c.l.b16 %v6375_v52  ;;  %v1997_v4 = vunpack.c.h.b16 %v6375_v52 }
 0x4e0   :  { %v1955_v2 = vpack.c.bf16 %v1951_v56, %v1950_v54  ;;  %v2417_v14 = vsel %vm980_vm6, %v5445_v15, %v5374_v17  ;;  %v2415_v35 = vsel %vm980_vm6, %v5374_v17, %v2401_v40 }
 0x4e1   :  { %2251 = vmatpush.bf16.msrb.mxu3 %v2146_v9 }
 0x4e2   :  { %3378 = vmatmul.msk.bf16.vlgmr.msrb.gmra.mxu2 %vm748_vm7, %v5439_v51  ;;  %v2022_v24 = vunpack.c.l.b16 %v1955_v2  ;;  %v2023_v19 = vunpack.c.h.b16 %v1955_v2  ;;  %v6378_v2 = vld [vmem:[#allocation18_spill] sm:$0xff] }
 0x4e3   :  { %2299 = vmatpush.bf16.msra.mxu2 %v2046_v30  ;;  %v5510_v57 = vpop.permute.xlu2 %2332  ;;  %v1999_v1 = vunpack.c.h.b16 %v6378_v2 }
 0x4e4   :  { %v2335_v45 = vpop.permute.xlu0 %2334  ;;  %v1899_v46 = vpop.permute.xlu1 %1898  ;;  %3379 = vmatmul.msk.bf16.vlgmr.msrb.gmra.mxu3 %vm748_vm7, %v5439_v51  ;;  %v2026_v31 = vpack.c.b16 %v2022_v24, %v2018_v48  ;;  %v2027_v55 = vpack.c.b16 %v2023_v19, %v2019_v60  ;;  %v1998_v48 = vunpack.c.l.b16 %v6378_v2  ;;  %v6379_v24 = vld [vmem:[#allocation36_spill] sm:$0xff]  ;;  %v6380_v19 = vld [vmem:[#allocation30_spill] sm:$0xff] }
 0x4e5   :  { %2313 = vmatpush.bf16.msra.mxu3 %v2047_v7  ;;  %v1901_v36 = vsel %vm400_vm5, %v5376_v59, %v1899_v46  ;;  %v1907_v22 = vsel %vm400_vm5, %v1899_v46, %v5324_v37  ;;  %v2374_v59 = vsel %vm934_vm8, %v5253_v21, %v5326_v41  ;;  %v2380_v37 = vsel %vm934_vm8, %v5326_v41, %v5233_v58  ;;  %v6376_v41 = vld [vmem:[#allocation39_spill] sm:$0xff] }
 0x4e6   :  { %v1912_v12 = vmul.f32 %v1907_v22, %v6341_v43  ;;  %v1915_v50 = vmul.f32 %v1901_v36, %v6345_v6  ;;  %v2384_v9 = vmul.f32 %v2374_v59, %v6376_v41  ;;  %v2385_v8 = vmul.f32 %v2380_v37, %v6377_v63  ;;  %v6381_v46 = vld [vmem:[#allocation31_spill] sm:$0xff]  ;;  %v3426_v36 = vld [vmem:[#allocation5 + $0x30] sm:$0xff]  ;;  %v6384_v37 = vld [vmem:[#allocation29_spill] sm:$0xff] }
 0x4e7   :  { %2300 = vmatpush.bf16.msra.mxu2 %v2026_v31  ;;  %v2425_v60 = vmul.f32 %v2417_v14, %v6379_v24  ;;  %v2422_v11 = vmul.f32 %v2415_v35, %v6380_v19  ;;  %v2475_v22 = vunpack.c.h.b16 %v5269_v47  ;;  %v2476_v47 = vunpack.c.l.b16 %v6384_v37 }
 0x4e8   :  { %v1918_v51 = vpack.c.bf16 %v1913_v49, %v1912_v12  ;;  %v1919_v16 = vpack.c.bf16 %v1915_v50, %v1914_v38  ;;  %v6383_v12 = vld [vmem:[#allocation37_spill] sm:$0xff]  ;;  %v2477_v52 = vunpack.c.h.b16 %v6384_v37 }
 0x4e9   :  { %2314 = vmatpush.bf16.msra.mxu3 %v2027_v55  ;;  %v6382_v55 = vld [vmem:[#allocation35_spill] sm:$0xff]  ;;  %v2344_v50 = vsel %vm888_vm9, %v2335_v45, %v6383_v12 }
 0x4ea   :  { %v2000_v34 = vunpack.c.l.b16 %v1918_v51  ;;  %v2001_v18 = vunpack.c.h.b16 %v1918_v51  ;;  %v2002_v61 = vunpack.c.l.b16 %v1919_v16  ;;  %v2003_v13 = vunpack.c.h.b16 %v1919_v16 }
 0x4eb   :  { %v2329_v2 = vpop.permute.xlu2 %2328 }
 0x4ec   :  { %v2405_v53 = vpop.permute.xlu0 %2404  ;;  %v5514_v54 = vpop.permute.xlu1 %2330  ;;  %v2004_v56 = vpack.c.b16 %v2000_v34, %v1996_v44  ;;  %v2005_v30 = vpack.c.b16 %v2001_v18, %v1997_v4  ;;  %v2007_v38 = vpack.c.b16 %v2003_v13, %v1999_v1  ;;  %v2391_v44 = vpack.c.bf16 %v2385_v8, %v2384_v9  ;;  %v6385_v13 = vld [vmem:[#allocation28_spill] sm:$0xff] }
 0x4ed   :  { %v2411_v7 = vsel %vm980_vm6, %v2405_v53, %v5445_v15  ;;  %v2413_v17 = vsel %vm980_vm6, %v2401_v40, %v2405_v53  ;;  %v2381_v15 = vsel %vm934_vm8, %v5466_v5, %v5386_v39  ;;  %v2006_v40 = vpack.c.b16 %v2002_v61, %v1998_v48 }
 0x4ee   :  { %v2423_v31 = vmul.f32 %v2413_v17, %v6381_v46  ;;  %v2424_v49 = vmul.f32 %v2411_v7, %v6382_v55  ;;  %2273 = vmatpush.bf16.msra.mxu0 %v2004_v56  ;;  %2287 = vmatpush.bf16.msra.mxu1 %v2005_v30  ;;  %v2338_v59 = vsel %vm888_vm9, %v5514_v54, %v2335_v45 }
 0x4ef   :  { %v2376_v34 = vsel %vm934_vm8, %v5413_v3, %v5253_v21  ;;  %2301 = vmatpush.bf16.msra.mxu2 %v2006_v40  ;;  %2315 = vmatpush.bf16.msra.mxu3 %v2007_v38  ;;  %v2378_v45 = vsel %vm934_vm8, %v5233_v58, %v5413_v3  ;;  %v2389_v61 = vmul.f32 %v2381_v15, %v6377_v63  ;;  %v6386_v21 = vld [vmem:[#allocation25_spill] sm:$0xff] }
 0x4f0   :  { %v2428_v51 = vpack.c.bf16 %v2423_v31, %v2422_v11  ;;  %v2429_v16 = vpack.c.bf16 %v2425_v60, %v2424_v49  ;;  %v2349_v9 = vmul.f32 %v2344_v50, %v6385_v13  ;;  %v2348_v8 = vmul.f32 %v2338_v59, %v6386_v21  ;;  %v6387_v31 = vld [vmem:[#allocation12_spill] sm:$0xff] }
 0x4f1   :  { %3384 = vmatmul.msk.bf16.vlgmr.msra.gmra.mxu0 %vm748_vm7, %v3426_v36  ;;  %3385 = vmatmul.msk.bf16.vlgmr.msra.gmra.mxu1 %vm748_vm7, %v3426_v36  ;;  %v2382_v49 = vmul.f32 %v2378_v45, %v6387_v31  ;;  %v2341_v15 = vsel %vm888_vm9, %v2329_v2, %v5510_v57  ;;  %v2343_v40 = vsel %vm888_vm9, %v5384_v10, %v2329_v2  ;;  %v2457_v59 = vunpack.c.h.b16 %v2391_v44 }
 0x4f2   :  { %v2478_v4 = vunpack.c.l.b16 %v2428_v51  ;;  %v2479_v18 = vunpack.c.h.b16 %v2428_v51  ;;  %v2480_v14 = vunpack.c.l.b16 %v2429_v16  ;;  %v2481_v35 = vunpack.c.h.b16 %v2429_v16  ;;  %3386 = vmatmul.msk.bf16.vlgmr.msra.gmra.mxu2 %vm748_vm7, %v3426_v36 }
 0x4f3   :  { %v2456_v51 = vunpack.c.l.b16 %v2391_v44 }
 0x4f4   :  { %v2369_v53 = vpop.permute.xlu0 %2368  ;;  %v2337_v56 = vpop.permute.xlu1 %2336  ;;  %3387 = vmatmul.msk.bf16.vlgmr.msra.gmra.mxu3 %vm748_vm7, %v3426_v36  ;;  %v2482_v30 = vpack.c.b16 %v2478_v4, %v2474_v25  ;;  %v2483_v7 = vpack.c.b16 %v2479_v18, %v2475_v22  ;;  %v2484_v17 = vpack.c.b16 %v2480_v14, %v2476_v47  ;;  %v2485_v1 = vpack.c.b16 %v2481_v35, %v2477_v52  ;;  %v6389_v52 = vld [vmem:[#allocation27_spill] sm:$0xff]  ;;  %v6390_v4 = vld [vmem:[#allocation17_spill] sm:$0xff] }
 0x4f5   :  { %v2375_v58 = vsel %vm934_vm8, %v2369_v53, %v5466_v5  ;;  %v2339_v3 = vsel %vm888_vm9, %v5510_v57, %v2337_v56  ;;  %v2345_v48 = vsel %vm888_vm9, %v2337_v56, %v5384_v10  ;;  %v6388_v5 = vld [vmem:[#allocation23_spill] sm:$0xff]  ;;  %v2355_v22 = vpack.c.bf16 %v2349_v9, %v2348_v8 }
 0x4f6   :  { %v2388_v60 = vmul.f32 %v2375_v58, %v6376_v41  ;;  %v2352_v25 = vmul.f32 %v2339_v3, %v6386_v21  ;;  %v2353_v11 = vmul.f32 %v2345_v48, %v6385_v13  ;;  %2506 = vmatpush.bf16.msrb.mxu0 %v2482_v30  ;;  %2520 = vmatpush.bf16.msrb.mxu1 %v2483_v7 }
 0x4f7   :  { %v2383_v36 = vmul.f32 %v2376_v34, %v6388_v5  ;;  %2534 = vmatpush.bf16.msrb.mxu2 %v2484_v17  ;;  %2548 = vmatpush.bf16.msrb.mxu3 %v2485_v1  ;;  %v2350_v34 = vmul.f32 %v2343_v40, %v6389_v52  ;;  %v2351_v18 = vmul.f32 %v2341_v15, %v6390_v4  ;;  %v2436_v14 = vunpack.c.l.b16 %v2355_v22 }
 0x4f8   :  { %v2393_v38 = vpack.c.bf16 %v2389_v61, %v2388_v60  ;;  %v2357_v50 = vpack.c.bf16 %v2353_v11, %v2352_v25  ;;  %v2437_v58 = vunpack.c.h.b16 %v2355_v22 }
 0x4f9   :  { %v2390_v47 = vpack.c.bf16 %v2383_v36, %v2382_v49  ;;  %v2356_v25 = vpack.c.bf16 %v2351_v18, %v2350_v34 }
 0x4fa   :  { %v2460_v16 = vunpack.c.l.b16 %v2393_v38  ;;  %v2461_v37 = vunpack.c.h.b16 %v2393_v38  ;;  %v2440_v8 = vunpack.c.l.b16 %v2357_v50  ;;  %v2441_v56 = vunpack.c.h.b16 %v2357_v50 }
 0x4fb   :  { %v2454_v60 = vunpack.c.l.b16 %v2390_v47  ;;  %v2455_v11 = vunpack.c.h.b16 %v2390_v47  ;;  %v2438_v22 = vunpack.c.l.b16 %v2356_v25  ;;  %v2439_v50 = vunpack.c.h.b16 %v2356_v25 }
 0x4fc   :  { %v2365_v35 = vpop.permute.xlu0 %2364  ;;  %v2327_v45 = vpop.permute.xlu1 %2326  ;;  %v2464_v9 = vpack.c.b16 %v2460_v16, %v2456_v51  ;;  %v2465_v57 = vpack.c.b16 %v2461_v37, %v2457_v59  ;;  %v2444_v48 = vpack.c.b16 %v2440_v8, %v2436_v14  ;;  %v2445_v1 = vpack.c.b16 %v2441_v56, %v2437_v58 }
 0x4fd   :  { %v2377_v10 = vsel %vm934_vm8, %v2365_v35, %v2369_v53  ;;  %v2379_v44 = vsel %vm934_vm8, %v5386_v39, %v2365_v35  ;;  %v2340_v61 = vsel %vm888_vm9, %v2327_v45, %v5514_v54  ;;  %v2342_v30 = vsel %vm888_vm9, %v6383_v12, %v2327_v45  ;;  %v3428_v54 = vld [vmem:[#allocation5 + $0x40] sm:$0xff] }
 0x4fe   :  { %v2386_v7 = vmul.f32 %v2379_v44, %v6387_v31  ;;  %v2387_v17 = vmul.f32 %v2377_v10, %v6388_v5  ;;  %v2346_v2 = vmul.f32 %v2342_v30, %v6389_v52  ;;  %v2347_v53 = vmul.f32 %v2340_v61, %v6390_v4  ;;  %2535 = vmatpush.bf16.msrb.mxu2 %v2464_v9  ;;  %v6394_v4 = vld [vmem:[#allocation24_spill] sm:$0xff] }
 0x4ff   :  { %2549 = vmatpush.bf16.msrb.mxu3 %v2465_v57 }
 0x500   :  { %v2392_v39 = vpack.c.bf16 %v2387_v17, %v2386_v7  ;;  %v2354_v3 = vpack.c.bf16 %v2347_v53, %v2346_v2 }
 0x502   :  { %2536 = vmatpush.bf16.msrb.mxu2 %v2444_v48  ;;  %v2458_v12 = vunpack.c.l.b16 %v2392_v39  ;;  %v2459_v49 = vunpack.c.h.b16 %v2392_v39  ;;  %v2434_v40 = vunpack.c.l.b16 %v2354_v3  ;;  %v2435_v38 = vunpack.c.h.b16 %v2354_v3 }
 0x503   :  { %2550 = vmatpush.bf16.msrb.mxu3 %v2445_v1 }
 0x504   :  { %v2462_v36 = vpack.c.b16 %v2458_v12, %v2454_v60  ;;  %v2463_v15 = vpack.c.b16 %v2459_v49, %v2455_v11  ;;  %v2442_v51 = vpack.c.b16 %v2438_v22, %v2434_v40  ;;  %v2443_v16 = vpack.c.b16 %v2439_v50, %v2435_v38 }
 0x505   :  { %3394 = vmatmul.msk.bf16.vlgmr.msrb.gmra.mxu2 %vm748_vm7, %v3428_v54 }
 0x506   :  { %3395 = vmatmul.msk.bf16.vlgmr.msrb.gmra.mxu3 %vm748_vm7, %v3428_v54  ;;  %2507 = vmatpush.bf16.msrb.mxu0 %v2462_v36 }
 0x507   :  { %2521 = vmatpush.bf16.msrb.mxu1 %v2463_v15 }
 0x50a   :  { %2508 = vmatpush.bf16.msrb.mxu0 %v2442_v51 }
 0x50b   :  { %2522 = vmatpush.bf16.msrb.mxu1 %v2443_v16 }
 0x50d   :  { %3392 = vmatmul.msk.bf16.vlgmr.msrb.gmra.mxu0 %vm748_vm7, %v3428_v54 }
 0x50e   :  { %3393 = vmatmul.msk.bf16.vlgmr.msrb.gmra.mxu1 %vm748_vm7, %v3428_v54  ;;  %v2568_v54 = vpop.permute.xlu0 %2567 }
 0x556   :  { %v2211_v59 = vpop.f32.mrf.mxu0 }
 0x557   :  { %v2225_v37 = vpop.f32.mrf.mxu1 }
 0x55e   :  { %v2213_v47 = vpop.f32.mrf.mxu0 }
 0x55f   :  { %v2227_v34 = vpop.f32.mrf.mxu1 }
 0x565   :  { %v2239_v18 = vpop.f32.mrf.mxu2 }
 0x567   :  { %v2253_v14 = vpop.f32.mrf.mxu3 }
 0x56d   :  { %v2241_v35 = vpop.f32.mrf.mxu2 }
 0x56e   :  { %v2275_v45 = vpop.f32.mrf.mxu0  ;;  %v2289_v9 = vpop.f32.mrf.mxu1 }
 0x56f   :  { %v2255_v57 = vpop.f32.mrf.mxu3  ;;  %v2276_v58 = vadd.f32 %v2275_v45, %v2211_v59  ;;  %v2290_v39 = vadd.f32 %v2289_v9, %v2225_v37 }
 0x575   :  { %v2303_v61 = vpop.f32.mrf.mxu2 }
 0x576   :  { %v2277_v8 = vpop.f32.mrf.mxu0  ;;  %v2291_v56 = vpop.f32.mrf.mxu1  ;;  %v2304_v36 = vadd.f32 %v2303_v61, %v2239_v18 }
 0x577   :  { %v2278_v10 = vadd.f32 %v2277_v8, %v2213_v47  ;;  %v2292_v44 = vadd.f32 %v2291_v56, %v2227_v34  ;;  %v2317_v30 = vpop.f32.mrf.mxu3 }
 0x578   :  { %v2318_v38 = vadd.f32 %v2317_v30, %v2253_v14 }
 0x57d   :  { %v2305_v7 = vpop.f32.mrf.mxu2 }
 0x57e   :  { %v5596_v2 = vadd.f32 %v2305_v7, %v2241_v35  ;;  %v2573_v35 = vpop.permute.xlu1 %2572 }
 0x57f   :  { %v2319_v17 = vpop.f32.mrf.mxu3 }
 0x580   :  { %v5598_v53 = vadd.f32 %v2319_v17, %v2255_v57 }
 0x588   :  { %v2538_v15 = vpop.f32.mrf.mxu2 }
 0x589   :  { %v2559_v40 = vadd.f32 %v2538_v15, %v2304_v36  ;;  %v2552_v50 = vpop.f32.mrf.mxu3 }
 0x58a   :  { %v2510_v3 = vpop.f32.mrf.mxu0  ;;  %v2560_v51 = vadd.f32 %v2552_v50, %v2318_v38 }
 0x58b   :  { %v2557_v48 = vadd.f32 %v2510_v3, %v2276_v58  ;;  %v2524_v1 = vpop.f32.mrf.mxu1  ;;  %v2577_v22 = vadd.f32 %v2568_v54, %v2559_v40 }
 0x58c   :  { %v2558_v60 = vadd.f32 %v2524_v1, %v2290_v39  ;;  %v2578_v59 = vadd.f32 %v2568_v54, %v2560_v51 }
 0x58d   :  { %v2575_v25 = vadd.f32 %v2568_v54, %v2557_v48  ;;  %v5622_v16 = vmax.f32 %v2577_v22, 0.0 }
 0x58e   :  { %v2576_v12 = vadd.f32 %v2568_v54, %v2558_v60  ;;  %v5630_v37 = vmax.f32 %v2578_v59, 0.0 }
 0x58f   :  { %v5600_v11 = vmax.f32 %v2575_v25, 0.0 }
 0x590   :  { %v5602_v49 = vmax.f32 %v2576_v12, 0.0  ;;  %v2540_v56 = vpop.f32.mrf.mxu2 }
 0x591   :  { %2802 = vrot.lane.b32.xlu2 %v5600_v11, %s3594_s3  ;;  %v2554_v17 = vpop.f32.mrf.mxu3 }
 0x592   :  { %2668 = vrot.lane.b32.xlu0 %v5602_v49, %s3593_s2  ;;  %2766 = vrot.lane.b32.xlu1 %v5602_v49, %s3597_s21  ;;  %v2512_v34 = vpop.f32.mrf.mxu0 }
 0x593   :  { %v2526_v47 = vpop.f32.mrf.mxu1  ;;  %v2561_v14 = vadd.f32 %v2512_v34, %v2278_v10  ;;  %v2563_v10 = vadd.f32 %v2540_v56, %v5596_v2  ;;  %v2564_v2 = vadd.f32 %v2554_v17, %v5598_v53 }
 0x594   :  { %v2562_v18 = vadd.f32 %v2526_v47, %v2292_v44 }
 0x595   :  { %v2579_v9 = vadd.f32 %v2573_v35, %v2561_v14  ;;  %v2581_v44 = vadd.f32 %v2573_v35, %v2563_v10  ;;  %v2582_v58 = vadd.f32 %v2573_v35, %v2564_v2 }
 0x596   :  { %v2580_v45 = vadd.f32 %v2573_v35, %v2562_v18 }
 0x597   :  { %v5664_v8 = vmax.f32 %v2579_v9, 0.0  ;;  %v5687_v30 = vmax.f32 %v2581_v44, 0.0  ;;  %v5706_v3 = vmax.f32 %v2582_v58, 0.0  ;;  %v6391_v58 = vld [vmem:[#allocation21_spill] sm:$0xff] }
 0x598   :  { %v5662_v57 = vmax.f32 %v2580_v45, 0.0 }
 0x599   :  { %2806 = vrot.lane.b32.xlu2 %v5602_v49, %s3594_s3 }
 0x59a   :  { %2632 = vrot.lane.b32.xlu0 %v5602_v49, %s3595_s20  ;;  %2762 = vrot.lane.b32.xlu1 %v5600_v11, %s3597_s21 }
 0x5a1   :  { %2596 = vrot.lane.b32.xlu2 %v5602_v49, %s3596_s1 }
 0x5a2   :  { %2664 = vrot.lane.b32.xlu0 %v5600_v11, %s3593_s2  ;;  %2592 = vrot.lane.b32.xlu1 %v5600_v11, %s3596_s1 }
 0x5a9   :  { %2628 = vrot.lane.b32.xlu2 %v5600_v11, %s3595_s20 }
 0x5aa   :  { %3093 = vrot.lane.b32.xlu0 %v5600_v11, %s3598_s6  ;;  %2810 = vrot.lane.b32.xlu1 %v5622_v16, %s3594_s3 }
 0x5b1   :  { %2774 = vrot.lane.b32.xlu2 %v5630_v37, %s3597_s21 }
 0x5b2   :  { %3057 = vrot.lane.b32.xlu0 %v5600_v11, %s3599_s22  ;;  %2676 = vrot.lane.b32.xlu1 %v5630_v37, %s3593_s2 }
 0x5b9   :  { %2672 = vrot.lane.b32.xlu2 %v5622_v16, %s3593_s2 }
 0x5ba   :  { %3097 = vrot.lane.b32.xlu0 %v5602_v49, %s3598_s6  ;;  %2640 = vrot.lane.b32.xlu1 %v5630_v37, %s3595_s20 }
 0x5c1   :  { %2636 = vrot.lane.b32.xlu2 %v5622_v16, %s3595_s20 }
 0x5c2   :  { %2814 = vrot.lane.b32.xlu0 %v5630_v37, %s3594_s3  ;;  %2600 = vrot.lane.b32.xlu1 %v5622_v16, %s3596_s1 }
 0x5c9   :  { %3101 = vrot.lane.b32.xlu2 %v5622_v16, %s3598_s6 }
 0x5ca   :  { %2770 = vrot.lane.b32.xlu0 %v5622_v16, %s3597_s21  ;;  %3105 = vrot.lane.b32.xlu1 %v5630_v37, %s3598_s6 }
 0x5d1   :  { %3065 = vrot.lane.b32.xlu2 %v5622_v16, %s3599_s22 }
 0x5d2   :  { %2604 = vrot.lane.b32.xlu0 %v5630_v37, %s3596_s1  ;;  %3069 = vrot.lane.b32.xlu1 %v5630_v37, %s3599_s22 }
 0x5d9   :  { %2768 = vrot.lane.b32.xlu2 %v5662_v57, %s3597_s21 }
 0x5da   :  { %2804 = vrot.lane.b32.xlu0 %v5664_v8, %s3594_s3  ;;  %2670 = vrot.lane.b32.xlu1 %v5662_v57, %s3593_s2 }
 0x5e1   :  { %2764 = vrot.lane.b32.xlu2 %v5664_v8, %s3597_s21 }
 0x5e2   :  { %2808 = vrot.lane.b32.xlu0 %v5662_v57, %s3594_s3  ;;  %2634 = vrot.lane.b32.xlu1 %v5662_v57, %s3595_s20 }
 0x5e9   :  { %2594 = vrot.lane.b32.xlu2 %v5664_v8, %s3596_s1 }
 0x5ea   :  { %2598 = vrot.lane.b32.xlu0 %v5662_v57, %s3596_s1  ;;  %2666 = vrot.lane.b32.xlu1 %v5664_v8, %s3593_s2 }
 0x5eb   :  { %v5685_v61 = vpop.permute.xlu2 %2802 }
 0x5f1   :  { %2812 = vrot.lane.b32.xlu2 %v5687_v30, %s3594_s3 }
 0x5f2   :  { %2630 = vrot.lane.b32.xlu0 %v5664_v8, %s3595_s20  ;;  %3095 = vrot.lane.b32.xlu1 %v5664_v8, %s3598_s6 }
 0x5f3   :  { %v5695_v7 = vpop.permute.xlu2 %2806 }
 0x5f9   :  { %3021 = vrot.lane.b32.xlu2 %v5600_v11, %s3600_s23 }
 0x5fa   :  { %3023 = vrot.lane.b32.xlu0 %v5664_v8, %s3600_s23  ;;  %3059 = vrot.lane.b32.xlu1 %v5664_v8, %s3599_s22 }
 0x5fb   :  { %v5704_v39 = vpop.permute.xlu2 %2596 }
 0x601   :  { %2678 = vrot.lane.b32.xlu2 %v5706_v3, %s3593_s2 }
 0x602   :  { %2776 = vrot.lane.b32.xlu0 %v5706_v3, %s3597_s21  ;;  %2816 = vrot.lane.b32.xlu1 %v5706_v3, %s3594_s3 }
 0x603   :  { %v2629_v53 = vpop.permute.xlu2 %2628 }
 0x604   :  { %v2669_v48 = vpop.permute.xlu0 %2668  ;;  %v5714_v1 = vpop.permute.xlu1 %2766 }
 0x609   :  { %2642 = vrot.lane.b32.xlu2 %v5706_v3, %s3595_s20 }
 0x60a   :  { %2674 = vrot.lane.b32.xlu0 %v5687_v30, %s3593_s2  ;;  %2772 = vrot.lane.b32.xlu1 %v5687_v30, %s3597_s21  ;;  %s3291_s2 = sshll.u32 %s3601_s4, 4  ;;  %s3292_s2 = int_to_ptr.vmem [resolvable:$true] %s3291_s2 }
 0x60b   :  { %v5722_v54 = vpop.permute.xlu2 %2774 }
 0x60c   :  { %v2633_v60 = vpop.permute.xlu0 %2632  ;;  %v2763_v25 = vpop.permute.xlu1 %2762 }
 0x60d   :  { %v2648_v12 = vsel %vm446_vm4, %v2629_v53, %v2633_v60  ;;  %v2782_v36 = vsel %vm600_vm2, %v2763_v25, %v5714_v1  ;;  %v2784_v15 = vsel %vm600_vm2, %v5722_v54, %v2763_v25  ;;  %v6392_v25 = vld [vmem:[#allocation22_spill] sm:$0xff] }
 0x60e   :  { %v2787_v40 = vmul.f32 %v2782_v36, %v6327_v32  ;;  %v2786_v38 = vmul.f32 %v2784_v15, %v6362_v23 }
 0x610   :  { %v5734_v22 = vpack.c.bf16 %v2787_v40, %v2786_v38 }
 0x611   :  { %2602 = vrot.lane.b32.xlu2 %v5687_v30, %s3596_s1 }
 0x612   :  { %2638 = vrot.lane.b32.xlu0 %v5687_v30, %s3595_s20  ;;  %3099 = vrot.lane.b32.xlu1 %v5662_v57, %s3598_s6 }
 0x613   :  { %v2673_v50 = vpop.permute.xlu2 %2672 }
 0x614   :  { %v2665_v51 = vpop.permute.xlu0 %2664  ;;  %v5742_v59 = vpop.permute.xlu1 %2592  ;;  %v2682_v47 = vsel %vm492_vm3, %v2669_v48, %v2673_v50 }
 0x615   :  { %v2684_v34 = vsel %vm492_vm3, %v2665_v51, %v2669_v48  ;;  %v5752_v18 = vsel %vm400_vm5, %v5742_v59, %v5704_v39 }
 0x616   :  { %v2689_v48 = vmul.f32 %v2684_v34, %v6391_v58 }
 0x619   :  { %3061 = vrot.lane.b32.xlu2 %v5602_v49, %s3599_s22 }
 0x61a   :  { %3033 = vrot.lane.b32.xlu0 %v5630_v37, %s3600_s23  ;;  %2606 = vrot.lane.b32.xlu1 %v5706_v3, %s3596_s1  ;;  %s3293_s1 = sshll.u32 %s6149_s8, 4  ;;  %s3294_s1 = int_to_ptr.hbm [resolvable:$true] %s3293_s1 }
 0x61b   :  { %v2637_v14 = vpop.permute.xlu2 %2636 }
 0x61c   :  { %v3094_v35 = vpop.permute.xlu0 %3093  ;;  %v5760_v45 = vpop.permute.xlu1 %2810  ;;  %v2646_v9 = vsel %vm446_vm4, %v2633_v60, %v2637_v14  ;;  %v2690_v60 = vmul.f32 %v2682_v47, %v4065_v27 }
 0x61d   :  { %v2654_v34 = vmul.f32 %v2646_v9, %v4094_v28 }
 0x621   :  { %3107 = vrot.lane.b32.xlu2 %v5706_v3, %s3598_s6 }
 0x622   :  { %3103 = vrot.lane.b32.xlu0 %v5687_v30, %s3598_s6  ;;  %3029 = vrot.lane.b32.xlu1 %v5622_v16, %s3600_s23 }
 0x623   :  { %v3102_v56 = vpop.permute.xlu2 %3101 }
 0x624   :  { %v5770_v10 = vpop.permute.xlu0 %3057  ;;  %v2677_v44 = vpop.permute.xlu1 %2676 }
 0x625   :  { %v2680_v17 = vsel %vm492_vm3, %v2673_v50, %v2677_v44  ;;  %v2686_v2 = vsel %vm492_vm3, %v2677_v44, %v2665_v51  ;;  %v6393_v51 = vld [vmem:[#allocation26_spill] sm:$0xff] }
 0x626   :  { %v2688_v36 = vmul.f32 %v2686_v2, %v6392_v25  ;;  %v2691_v15 = vmul.f32 %v2680_v17, %v4102_v33  ;;  %v2653_v47 = vmul.f32 %v2648_v12, %v6393_v51 }
 0x628   :  { %v5780_v40 = vpack.c.bf16 %v2689_v48, %v2688_v36  ;;  %v5782_v38 = vpack.c.bf16 %v2691_v15, %v2690_v60 }
 0x629   :  { %3071 = vrot.lane.b32.xlu2 %v5706_v3, %s3599_s22 }
 0x62a   :  { %3067 = vrot.lane.b32.xlu0 %v5687_v30, %s3599_s22  ;;  %3035 = vrot.lane.b32.xlu1 %v5706_v3, %s3600_s23 }
 0x62b   :  { %v5790_v50 = vpop.permute.xlu2 %3065 }
 0x62c   :  { %v3098_v44 = vpop.permute.xlu0 %3097  ;;  %v2641_v17 = vpop.permute.xlu1 %2640 }
 0x62d   :  { %v3111_v2 = vsel %vm980_vm6, %v3098_v44, %v3102_v56  ;;  %v3113_v48 = vsel %vm980_vm6, %v3094_v35, %v3098_v44  ;;  %v2644_v60 = vsel %vm446_vm4, %v2637_v14, %v2641_v17  ;;  %v2650_v36 = vsel %vm446_vm4, %v2641_v17, %v2629_v53  ;;  %v6395_v17 = vld [vmem:[#allocation32_spill] sm:$0xff] }
 0x62e   :  { %v3117_v15 = vmul.f32 %v3113_v48, %v6380_v19  ;;  %v3118_v12 = vmul.f32 %v3111_v2, %v6381_v46  ;;  %v2652_v9 = vmul.f32 %v2650_v36, %v6394_v4  ;;  %v2655_v52 = vmul.f32 %v2644_v60, %v4120_v26  ;;  %v6396_v48 = vld [vmem:[#allocation33_spill] sm:$0xff]  ;;  %v2591_v36 = vld [vmem:[%s6148_s7] sm:$0xff] }
 0x630   :  { %v5806_v5 = vpack.c.bf16 %v3118_v12, %v3117_v15  ;;  %v5808_v31 = vpack.c.bf16 %v2653_v47, %v2652_v9  ;;  %v5810_v21 = vpack.c.bf16 %v2655_v52, %v2654_v34 }
 0x631   :  { %3031 = vrot.lane.b32.xlu2 %v5687_v30, %s3600_s23 }
 0x632   :  { %3063 = vrot.lane.b32.xlu0 %v5662_v57, %s3599_s22  ;;  %3025 = vrot.lane.b32.xlu1 %v5602_v49, %s3600_s23 }
 0x633   :  { %v5818_v53 = vpop.permute.xlu2 %2768 }
 0x634   :  { %v2815_v14 = vpop.permute.xlu0 %2814  ;;  %v2601_v44 = vpop.permute.xlu1 %2600 }
 0x635   :  { %v2818_v47 = vsel %vm650_vm1, %v5760_v45, %v2815_v14  ;;  %v2824_v52 = vsel %vm650_vm1, %v2815_v14, %v5685_v61  ;;  %v2610_v34 = vsel %vm400_vm5, %v5704_v39, %v2601_v44 }
 0x636   :  { %v2828_v2 = vmul.f32 %v2818_v47, %v6395_v17  ;;  %v2829_v60 = vmul.f32 %v2824_v52, %v6396_v48 }
 0x638   :  { %v5834_v15 = vpack.c.bf16 %v2829_v60, %v2828_v2 }
 0x639   :  { %3027 = vrot.lane.b32.xlu2 %v5662_v57, %s3600_s23 }
 0x63a   :  { %3258 = vperm.xlu0 %3447, %v2591_v36  }
 0x63b   :  { %v5838_v12 = vpop.permute.xlu2 %2764 }
 0x63c   :  { %v2771_v9 = vpop.permute.xlu0 %2770  ;;  %v3106_v14 = vpop.permute.xlu1 %3105 }
 0x63d   :  { %v2778_v39 = vsel %vm600_vm2, %v2771_v9, %v5722_v54  ;;  %v2780_v47 = vsel %vm600_vm2, %v5714_v1, %v2771_v9  ;;  %v3109_v52 = vsel %vm980_vm6, %v3102_v56, %v3106_v14  ;;  %v3115_v2 = vsel %vm980_vm6, %v3106_v14, %v3094_v35 }
 0x63e   :  { %v2788_v60 = vmul.f32 %v2780_v47, %v4149_v29  ;;  %v2789_v36 = vmul.f32 %v2778_v39, %v4168_v42  ;;  %v3119_v13 = vmul.f32 %v3109_v52, %v6382_v55  ;;  %v3120_v46 = vmul.f32 %v3115_v2, %v6379_v24 }
 0x63f   :  { %v2617_v14 = vmul.f32 %v5752_v18, %v6338_v20  ;;  %v2618_v39 = vmul.f32 %v2610_v34, %v6346_v0  ;;  %v2822_v18 = vsel %vm650_vm1, %v5685_v61, %v5695_v7  ;;  %v6400_v34 = vld [vmem:[#allocation14_spill] sm:$0xff] }
 0x640   :  { %v5854_v19 = vpack.c.bf16 %v2789_v36, %v2788_v60  ;;  %v5856_v54 = vpack.c.bf16 %v3120_v46, %v3119_v13 }
 0x642   :  { %6397 = vst [vmem:[#allocation42_spill] sm:$0xff] %v5856_v54 }
 0x643   :  { %v5858_v63 = vpop.permute.xlu2 %2594 }
 0x644   :  { %v2605_v1 = vpop.permute.xlu0 %2604  ;;  %v5860_v9 = vpop.permute.xlu1 %3069 }
 0x645   :  { %v2608_v35 = vsel %vm400_vm5, %v2601_v44, %v2605_v1  ;;  %v2614_v56 = vsel %vm400_vm5, %v2605_v1, %v5742_v59  ;;  %v2820_v59 = vsel %vm650_vm1, %v5695_v7, %v5760_v45 }
 0x646   :  { %v2616_v46 = vmul.f32 %v2614_v56, %v6341_v43  ;;  %v2619_v13 = vmul.f32 %v2608_v35, %v6345_v6  ;;  %v2827_v36 = vmul.f32 %v2820_v59, %v6400_v34  ;;  %v6402_v35 = vld [vmem:[#allocation15_spill] sm:$0xff]  ;;  %v2800_v59 = vpack.c.bf16 %v5662_v57, %v5664_v8 }
 0x647   :  { %v2826_v56 = vmul.f32 %v2822_v18, %v6402_v35  ;;  %v2798_v18 = vpack.c.bf16 %v5602_v49, %v5600_v11 }
 0x648   :  { %v5872_v47 = vpack.c.bf16 %v2617_v14, %v2616_v46  ;;  %v5874_v52 = vpack.c.bf16 %v2619_v13, %v2618_v39 }
 0x649   :  { %v2834_v13 = vpack.c.bf16 %v2827_v36, %v2826_v56  ;;  %v2863_v57 = vunpack.c.h.b16 %v2798_v18 }
 0x64a   :  { %6398 = vst [vmem:[#allocation38_spill] sm:$0xff] %v5872_v47 }
 0x64b   :  { %6399 = vst [vmem:[#allocation34_spill] sm:$0xff] %v5874_v52  ;;  %v2813_v2 = vpop.permute.xlu2 %2812  ;;  %v2883_v55 = vunpack.c.h.b16 %v2834_v13 }
 0x64c   :  { %v2805_v60 = vpop.permute.xlu0 %2804  ;;  %v5876_v44 = vpop.permute.xlu1 %2670 }
 0x653   :  { %v5887_v1 = vpop.permute.xlu2 %3021 }
 0x654   :  { %6401 = vst [vmem:[#allocation43_spill] sm:$0xff] %v5887_v1  ;;  %v2809_v14 = vpop.permute.xlu0 %2808  ;;  %v5890_v39 = vpop.permute.xlu1 %2634  ;;  %v2882_v1 = vunpack.c.l.b16 %v2834_v13 }
 0x655   :  { %v2821_v46 = vsel %vm650_vm1, %v2809_v14, %v2813_v2  ;;  %v2823_v45 = vsel %vm650_vm1, %v2805_v60, %v2809_v14  ;;  %v2866_v14 = vunpack.c.l.b16 %v2800_v59 }
 0x656   :  { %v2830_v54 = vmul.f32 %v2823_v45, %v6402_v35  ;;  %v2831_v61 = vmul.f32 %v2821_v46, %v6400_v34  ;;  %v2867_v34 = vunpack.c.h.b16 %v2800_v59 }
 0x658   :  { %v2836_v7 = vpack.c.bf16 %v2831_v61, %v2830_v54  ;;  %v2862_v54 = vunpack.c.l.b16 %v2798_v18  ;;  %v2871_v46 = vpack.c.b16 %v2867_v34, %v2863_v57  ;;  %v5938_v34 = vpack.c.bf16 %v5706_v3, %v5687_v30 }
 0x65a   :  { %v2886_v24 = vunpack.c.l.b16 %v2836_v7  ;;  %v2887_v52 = vunpack.c.h.b16 %v2836_v7  ;;  %v2870_v8 = vpack.c.b16 %v2866_v14, %v2862_v54 }
 0x65b   :  { %v5902_v41 = vpop.permute.xlu2 %2678 }
 0x65c   :  { %v5904_v47 = vpop.permute.xlu0 %2598  ;;  %v2667_v36 = vpop.permute.xlu1 %2666  ;;  %v2890_v56 = vpack.c.b16 %v2886_v24, %v2882_v1  ;;  %v2891_v35 = vpack.c.b16 %v2887_v52, %v2883_v55 }
 0x65d   :  { %v2685_v24 = vsel %vm492_vm3, %v2667_v36, %v5876_v44  ;;  %v2687_v55 = vsel %vm492_vm3, %v5902_v41, %v2667_v36  ;;  %v2783_v36 = vsel %vm600_vm2, %v5838_v12, %v5818_v53 }
 0x65e   :  { %2914 = vmatpush.bf16.msra.mxu0 %v2890_v56  ;;  %2927 = vmatpush.bf16.msra.mxu1 %v2891_v35  ;;  %v2693_v61 = vmul.f32 %v2685_v24, %v6391_v58  ;;  %v2692_v7 = vmul.f32 %v2687_v55, %v6392_v25 }
 0x660   :  { %v2698_v56 = vpack.c.bf16 %v2693_v61, %v2692_v7  ;;  %v2868_v7 = vunpack.c.l.b16 %v5938_v34 }
 0x662   :  { %2915 = vmatpush.bf16.msra.mxu0 %v2870_v8  ;;  %2928 = vmatpush.bf16.msra.mxu1 %v2871_v46  ;;  %v2748_v3 = vunpack.c.l.b16 %v2698_v56  ;;  %v2749_v24 = vunpack.c.h.b16 %v2698_v56 }
 0x663   :  { %v5906_v11 = vpop.permute.xlu2 %2642 }
 0x664   :  { %v2631_v49 = vpop.permute.xlu0 %2630  ;;  %v5908_v45 = vpop.permute.xlu1 %3095 }
 0x665   :  { %v2649_v59 = vsel %vm446_vm4, %v2631_v49, %v5890_v39  ;;  %v2651_v18 = vsel %vm446_vm4, %v5906_v11, %v2631_v49 }
 0x666   :  { %v2657_v35 = vmul.f32 %v2649_v59, %v6393_v51  ;;  %v2656_v58 = vmul.f32 %v2651_v18, %v6394_v4  ;;  %v2791_v4 = vmul.f32 %v2783_v36, %v6327_v32  ;;  %v2744_v32 = vunpack.c.l.b16 %v5780_v40 }
 0x667   :  { %v2885_v59 = vunpack.c.h.b16 %v5834_v15 }
 0x668   :  { %v2662_v55 = vpack.c.bf16 %v2657_v35, %v2656_v58 }
 0x66a   :  { %v2728_v58 = vunpack.c.l.b16 %v2662_v55 }
 0x66b   :  { %v5910_v13 = vpop.permute.xlu2 %2602 }
 0x66c   :  { %v5918_v52 = vpop.permute.xlu0 %3023  ;;  %v5920_v1 = vpop.permute.xlu1 %3059 }
 0x673   :  { %v5947_v46 = vpop.permute.xlu2 %3061 }
 0x674   :  { %v2777_v14 = vpop.permute.xlu0 %2776  ;;  %v2817_v25 = vpop.permute.xlu1 %2816 }
 0x675   :  { %v2785_v54 = vsel %vm600_vm2, %v2777_v14, %v5838_v12  ;;  %v2819_v57 = vsel %vm650_vm1, %v2813_v2, %v2817_v25  ;;  %v2825_v8 = vsel %vm650_vm1, %v2817_v25, %v2805_v60  ;;  %v2799_v12 = vpack.c.bf16 %v5630_v37, %v5622_v16 }
 0x676   :  { %v2790_v51 = vmul.f32 %v2785_v54, %v6362_v23  ;;  %v2832_v49 = vmul.f32 %v2819_v57, %v6395_v17  ;;  %v2833_v30 = vmul.f32 %v2825_v8, %v6396_v48  ;;  %v2842_v60 = vunpack.c.l.b16 %v5734_v22 }
 0x677   :  { %v2745_v23 = vunpack.c.h.b16 %v5780_v40  ;;  %v2884_v17 = vunpack.c.l.b16 %v5834_v15  ;;  %v2843_v48 = vunpack.c.h.b16 %v5734_v22  ;;  %v2752_v37 = vpack.c.b16 %v2748_v3, %v2744_v32 }
 0x678   :  { %v2796_v2 = vpack.c.bf16 %v2791_v4, %v2790_v51  ;;  %v2837_v61 = vpack.c.bf16 %v2833_v30, %v2832_v49  ;;  %v2729_v51 = vunpack.c.h.b16 %v2662_v55  ;;  %v3430_v30 = vld [vmem:[#allocation7 + $0x8] sm:$0xff] }
 0x679   :  { %v2753_v35 = vpack.c.b16 %v2749_v24, %v2745_v23  ;;  %v2844_v23 = vunpack.c.l.b16 %v5854_v19 }
 0x67a   :  { %v2888_v18 = vunpack.c.l.b16 %v2837_v61  ;;  %v2846_v36 = vunpack.c.l.b16 %v2796_v2  ;;  %v2847_v56 = vunpack.c.h.b16 %v2796_v2  ;;  %v2889_v16 = vunpack.c.h.b16 %v2837_v61 }
 0x67b   :  { %v5977_v2 = vpop.permute.xlu2 %3107  ;;  %v2869_v61 = vunpack.c.h.b16 %v5938_v34 }
 0x67c   :  { %v2675_v25 = vpop.permute.xlu0 %2674  ;;  %v2773_v54 = vpop.permute.xlu1 %2772  ;;  %v2850_v57 = vpack.c.b16 %v2846_v36, %v2842_v60  ;;  %v2851_v8 = vpack.c.b16 %v2847_v56, %v2843_v48  ;;  %v2892_v4 = vpack.c.b16 %v2888_v18, %v2884_v17  ;;  %v2845_v17 = vunpack.c.h.b16 %v5854_v19 }
 0x67d   :  { %v2681_v40 = vsel %vm492_vm3, %v2675_v25, %v5902_v41  ;;  %v2683_v22 = vsel %vm492_vm3, %v5876_v44, %v2675_v25  ;;  %v2779_v15 = vsel %vm600_vm2, %v2773_v54, %v2777_v14  ;;  %v2781_v49 = vsel %vm600_vm2, %v5818_v53, %v2773_v54 }
 0x67e   :  { %v2694_v3 = vmul.f32 %v2683_v22, %v4065_v27  ;;  %v2695_v24 = vmul.f32 %v2681_v40, %v4102_v33  ;;  %v2792_v55 = vmul.f32 %v2781_v49, %v4149_v29  ;;  %v2793_v41 = vmul.f32 %v2779_v15, %v4168_v42  ;;  %2916 = vmatpush.bf16.msra.mxu0 %v2850_v57 }
 0x67f   :  { %2929 = vmatpush.bf16.msra.mxu1 %v2851_v8  ;;  %2940 = vmatpush.bf16.msra.mxu2 %v2892_v4  ;;  %v2893_v44 = vpack.c.b16 %v2889_v16, %v2885_v59  ;;  %v2864_v14 = vunpack.c.l.b16 %v2799_v12  ;;  %v2724_v53 = vunpack.c.l.b16 %v5808_v31  ;;  %v2865_v33 = vunpack.c.h.b16 %v2799_v12 }
 0x680   :  { %v2699_v60 = vpack.c.bf16 %v2695_v24, %v2694_v3  ;;  %v2797_v32 = vpack.c.bf16 %v2793_v41, %v2792_v55  ;;  %v2725_v27 = vunpack.c.h.b16 %v5808_v31  ;;  %v2746_v31 = vunpack.c.l.b16 %v5782_v38 }
 0x681   :  { %2953 = vmatpush.bf16.msra.mxu3 %v2893_v44  ;;  %v2872_v29 = vpack.c.b16 %v2868_v7, %v2864_v14  ;;  %v2732_v42 = vpack.c.b16 %v2728_v58, %v2724_v53  ;;  %3400 = vmatmul.msk.bf16.vlgmr.msra.gmra.mxu0 %vm748_vm7, %v3430_v30  ;;  %v2873_v12 = vpack.c.b16 %v2869_v61, %v2865_v33  ;;  %v2747_v19 = vunpack.c.h.b16 %v5782_v38 }
 0x682   :  { %2974 = vmatpush.bf16.msrb.mxu0 %v2752_v37  ;;  %v2750_v48 = vunpack.c.l.b16 %v2699_v60  ;;  %v2733_v34 = vpack.c.b16 %v2729_v51, %v2725_v27  ;;  %v2848_v59 = vunpack.c.l.b16 %v2797_v32  ;;  %v2849_v18 = vunpack.c.h.b16 %v2797_v32  ;;  %3401 = vmatmul.msk.bf16.vlgmr.msra.gmra.mxu1 %vm748_vm7, %v3430_v30 }
 0x683   :  { %2987 = vmatpush.bf16.msrb.mxu1 %v2753_v35  ;;  %v2751_v36 = vunpack.c.h.b16 %v2699_v60  ;;  %2941 = vmatpush.bf16.msra.mxu2 %v2872_v29  ;;  %v5996_v51 = vpop.permute.xlu2 %3071  ;;  %v2726_v38 = vunpack.c.l.b16 %v5810_v21  ;;  %v2611_v40 = vsel %vm400_vm5, %v5904_v47, %v5910_v13  ;;  %v3116_v60 = vsel %vm980_vm6, %v5977_v2, %v5908_v45 }
 0x684   :  { %v2639_v7 = vpop.permute.xlu0 %2638  ;;  %v3100_v56 = vpop.permute.xlu1 %3099  ;;  %v2852_v16 = vpack.c.b16 %v2848_v59, %v2844_v23  ;;  %v2853_v37 = vpack.c.b16 %v2849_v18, %v2845_v17  ;;  %v2754_v57 = vpack.c.b16 %v2750_v48, %v2746_v31  ;;  %v2622_v41 = vmul.f32 %v2611_v40, %v6346_v0  ;;  %v6405_v23 = vld [vmem:[#allocation40_spill] sm:$0xff] }
 0x685   :  { %2954 = vmatpush.bf16.msra.mxu3 %v2873_v12  ;;  %v2645_v35 = vsel %vm446_vm4, %v2639_v7, %v5906_v11  ;;  %v2647_v58 = vsel %vm446_vm4, %v5890_v39, %v2639_v7  ;;  %v2755_v8 = vpack.c.b16 %v2751_v36, %v2747_v19  ;;  %v2613_v11 = vsel %vm400_vm5, %v5858_v63, %v5904_v47  ;;  %v6406_v12 = vld [vmem:[#allocation34_spill] sm:$0xff] }
 0x686   :  { %2975 = vmatpush.bf16.msrb.mxu0 %v2732_v42  ;;  %v2658_v25 = vmul.f32 %v2647_v58, %v4094_v28  ;;  %v2659_v54 = vmul.f32 %v2645_v35, %v4120_v26  ;;  %v2727_v26 = vunpack.c.h.b16 %v5810_v21  ;;  %v2621_v24 = vmul.f32 %v2613_v11, %v6338_v20  ;;  %v6408_v19 = vld [vmem:[#allocation30_spill] sm:$0xff]  ;;  %v6409_v58 = vld [vmem:[#allocation31_spill] sm:$0xff] }
 0x687   :  { %2988 = vmatpush.bf16.msrb.mxu1 %v2733_v34  ;;  %2942 = vmatpush.bf16.msra.mxu2 %v2852_v16  ;;  %v3173_v20 = vunpack.c.l.b16 %v5806_v5  ;;  %v3079_v0 = vsel %vm934_vm8, %v5860_v9, %v5770_v10  ;;  %v3114_v32 = vsel %vm980_vm6, %v5908_v45, %v3100_v56  ;;  %v2706_v31 = vunpack.c.l.b16 %v6406_v12  ;;  %v6407_v16 = vld [vmem:[#allocation36_spill] sm:$0xff]  ;;  %v6411_v11 = vld [vmem:[#allocation43_spill] sm:$0xff] }
 0x688   :  { %v2663_v4 = vpack.c.bf16 %v2659_v54, %v2658_v25  ;;  %v3084_v17 = vmul.f32 %v3079_v0, %v6405_v23  ;;  %v2707_v7 = vunpack.c.h.b16 %v6406_v12  ;;  %v3121_v35 = vmul.f32 %v3114_v32, %v6408_v19  ;;  %v6410_v54 = vld [vmem:[#allocation35_spill] sm:$0xff] }
 0x689   :  { %2955 = vmatpush.bf16.msra.mxu3 %v2853_v37  ;;  %v3124_v37 = vmul.f32 %v3116_v60, %v6407_v16 }
 0x68a   :  { %3402 = vmatmul.msk.bf16.vlgmr.msra.gmra.mxu2 %vm748_vm7, %v3430_v30  ;;  %v2730_v28 = vunpack.c.l.b16 %v2663_v4  ;;  %v2731_v39 = vunpack.c.h.b16 %v2663_v4  ;;  %v3174_v4 = vunpack.c.h.b16 %v5806_v5 }
 0x68b   :  { %3000 = vmatpush.bf16.msrb.mxu2 %v2754_v57  ;;  %v6038_v33 = vpop.permute.xlu2 %3031 }
 0x68c   :  { %3403 = vmatmul.msk.bf16.vlgmr.msra.gmra.mxu3 %vm748_vm7, %v3430_v30  ;;  %v3034_v22 = vpop.permute.xlu0 %3033  ;;  %v2607_v15 = vpop.permute.xlu1 %2606  ;;  %v2734_v49 = vpack.c.b16 %v2730_v28, %v2726_v38  ;;  %v2735_v3 = vpack.c.b16 %v2731_v39, %v2727_v26 }
 0x68d   :  { %3013 = vmatpush.bf16.msrb.mxu3 %v2755_v8  ;;  %v2609_v55 = vsel %vm400_vm5, %v5910_v13, %v2607_v15  ;;  %v2615_v21 = vsel %vm400_vm5, %v2607_v15, %v5858_v63  ;;  %v3073_v13 = vsel %vm934_vm8, %v5790_v50, %v5860_v9  ;;  %v6403_v63 = vld [vmem:[#allocation38_spill] sm:$0xff]  ;;  %v6404_v9 = vld [vmem:[#allocation39_spill] sm:$0xff]  ;;  %v3043_v28 = vsel %vm888_vm9, %v3034_v22, %v6411_v11 }
 0x68e   :  { %v2620_v47 = vmul.f32 %v2615_v21, %v6341_v43  ;;  %v2623_v30 = vmul.f32 %v2609_v55, %v6345_v6  ;;  %v2704_v43 = vunpack.c.l.b16 %v6403_v63  ;;  %v2705_v6 = vunpack.c.h.b16 %v6403_v63  ;;  %v3429_v8 = vld [vmem:[#allocation7] sm:$0xff]  ;;  %v6412_v15 = vld [vmem:[#allocation42_spill] sm:$0xff] }
 0x68f   :  { %3001 = vmatpush.bf16.msrb.mxu2 %v2734_v49  ;;  %v3083_v42 = vmul.f32 %v3073_v13, %v6404_v9  ;;  %v3175_v5 = vunpack.c.l.b16 %v6412_v15  ;;  %v3176_v49 = vunpack.c.h.b16 %v6412_v15 }
 0x690   :  { %v2626_v44 = vpack.c.bf16 %v2621_v24, %v2620_v47  ;;  %v2627_v14 = vpack.c.bf16 %v2623_v30, %v2622_v41  ;;  %v3075_v24 = vsel %vm934_vm8, %v5947_v46, %v5790_v50  ;;  %v6414_v50 = vld [vmem:[#allocation25_spill] sm:$0xff] }
 0x691   :  { %3014 = vmatpush.bf16.msrb.mxu3 %v2735_v3  ;;  %v3090_v3 = vpack.c.bf16 %v3084_v17, %v3083_v42  ;;  %v6415_v42 = vld [vmem:[#allocation12_spill] sm:$0xff] }
 0x692   :  { %v2708_v61 = vunpack.c.l.b16 %v2626_v44  ;;  %v2709_v53 = vunpack.c.h.b16 %v2626_v44  ;;  %v2710_v27 = vunpack.c.l.b16 %v2627_v14  ;;  %v2711_v29 = vunpack.c.h.b16 %v2627_v14  ;;  %v6413_v44 = vld [vmem:[#allocation28_spill] sm:$0xff] }
 0x693   :  { %v3048_v14 = vmul.f32 %v3043_v28, %v6413_v44 }
 0x694   :  { %v3104_v48 = vpop.permute.xlu0 %3103  ;;  %v6042_v34 = vpop.permute.xlu1 %3029  ;;  %v2712_v59 = vpack.c.b16 %v2708_v61, %v2704_v43  ;;  %v2713_v18 = vpack.c.b16 %v2709_v53, %v2705_v6  ;;  %v2715_v38 = vpack.c.b16 %v2711_v29, %v2707_v7 }
 0x695   :  { %v3110_v36 = vsel %vm980_vm6, %v3104_v48, %v5977_v2  ;;  %v3112_v45 = vsel %vm980_vm6, %v3100_v56, %v3104_v48  ;;  %v3080_v2 = vsel %vm934_vm8, %v5996_v51, %v5920_v1  ;;  %v2714_v56 = vpack.c.b16 %v2710_v27, %v2706_v31  ;;  %v3028_v53 = vpop.permute.xlu2 %3027 }
 0x696   :  { %v3122_v25 = vmul.f32 %v3112_v45, %v6409_v58  ;;  %v3123_v57 = vmul.f32 %v3110_v36, %v6410_v54  ;;  %2976 = vmatpush.bf16.msrb.mxu0 %v2712_v59  ;;  %2989 = vmatpush.bf16.msrb.mxu1 %v2713_v18  ;;  %v3037_v40 = vsel %vm888_vm9, %v6042_v34, %v3034_v22  ;;  %v3155_v45 = vunpack.c.l.b16 %v3090_v3 }
 0x697   :  { %3002 = vmatpush.bf16.msrb.mxu2 %v2714_v56  ;;  %3015 = vmatpush.bf16.msrb.mxu3 %v2715_v38  ;;  %v3077_v22 = vsel %vm934_vm8, %v5770_v10, %v5947_v46  ;;  %v3088_v30 = vmul.f32 %v3080_v2, %v6405_v23  ;;  %v3047_v13 = vmul.f32 %v3037_v40, %v6414_v50  ;;  %v3156_v31 = vunpack.c.h.b16 %v3090_v3 }
 0x698   :  { %v3127_v26 = vpack.c.bf16 %v3122_v25, %v3121_v35  ;;  %v3128_v39 = vpack.c.bf16 %v3124_v37, %v3123_v57  ;;  %v3081_v23 = vmul.f32 %v3077_v22, %v6415_v42  ;;  %v3040_v59 = vsel %vm888_vm9, %v3028_v53, %v6038_v33  ;;  %v6417_v37 = vld [vmem:[#allocation27_spill] sm:$0xff]  ;;  %v6418_v35 = vld [vmem:[#allocation17_spill] sm:$0xff] }
 0x699   :  { %3409 = vmatmul.msk.bf16.vlgmr.msrb.gmra.mxu1 %vm748_vm7, %v3429_v8  ;;  %3408 = vmatmul.msk.bf16.vlgmr.msrb.gmra.mxu0 %vm748_vm7, %v3429_v8  ;;  %v3054_v48 = vpack.c.bf16 %v3048_v14, %v3047_v13  ;;  %v3050_v58 = vmul.f32 %v3040_v59, %v6418_v35 }
 0x69a   :  { %v3177_v55 = vunpack.c.l.b16 %v3127_v26  ;;  %v3178_v21 = vunpack.c.h.b16 %v3127_v26  ;;  %v3179_v41 = vunpack.c.l.b16 %v3128_v39  ;;  %v3180_v47 = vunpack.c.h.b16 %v3128_v39  ;;  %3410 = vmatmul.msk.bf16.vlgmr.msrb.gmra.mxu2 %vm748_vm7, %v3429_v8 }
 0x69b   :  { %v3135_v25 = vunpack.c.l.b16 %v3054_v48 }
 0x69c   :  { %3411 = vmatmul.msk.bf16.vlgmr.msrb.gmra.mxu3 %vm748_vm7, %v3429_v8  ;;  %v3068_v0 = vpop.permute.xlu0 %3067  ;;  %v3036_v63 = vpop.permute.xlu1 %3035  ;;  %v3181_v43 = vpack.c.b16 %v3177_v55, %v3173_v20  ;;  %v3182_v61 = vpack.c.b16 %v3178_v21, %v3174_v4  ;;  %v3183_v6 = vpack.c.b16 %v3179_v41, %v3175_v5  ;;  %v3184_v32 = vpack.c.b16 %v3180_v47, %v3176_v49 }
 0x69d   :  { %v3074_v10 = vsel %vm934_vm8, %v3068_v0, %v5996_v51  ;;  %v3038_v46 = vsel %vm888_vm9, %v6038_v33, %v3036_v63  ;;  %v3044_v60 = vsel %vm888_vm9, %v3036_v63, %v5918_v52  ;;  %v6416_v51 = vld [vmem:[#allocation23_spill] sm:$0xff]  ;;  %v3136_v5 = vunpack.c.h.b16 %v3054_v48 }
 0x69e   :  { %v3087_v27 = vmul.f32 %v3074_v10, %v6404_v9  ;;  %v3051_v20 = vmul.f32 %v3038_v46, %v6414_v50  ;;  %v3052_v29 = vmul.f32 %v3044_v60, %v6413_v44  ;;  %3205 = vmatpush.bf16.msra.mxu0 %v3181_v43  ;;  %3218 = vmatpush.bf16.msra.mxu1 %v3182_v61 }
 0x69f   :  { %v3082_v17 = vmul.f32 %v3075_v24, %v6416_v51  ;;  %3231 = vmatpush.bf16.msra.mxu2 %v3183_v6  ;;  %3244 = vmatpush.bf16.msra.mxu3 %v3184_v32  ;;  %v3042_v9 = vsel %vm888_vm9, %v5918_v52, %v3028_v53 }
 0x6a0   :  { %v3092_v18 = vpack.c.bf16 %v3088_v30, %v3087_v27  ;;  %v3056_v36 = vpack.c.bf16 %v3052_v29, %v3051_v20  ;;  %v3049_v19 = vmul.f32 %v3042_v9, %v6417_v37 }
 0x6a1   :  { %v3089_v16 = vpack.c.bf16 %v3082_v17, %v3081_v23 }
 0x6a2   :  { %v3159_v12 = vunpack.c.l.b16 %v3092_v18  ;;  %v3160_v7 = vunpack.c.h.b16 %v3092_v18  ;;  %v3139_v4 = vunpack.c.l.b16 %v3056_v36  ;;  %v3140_v2 = vunpack.c.h.b16 %v3056_v36 }
 0x6a3   :  { %v3153_v55 = vunpack.c.l.b16 %v3089_v16  ;;  %v3055_v21 = vpack.c.bf16 %v3050_v58, %v3049_v19 }
 0x6a4   :  { %v3064_v54 = vpop.permute.xlu0 %3063  ;;  %v3026_v57 = vpop.permute.xlu1 %3025  ;;  %v3163_v8 = vpack.c.b16 %v3159_v12, %v3155_v45  ;;  %v3164_v33 = vpack.c.b16 %v3160_v7, %v3156_v31  ;;  %v3143_v3 = vpack.c.b16 %v3139_v4, %v3135_v25  ;;  %v3144_v24 = vpack.c.b16 %v3140_v2, %v3136_v5  ;;  %v3481_v4 = vld [vmem:[%s6141_s0 + $0x18] sm:$0xff] }
 0x6a5   :  { %v3076_v52 = vsel %vm934_vm8, %v3064_v54, %v3068_v0  ;;  %v3078_v56 = vsel %vm934_vm8, %v5920_v1, %v3064_v54  ;;  %v3039_v38 = vsel %vm888_vm9, %v3026_v57, %v6042_v34  ;;  %v3041_v28 = vsel %vm888_vm9, %v6411_v11, %v3026_v57  ;;  %v3431_v34 = vld [vmem:[#allocation7 + $0x10] sm:$0xff] }
 0x6a6   :  { %v3085_v26 = vmul.f32 %v3078_v56, %v6415_v42  ;;  %v3086_v39 = vmul.f32 %v3076_v52, %v6416_v51  ;;  %v3045_v40 = vmul.f32 %v3041_v28, %v6417_v37  ;;  %v3046_v15 = vmul.f32 %v3039_v38, %v6418_v35  ;;  %3232 = vmatpush.bf16.msra.mxu2 %v3163_v8 }
 0x6a7   :  { %3245 = vmatpush.bf16.msra.mxu3 %v3164_v33  ;;  %v3154_v11 = vunpack.c.h.b16 %v3089_v16  ;;  %v3137_v14 = vunpack.c.l.b16 %v3055_v21  ;;  %v3138_v50 = vunpack.c.h.b16 %v3055_v21 }
 0x6a8   :  { %v3091_v1 = vpack.c.bf16 %v3086_v39, %v3085_v26  ;;  %v3053_v49 = vpack.c.bf16 %v3046_v15, %v3045_v40  ;;  %v3482_v26 = vld [vmem:[%s6141_s0 + $0x10] sm:$0xff]  ;;  %v3483_v15 = vld [vmem:[%s6141_s0 + $0x8] sm:$0xff] }
 0x6aa   :  { %3233 = vmatpush.bf16.msra.mxu2 %v3143_v3  ;;  %v3157_v62 = vunpack.c.l.b16 %v3091_v1  ;;  %v3158_v41 = vunpack.c.h.b16 %v3091_v1  ;;  %v3133_v30 = vunpack.c.l.b16 %v3053_v49  ;;  %v3134_v44 = vunpack.c.h.b16 %v3053_v49  ;;  %v3484_v3 = vld [vmem:[%s6141_s0] sm:$0xff] }
 0x6ab   :  { %3246 = vmatpush.bf16.msra.mxu3 %v3144_v24 }
 0x6ac   :  { %v3161_v47 = vpack.c.b16 %v3157_v62, %v3153_v55  ;;  %v3162_v22 = vpack.c.b16 %v3158_v41, %v3154_v11  ;;  %v3141_v13 = vpack.c.b16 %v3137_v14, %v3133_v30  ;;  %v3142_v0 = vpack.c.b16 %v3138_v50, %v3134_v44  ;;  %v3259_v12 = vpop.permute.xlu0 %3258 }
 0x6ad   :  { %3418 = vmatmul.msk.bf16.vlgmr.msra.gmra.mxu2 %vm748_vm7, %v3431_v34 }
 0x6ae   :  { %3419 = vmatmul.msk.bf16.vlgmr.msra.gmra.mxu3 %vm748_vm7, %v3431_v34  ;;  %3206 = vmatpush.bf16.msra.mxu0 %v3161_v47 }
 0x6af   :  { %3219 = vmatpush.bf16.msra.mxu1 %v3162_v22 }
 0x6b2   :  { %3207 = vmatpush.bf16.msra.mxu0 %v3141_v13 }
 0x6b3   :  { %3220 = vmatpush.bf16.msra.mxu1 %v3142_v0 }
 0x6b5   :  { %3416 = vmatmul.msk.bf16.vlgmr.msra.gmra.mxu0 %vm748_vm7, %v3431_v34 }
 0x6b6   :  { %3417 = vmatmul.msk.bf16.vlgmr.msra.gmra.mxu1 %vm748_vm7, %v3431_v34 }
 0x6fe   :  { %v2918_v63 = vpop.f32.mrf.mxu0 }
 0x6ff   :  { %v2931_v43 = vpop.f32.mrf.mxu1 }
 0x706   :  { %v2920_v61 = vpop.f32.mrf.mxu0 }
 0x707   :  { %v2933_v6 = vpop.f32.mrf.mxu1 }
 0x70d   :  { %v2944_v53 = vpop.f32.mrf.mxu2 }
 0x70f   :  { %v2957_v10 = vpop.f32.mrf.mxu3 }
 0x715   :  { %v2946_v46 = vpop.f32.mrf.mxu2 }
 0x716   :  { %v2991_v32 = vpop.f32.mrf.mxu1  ;;  %v2978_v27 = vpop.f32.mrf.mxu0 }
 0x717   :  { %v2959_v60 = vpop.f32.mrf.mxu3  ;;  %v2979_v18 = vadd.f32 %v2978_v27, %v2918_v63  ;;  %v2992_v31 = vadd.f32 %v2991_v32, %v2931_v43 }
 0x71d   :  { %v3004_v20 = vpop.f32.mrf.mxu2 }
 0x71e   :  { %v2993_v42 = vpop.f32.mrf.mxu1  ;;  %v2980_v23 = vpop.f32.mrf.mxu0  ;;  %v3005_v48 = vadd.f32 %v3004_v20, %v2944_v53 }
 0x71f   :  { %v3017_v29 = vpop.f32.mrf.mxu3 }
 0x720   :  { %v3018_v59 = vadd.f32 %v3017_v29, %v2957_v10 }
 0x725   :  { %v3006_v17 = vpop.f32.mrf.mxu2 }
 0x727   :  { %v3019_v51 = vpop.f32.mrf.mxu3 }
 0x730   :  { %v3235_v9 = vpop.f32.mrf.mxu2 }
 0x731   :  { %v3254_v36 = vadd.f32 %v3235_v9, %v3005_v48  ;;  %v3248_v45 = vpop.f32.mrf.mxu3 }
 0x732   :  { %v3255_v7 = vadd.f32 %v3248_v45, %v3018_v59  ;;  %v3209_v16 = vpop.f32.mrf.mxu0 }
 0x733   :  { %v3263_v37 = vadd.f32 %v3259_v12, %v3254_v36  ;;  %v3252_v19 = vadd.f32 %v3209_v16, %v2979_v18  ;;  %v3222_v35 = vpop.f32.mrf.mxu1 }
 0x734   :  { %v3264_v58 = vadd.f32 %v3259_v12, %v3255_v7  ;;  %v3253_v25 = vadd.f32 %v3222_v35, %v2992_v31 }
 0x735   :  { %v3261_v54 = vadd.f32 %v3259_v12, %v3252_v19  ;;  %v3267_v57 = vperm.slane %v3263_v37, 0 }
 0x736   :  { %v3268_v8 = vperm.slane %v3264_v58, 0  ;;  %v3262_v33 = vadd.f32 %v3259_v12, %v3253_v25 }
 0x737   :  { %v3265_v52 = vperm.slane %v3261_v54, 0  ;;  %v3271_v39 = vadd.f32 %v3482_v26, %v3267_v57 }
 0x738   :  { %v3272_v2 = vadd.f32 %v3481_v4, %v3268_v8  ;;  %v3266_v56 = vperm.slane %v3262_v33, 0  ;;  %v3237_v38 = vpop.f32.mrf.mxu2 }
 0x739   :  { %v3250_v28 = vpop.f32.mrf.mxu3  ;;  %v3269_v24 = vadd.f32 %v3484_v3, %v3265_v52 }
 0x73a   :  { %v3278_v40 = vrot.slane %v3272_v2, 4  ;;  %v3270_v5 = vadd.f32 %v3483_v15, %v3266_v56  ;;  %v3211_v1 = vpop.f32.mrf.mxu0 }
 0x73b   :  { %v3224_v49 = vpop.f32.mrf.mxu1 }
 0x73c   :  { %v3277_v34 = vrot.slane %v3270_v5, 4  ;;  %v3281_v55 = vsel %vm3279_vm10, %v3271_v39, %v3278_v40 }
 0x73d   :  { %3285 = vst [vmem:[#allocation8 + $0x8] sm:$0xff] %v3281_v55 }
 0x73e   :  { %v3280_v21 = vsel %vm3279_vm10, %v3269_v24, %v3277_v34 }
 0x73f   :  { %3284 = vst [vmem:[#allocation8] sm:$0xff] %v3280_v21 }
 0x740   :  { %3296 = dma.vmem_to_hbm [thread:$0]  %s3292_s2, 256, %s3294_s1, [#allocation4]  }
 0x741   :  { %3585 = dma.done.wait [#allocation4], 256  }
 0x742   :  { %3586 = vsyncadd [#allocation4], 4294967040 }
 0x743   :  { %3301 = vsyncpa [#allocation3], 1 }
 0x744   :  { %3302 = vsyncpa [#allocation6], 1 }
 0x745   :  { %3303 = vsyncpa [#allocation4], 1 }

</bundles_post_ra>
